<compile_context>
chip_gen: v7x
topology: tpu7x:2x2x1
jax: 0.10.0
libtpu: 0.0.40
codegen_flags: <defaults>
</compile_context>

<pallas_src>
import functools

import numpy as np

import jax
import jax.numpy as jnp
from jax.experimental import pallas as pl
from jax.experimental.pallas import tpu as pltpu


# --------------------------- fused Pallas kernel --------------------------- #
def _il_fused_kernel(lhs1_ref, t1_ref, b1_ref, t2_ref, b2_ref, t3_ref, b3_ref,
                     fc1w_ref, fc1b_ref, fc2w_ref, fc2b_ref, out_ref, *, batch):
    f32 = jnp.float32
    bf16 = jnp.bfloat16

    # ---- conv1 (8x8, stride 4): rows ordered (b, y%2, y//2), lanes (x*16+oc)
    acc1 = jnp.dot(lhs1_ref[0], t1_ref[0], preferred_element_type=f32)
    for i in range(1, 8):
        acc1 = acc1 + jnp.dot(lhs1_ref[i], t1_ref[i], preferred_element_type=f32)
    act1 = jnp.maximum(acc1 + b1_ref[...], 0.0)                 # (batch*20, 320) f32

    # ---- conv2 (4x4, stride 2): offset i = 2*a + r -> act1 rows r*10+a .. +8
    acc2 = None
    for i in range(4):
        a, r = i // 2, i % 2
        lhs = jnp.concatenate(
            [act1[b * 20 + r * 10 + a: b * 20 + r * 10 + a + 9, :]
             for b in range(batch)], axis=0).astype(bf16)        # (batch*9, 320)
        part = jnp.dot(lhs, t2_ref[i], preferred_element_type=f32)
        acc2 = part if acc2 is None else acc2 + part
    act2 = jnp.maximum(acc2 + b2_ref[...], 0.0)                 # (batch*9, 288) f32

    # ---- conv3 (3x3, stride 1)
    acc3 = None
    for i in range(3):
        lhs = jnp.concatenate(
            [act2[b * 9 + i: b * 9 + i + 7, :] for b in range(batch)],
            axis=0).astype(bf16)                                 # (batch*7, 288)
        part = jnp.dot(lhs, t3_ref[i], preferred_element_type=f32)
        acc3 = part if acc3 is None else acc3 + part
    act3 = jnp.maximum(acc3 + b3_ref[...], 0.0)                 # (batch*7, 224) f32

    # ---- fc1: accumulate over the 7 output rows; weight columns are
    #      pre-permuted to match PyTorch's NCHW flatten (c*49 + h*7 + w).
    accf = None
    for h in range(7):
        lhs = jnp.concatenate(
            [act3[b * 7 + h: b * 7 + h + 1, :] for b in range(batch)],
            axis=0).astype(bf16)                                 # (batch, 224)
        part = jnp.dot(lhs, fc1w_ref[h], preferred_element_type=f32)
        accf = part if accf is None else accf + part
    hid = jnp.maximum(accf + fc1b_ref[...], 0.0).astype(bf16)   # (batch, 256)

    # ---- fc2
    out = jnp.dot(hid, fc2w_ref[...], preferred_element_type=f32) + fc2b_ref[...]
    out_ref[...] = out.astype(out_ref.dtype)


# --------------------- one-time parameter preparation ---------------------- #
def _width_toeplitz(w, stride, w_in):
    """w: (OC, IC, KH, KW) -> T: (KH, W_in*IC, W_out*OC) with
    T[i][x*IC+c, ow*OC+oc] = w[oc, c, i, x - stride*ow] (0 elsewhere)."""
    w = np.asarray(w, np.float32)
    oc, ic, kh, kw = w.shape
    w_out = (w_in - kw) // stride + 1
    t = np.zeros((kh, w_in * ic, w_out * oc), np.float32)
    for i in range(kh):
        for j in range(kw):
            wij = w[:, :, i, j].T                      # (ic, oc)
            for ow in range(w_out):
                x = stride * ow + j
                t[i, x * ic:(x + 1) * ic, ow * oc:(ow + 1) * oc] = wij
    return t


def _tile_bias(b, w_out):
    return np.tile(np.asarray(b, np.float32), w_out)[None, :]   # (1, w_out*oc)


def prepare_params(p):
    """Hoist all weight re-layouts out of the forward path (done once)."""
    fc1_w4 = np.asarray(p["fc1_w"], np.float32).reshape(256, 32, 7, 7)   # (n,c,h,w)
    fc1_perm = np.transpose(fc1_w4, (2, 3, 1, 0)).reshape(7, 7 * 32, 256)  # (h, w*32+c, n)
    return dict(
        t1=jnp.asarray(_width_toeplitz(p["conv1_w"], 4, 84), jnp.bfloat16),    # (8, 84, 320)
        b1=jnp.asarray(_tile_bias(p["conv1_b"], 20)),                          # (1, 320)
        t2=jnp.asarray(_width_toeplitz(p["conv2_w"], 2, 20), jnp.bfloat16),    # (4, 320, 288)
        b2=jnp.asarray(_tile_bias(p["conv2_b"], 9)),                           # (1, 288)
        t3=jnp.asarray(_width_toeplitz(p["conv3_w"], 1, 9), jnp.bfloat16),     # (3, 288, 224)
        b3=jnp.asarray(_tile_bias(p["conv3_b"], 7)),                           # (1, 224)
        fc1_w=jnp.asarray(fc1_perm, jnp.bfloat16),                             # (7, 224, 256)
        fc1_b=jnp.asarray(np.asarray(p["fc1_b"], np.float32)[None, :]),        # (1, 256)
        fc2_w=jnp.asarray(np.asarray(p["fc2_w"], np.float32).T, jnp.bfloat16), # (256, A)
        fc2_b=jnp.asarray(np.asarray(p["fc2_b"], np.float32)[None, :]),        # (1, A)
    )


# ------------------------------- forward glue ------------------------------ #
def _conv1_rows(img):
    """img: (B, 84, 84) -> (8, B*20, 84) bf16.

    Row m = b*20 + (y%2)*10 + y//2 of slice i holds img[b, 4*y + i, :], so the
    conv1 matmul output is already laid out with even output rows first, then
    odd rows (what conv2's stride-2 accesses need)."""
    b = img.shape[0]
    mats = []
    for i in range(8):
        phases = [img[:, 4 * r + i: 4 * r + i + 80: 8, :] for r in (0, 1)]  # (B,10,84)
        mats.append(jnp.concatenate(phases, axis=1).reshape(b * 20, 84))
    return jnp.stack(mats, axis=0).astype(jnp.bfloat16)


@jax.jit
def il_forward(x_nchw, prep):
    batch = x_nchw.shape[0]
    assert x_nchw.shape[1:] == (1, 84, 84), "ILModel's fc1 (7*7*32) implies a 1x84x84 input"
    lhs1 = _conv1_rows(x_nchw[:, 0, :, :])
    num_actions = prep["fc2_b"].shape[-1]

    def vmem():
        return pl.BlockSpec(memory_space=pltpu.MemorySpace.VMEM)

    # Single fused launch, everything VMEM-resident (total footprint ~2.5 MB).
    # TODO(synk): on v7x, split the batch over a ("parallel",) grid axis so the
    # second TensorCore is used; single-invocation keeps the weight DMA
    # single-shot on v5e/v6e.
    return pl.pallas_call(
        functools.partial(_il_fused_kernel, batch=batch),
        out_shape=jax.ShapeDtypeStruct((batch, num_actions), jnp.float32),
        in_specs=[vmem() for _ in range(11)],
        out_specs=vmem(),
    )(lhs1, prep["t1"], prep["b1"], prep["t2"], prep["b2"], prep["t3"],
      prep["b3"], prep["fc1_w"], prep["fc1_b"], prep["fc2_w"], prep["fc2_b"])


# ------------------------ pure-JAX reference check ------------------------- #
def reference_forward(x_nchw, p):
    def conv(x, w, b, stride):
        y = jax.lax.conv_general_dilated(
            x, w, (stride, stride), "VALID",
            dimension_numbers=("NCHW", "OIHW", "NCHW"))
        return jax.nn.relu(y + b[None, :, None, None])

    x = conv(x_nchw, p["conv1_w"], p["conv1_b"], 4)
    x = conv(x, p["conv2_w"], p["conv2_b"], 2)
    x = conv(x, p["conv3_w"], p["conv3_b"], 1)
    x = x.reshape(x.shape[0], -1)
    x = jax.nn.relu(x @ p["fc1_w"].T + p["fc1_b"])
    x = x @ p["fc2_w"].T + p["fc2_b"]
    return x


# ---------------------------------- main ----------------------------------- #
if __name__ == "__main__":
    key = jax.random.PRNGKey(0)
    ks = jax.random.split(key, 11)
    B, num_actions = 2, 5

    x = jax.random.normal(ks[0], (B, 1, 84, 84), jnp.float32)

    def init(k, shape, scale):
        return jax.random.normal(k, shape, jnp.float32) * scale

    params = dict(
        conv1_w=init(ks[1], (16, 1, 8, 8), 0.10),
        conv1_b=init(ks[2], (16,), 0.10),
        conv2_w=init(ks[3], (32, 16, 4, 4), 0.05),
        conv2_b=init(ks[4], (32,), 0.05),
        conv3_w=init(ks[5], (32, 32, 3, 3), 0.05),
        conv3_b=init(ks[6], (32,), 0.05),
        fc1_w=init(ks[7], (256, 7 * 7 * 32), 0.02),
        fc1_b=init(ks[8], (256,), 0.02),
        fc2_w=init(ks[9], (num_actions, 256), 0.05),
        fc2_b=init(ks[10], (num_actions,), 0.05),
    )

    prep = prepare_params(params)          # one-time weight re-layout (host side)

    out = il_forward(x, prep)
    out = jax.block_until_ready(out)

    ref = reference_forward(x, params)     # f32 reference
    assert out.shape == (B, num_actions)
    # Kernel runs the MXU in bf16 (f32 accumulate); tolerance sized for bf16
    # weight/activation rounding over 5 layers.
    assert jnp.allclose(out, ref, atol=5e-2, rtol=5e-2), "mismatch vs JAX reference"

    print("KERNEL_OK")
</pallas_src>

<mosaic_0001>
module attributes {stable_mosaic.version = 11 : i64} {
  func.func @_il_fused_kernel(%arg0: memref<8x40x84xbf16, #tpu.memory_space<vmem>>, %arg1: memref<8x84x320xbf16, #tpu.memory_space<vmem>>, %arg2: memref<1x320xf32, #tpu.memory_space<vmem>>, %arg3: memref<4x320x288xbf16, #tpu.memory_space<vmem>>, %arg4: memref<1x288xf32, #tpu.memory_space<vmem>>, %arg5: memref<3x288x224xbf16, #tpu.memory_space<vmem>>, %arg6: memref<1x224xf32, #tpu.memory_space<vmem>>, %arg7: memref<7x224x256xbf16, #tpu.memory_space<vmem>>, %arg8: memref<1x256xf32, #tpu.memory_space<vmem>>, %arg9: memref<256x5xbf16, #tpu.memory_space<vmem>>, %arg10: memref<1x5xf32, #tpu.memory_space<vmem>>, %arg11: memref<2x5xf32, #tpu.memory_space<vmem>>) attributes {dimension_semantics = [], scalar_prefetch = 0 : i64, scratch_operands = 0 : i64, tpu.core_type = #tpu.core_type<tc>} {
    %c0 = arith.constant 0 : index
    %c0_0 = arith.constant 0 : index
    %c0_1 = arith.constant 0 : index
    %0 = vector.load %arg0[%c0, %c0_0, %c0_1] : memref<8x40x84xbf16, #tpu.memory_space<vmem>>, vector<1x40x84xbf16>
    %1 = vector.shape_cast %0 : vector<1x40x84xbf16> to vector<40x84xbf16>
    %c0_2 = arith.constant 0 : index
    %c0_3 = arith.constant 0 : index
    %c0_4 = arith.constant 0 : index
    %2 = vector.load %arg1[%c0_2, %c0_3, %c0_4] : memref<8x84x320xbf16, #tpu.memory_space<vmem>>, vector<1x84x320xbf16>
    %3 = vector.shape_cast %2 : vector<1x84x320xbf16> to vector<84x320xbf16>
    %cst = arith.constant dense<0.000000e+00> : vector<40x320xf32>
    %4 = tpu.matmul %1, %3, %cst {dimension_numbers = #tpu.dot_dimension_numbers<[1], [0], [0], [1], [0, 0, 1, 1], [], []>} : vector<40x84xbf16>, vector<84x320xbf16>, vector<40x320xf32> -> vector<40x320xf32>
    %c1 = arith.constant 1 : index
    %c0_5 = arith.constant 0 : index
    %c0_6 = arith.constant 0 : index
    %5 = vector.load %arg0[%c1, %c0_5, %c0_6] : memref<8x40x84xbf16, #tpu.memory_space<vmem>>, vector<1x40x84xbf16>
    %6 = vector.shape_cast %5 : vector<1x40x84xbf16> to vector<40x84xbf16>
    %c1_7 = arith.constant 1 : index
    %c0_8 = arith.constant 0 : index
    %c0_9 = arith.constant 0 : index
    %7 = vector.load %arg1[%c1_7, %c0_8, %c0_9] : memref<8x84x320xbf16, #tpu.memory_space<vmem>>, vector<1x84x320xbf16>
    %8 = vector.shape_cast %7 : vector<1x84x320xbf16> to vector<84x320xbf16>
    %cst_10 = arith.constant dense<0.000000e+00> : vector<40x320xf32>
    %9 = tpu.matmul %6, %8, %cst_10 {dimension_numbers = #tpu.dot_dimension_numbers<[1], [0], [0], [1], [0, 0, 1, 1], [], []>} : vector<40x84xbf16>, vector<84x320xbf16>, vector<40x320xf32> -> vector<40x320xf32>
    %10 = arith.addf %4, %9 : vector<40x320xf32>
    %c2 = arith.constant 2 : index
    %c0_11 = arith.constant 0 : index
    %c0_12 = arith.constant 0 : index
    %11 = vector.load %arg0[%c2, %c0_11, %c0_12] : memref<8x40x84xbf16, #tpu.memory_space<vmem>>, vector<1x40x84xbf16>
    %12 = vector.shape_cast %11 : vector<1x40x84xbf16> to vector<40x84xbf16>
    %c2_13 = arith.constant 2 : index
    %c0_14 = arith.constant 0 : index
    %c0_15 = arith.constant 0 : index
    %13 = vector.load %arg1[%c2_13, %c0_14, %c0_15] : memref<8x84x320xbf16, #tpu.memory_space<vmem>>, vector<1x84x320xbf16>
    %14 = vector.shape_cast %13 : vector<1x84x320xbf16> to vector<84x320xbf16>
    %cst_16 = arith.constant dense<0.000000e+00> : vector<40x320xf32>
    %15 = tpu.matmul %12, %14, %cst_16 {dimension_numbers = #tpu.dot_dimension_numbers<[1], [0], [0], [1], [0, 0, 1, 1], [], []>} : vector<40x84xbf16>, vector<84x320xbf16>, vector<40x320xf32> -> vector<40x320xf32>
    %16 = arith.addf %10, %15 : vector<40x320xf32>
    %c3 = arith.constant 3 : index
    %c0_17 = arith.constant 0 : index
    %c0_18 = arith.constant 0 : index
    %17 = vector.load %arg0[%c3, %c0_17, %c0_18] : memref<8x40x84xbf16, #tpu.memory_space<vmem>>, vector<1x40x84xbf16>
    %18 = vector.shape_cast %17 : vector<1x40x84xbf16> to vector<40x84xbf16>
    %c3_19 = arith.constant 3 : index
    %c0_20 = arith.constant 0 : index
    %c0_21 = arith.constant 0 : index
    %19 = vector.load %arg1[%c3_19, %c0_20, %c0_21] : memref<8x84x320xbf16, #tpu.memory_space<vmem>>, vector<1x84x320xbf16>
    %20 = vector.shape_cast %19 : vector<1x84x320xbf16> to vector<84x320xbf16>
    %cst_22 = arith.constant dense<0.000000e+00> : vector<40x320xf32>
    %21 = tpu.matmul %18, %20, %cst_22 {dimension_numbers = #tpu.dot_dimension_numbers<[1], [0], [0], [1], [0, 0, 1, 1], [], []>} : vector<40x84xbf16>, vector<84x320xbf16>, vector<40x320xf32> -> vector<40x320xf32>
    %22 = arith.addf %16, %21 : vector<40x320xf32>
    %c4 = arith.constant 4 : index
    %c0_23 = arith.constant 0 : index
    %c0_24 = arith.constant 0 : index
    %23 = vector.load %arg0[%c4, %c0_23, %c0_24] : memref<8x40x84xbf16, #tpu.memory_space<vmem>>, vector<1x40x84xbf16>
    %24 = vector.shape_cast %23 : vector<1x40x84xbf16> to vector<40x84xbf16>
    %c4_25 = arith.constant 4 : index
    %c0_26 = arith.constant 0 : index
    %c0_27 = arith.constant 0 : index
    %25 = vector.load %arg1[%c4_25, %c0_26, %c0_27] : memref<8x84x320xbf16, #tpu.memory_space<vmem>>, vector<1x84x320xbf16>
    %26 = vector.shape_cast %25 : vector<1x84x320xbf16> to vector<84x320xbf16>
    %cst_28 = arith.constant dense<0.000000e+00> : vector<40x320xf32>
    %27 = tpu.matmul %24, %26, %cst_28 {dimension_numbers = #tpu.dot_dimension_numbers<[1], [0], [0], [1], [0, 0, 1, 1], [], []>} : vector<40x84xbf16>, vector<84x320xbf16>, vector<40x320xf32> -> vector<40x320xf32>
    %28 = arith.addf %22, %27 : vector<40x320xf32>
    %c5 = arith.constant 5 : index
    %c0_29 = arith.constant 0 : index
    %c0_30 = arith.constant 0 : index
    %29 = vector.load %arg0[%c5, %c0_29, %c0_30] : memref<8x40x84xbf16, #tpu.memory_space<vmem>>, vector<1x40x84xbf16>
    %30 = vector.shape_cast %29 : vector<1x40x84xbf16> to vector<40x84xbf16>
    %c5_31 = arith.constant 5 : index
    %c0_32 = arith.constant 0 : index
    %c0_33 = arith.constant 0 : index
    %31 = vector.load %arg1[%c5_31, %c0_32, %c0_33] : memref<8x84x320xbf16, #tpu.memory_space<vmem>>, vector<1x84x320xbf16>
    %32 = vector.shape_cast %31 : vector<1x84x320xbf16> to vector<84x320xbf16>
    %cst_34 = arith.constant dense<0.000000e+00> : vector<40x320xf32>
    %33 = tpu.matmul %30, %32, %cst_34 {dimension_numbers = #tpu.dot_dimension_numbers<[1], [0], [0], [1], [0, 0, 1, 1], [], []>} : vector<40x84xbf16>, vector<84x320xbf16>, vector<40x320xf32> -> vector<40x320xf32>
    %34 = arith.addf %28, %33 : vector<40x320xf32>
    %c6 = arith.constant 6 : index
    %c0_35 = arith.constant 0 : index
    %c0_36 = arith.constant 0 : index
    %35 = vector.load %arg0[%c6, %c0_35, %c0_36] : memref<8x40x84xbf16, #tpu.memory_space<vmem>>, vector<1x40x84xbf16>
    %36 = vector.shape_cast %35 : vector<1x40x84xbf16> to vector<40x84xbf16>
    %c6_37 = arith.constant 6 : index
    %c0_38 = arith.constant 0 : index
    %c0_39 = arith.constant 0 : index
    %37 = vector.load %arg1[%c6_37, %c0_38, %c0_39] : memref<8x84x320xbf16, #tpu.memory_space<vmem>>, vector<1x84x320xbf16>
    %38 = vector.shape_cast %37 : vector<1x84x320xbf16> to vector<84x320xbf16>
    %cst_40 = arith.constant dense<0.000000e+00> : vector<40x320xf32>
    %39 = tpu.matmul %36, %38, %cst_40 {dimension_numbers = #tpu.dot_dimension_numbers<[1], [0], [0], [1], [0, 0, 1, 1], [], []>} : vector<40x84xbf16>, vector<84x320xbf16>, vector<40x320xf32> -> vector<40x320xf32>
    %40 = arith.addf %34, %39 : vector<40x320xf32>
    %c7 = arith.constant 7 : index
    %c0_41 = arith.constant 0 : index
    %c0_42 = arith.constant 0 : index
    %41 = vector.load %arg0[%c7, %c0_41, %c0_42] : memref<8x40x84xbf16, #tpu.memory_space<vmem>>, vector<1x40x84xbf16>
    %42 = vector.shape_cast %41 : vector<1x40x84xbf16> to vector<40x84xbf16>
    %c7_43 = arith.constant 7 : index
    %c0_44 = arith.constant 0 : index
    %c0_45 = arith.constant 0 : index
    %43 = vector.load %arg1[%c7_43, %c0_44, %c0_45] : memref<8x84x320xbf16, #tpu.memory_space<vmem>>, vector<1x84x320xbf16>
    %44 = vector.shape_cast %43 : vector<1x84x320xbf16> to vector<84x320xbf16>
    %cst_46 = arith.constant dense<0.000000e+00> : vector<40x320xf32>
    %45 = tpu.matmul %42, %44, %cst_46 {dimension_numbers = #tpu.dot_dimension_numbers<[1], [0], [0], [1], [0, 0, 1, 1], [], []>} : vector<40x84xbf16>, vector<84x320xbf16>, vector<40x320xf32> -> vector<40x320xf32>
    %46 = arith.addf %40, %45 : vector<40x320xf32>
    %c0_47 = arith.constant 0 : index
    %c0_48 = arith.constant 0 : index
    %47 = vector.load %arg2[%c0_47, %c0_48] : memref<1x320xf32, #tpu.memory_space<vmem>>, vector<1x320xf32>
    %48 = vector.broadcast %47 : vector<1x320xf32> to vector<40x320xf32>
    %49 = arith.addf %46, %48 : vector<40x320xf32>
    %cst_49 = arith.constant 0.000000e+00 : f32
    %50 = vector.broadcast %cst_49 : f32 to vector<40x320xf32>
    %51 = arith.maximumf %49, %50 : vector<40x320xf32>
    %52 = vector.extract_strided_slice %51 {offsets = [0, 0], sizes = [9, 320], strides = [1, 1]} : vector<40x320xf32> to vector<9x320xf32>
    %53 = vector.extract_strided_slice %51 {offsets = [20, 0], sizes = [9, 320], strides = [1, 1]} : vector<40x320xf32> to vector<9x320xf32>
    %54 = tpu.concatenate %52, %53 in 0 : vector<9x320xf32>, vector<9x320xf32> -> vector<18x320xf32>
    %55 = arith.truncf %54 : vector<18x320xf32> to vector<18x320xbf16>
    %c0_50 = arith.constant 0 : index
    %c0_51 = arith.constant 0 : index
    %c0_52 = arith.constant 0 : index
    %56 = vector.load %arg3[%c0_50, %c0_51, %c0_52] : memref<4x320x288xbf16, #tpu.memory_space<vmem>>, vector<1x320x288xbf16>
    %57 = vector.shape_cast %56 : vector<1x320x288xbf16> to vector<320x288xbf16>
    %cst_53 = arith.constant dense<0.000000e+00> : vector<18x288xf32>
    %58 = tpu.matmul %55, %57, %cst_53 {dimension_numbers = #tpu.dot_dimension_numbers<[1], [0], [0], [1], [0, 0, 1, 1], [], []>} : vector<18x320xbf16>, vector<320x288xbf16>, vector<18x288xf32> -> vector<18x288xf32>
    %59 = vector.extract_strided_slice %51 {offsets = [10, 0], sizes = [9, 320], strides = [1, 1]} : vector<40x320xf32> to vector<9x320xf32>
    %60 = vector.extract_strided_slice %51 {offsets = [30, 0], sizes = [9, 320], strides = [1, 1]} : vector<40x320xf32> to vector<9x320xf32>
    %61 = tpu.concatenate %59, %60 in 0 : vector<9x320xf32>, vector<9x320xf32> -> vector<18x320xf32>
    %62 = arith.truncf %61 : vector<18x320xf32> to vector<18x320xbf16>
    %c1_54 = arith.constant 1 : index
    %c0_55 = arith.constant 0 : index
    %c0_56 = arith.constant 0 : index
    %63 = vector.load %arg3[%c1_54, %c0_55, %c0_56] : memref<4x320x288xbf16, #tpu.memory_space<vmem>>, vector<1x320x288xbf16>
    %64 = vector.shape_cast %63 : vector<1x320x288xbf16> to vector<320x288xbf16>
    %cst_57 = arith.constant dense<0.000000e+00> : vector<18x288xf32>
    %65 = tpu.matmul %62, %64, %cst_57 {dimension_numbers = #tpu.dot_dimension_numbers<[1], [0], [0], [1], [0, 0, 1, 1], [], []>} : vector<18x320xbf16>, vector<320x288xbf16>, vector<18x288xf32> -> vector<18x288xf32>
    %66 = arith.addf %58, %65 : vector<18x288xf32>
    %67 = vector.extract_strided_slice %51 {offsets = [1, 0], sizes = [9, 320], strides = [1, 1]} : vector<40x320xf32> to vector<9x320xf32>
    %68 = vector.extract_strided_slice %51 {offsets = [21, 0], sizes = [9, 320], strides = [1, 1]} : vector<40x320xf32> to vector<9x320xf32>
    %69 = tpu.concatenate %67, %68 in 0 : vector<9x320xf32>, vector<9x320xf32> -> vector<18x320xf32>
    %70 = arith.truncf %69 : vector<18x320xf32> to vector<18x320xbf16>
    %c2_58 = arith.constant 2 : index
    %c0_59 = arith.constant 0 : index
    %c0_60 = arith.constant 0 : index
    %71 = vector.load %arg3[%c2_58, %c0_59, %c0_60] : memref<4x320x288xbf16, #tpu.memory_space<vmem>>, vector<1x320x288xbf16>
    %72 = vector.shape_cast %71 : vector<1x320x288xbf16> to vector<320x288xbf16>
    %cst_61 = arith.constant dense<0.000000e+00> : vector<18x288xf32>
    %73 = tpu.matmul %70, %72, %cst_61 {dimension_numbers = #tpu.dot_dimension_numbers<[1], [0], [0], [1], [0, 0, 1, 1], [], []>} : vector<18x320xbf16>, vector<320x288xbf16>, vector<18x288xf32> -> vector<18x288xf32>
    %74 = arith.addf %66, %73 : vector<18x288xf32>
    %75 = vector.extract_strided_slice %51 {offsets = [11, 0], sizes = [9, 320], strides = [1, 1]} : vector<40x320xf32> to vector<9x320xf32>
    %76 = vector.extract_strided_slice %51 {offsets = [31, 0], sizes = [9, 320], strides = [1, 1]} : vector<40x320xf32> to vector<9x320xf32>
    %77 = tpu.concatenate %75, %76 in 0 : vector<9x320xf32>, vector<9x320xf32> -> vector<18x320xf32>
    %78 = arith.truncf %77 : vector<18x320xf32> to vector<18x320xbf16>
    %c3_62 = arith.constant 3 : index
    %c0_63 = arith.constant 0 : index
    %c0_64 = arith.constant 0 : index
    %79 = vector.load %arg3[%c3_62, %c0_63, %c0_64] : memref<4x320x288xbf16, #tpu.memory_space<vmem>>, vector<1x320x288xbf16>
    %80 = vector.shape_cast %79 : vector<1x320x288xbf16> to vector<320x288xbf16>
    %cst_65 = arith.constant dense<0.000000e+00> : vector<18x288xf32>
    %81 = tpu.matmul %78, %80, %cst_65 {dimension_numbers = #tpu.dot_dimension_numbers<[1], [0], [0], [1], [0, 0, 1, 1], [], []>} : vector<18x320xbf16>, vector<320x288xbf16>, vector<18x288xf32> -> vector<18x288xf32>
    %82 = arith.addf %74, %81 : vector<18x288xf32>
    %c0_66 = arith.constant 0 : index
    %c0_67 = arith.constant 0 : index
    %83 = vector.load %arg4[%c0_66, %c0_67] : memref<1x288xf32, #tpu.memory_space<vmem>>, vector<1x288xf32>
    %84 = vector.broadcast %83 : vector<1x288xf32> to vector<18x288xf32>
    %85 = arith.addf %82, %84 : vector<18x288xf32>
    %cst_68 = arith.constant 0.000000e+00 : f32
    %86 = vector.broadcast %cst_68 : f32 to vector<18x288xf32>
    %87 = arith.maximumf %85, %86 : vector<18x288xf32>
    %88 = vector.extract_strided_slice %87 {offsets = [0, 0], sizes = [7, 288], strides = [1, 1]} : vector<18x288xf32> to vector<7x288xf32>
    %89 = vector.extract_strided_slice %87 {offsets = [9, 0], sizes = [7, 288], strides = [1, 1]} : vector<18x288xf32> to vector<7x288xf32>
    %90 = tpu.concatenate %88, %89 in 0 : vector<7x288xf32>, vector<7x288xf32> -> vector<14x288xf32>
    %91 = arith.truncf %90 : vector<14x288xf32> to vector<14x288xbf16>
    %c0_69 = arith.constant 0 : index
    %c0_70 = arith.constant 0 : index
    %c0_71 = arith.constant 0 : index
    %92 = vector.load %arg5[%c0_69, %c0_70, %c0_71] : memref<3x288x224xbf16, #tpu.memory_space<vmem>>, vector<1x288x224xbf16>
    %93 = vector.shape_cast %92 : vector<1x288x224xbf16> to vector<288x224xbf16>
    %cst_72 = arith.constant dense<0.000000e+00> : vector<14x224xf32>
    %94 = tpu.matmul %91, %93, %cst_72 {dimension_numbers = #tpu.dot_dimension_numbers<[1], [0], [0], [1], [0, 0, 1, 1], [], []>} : vector<14x288xbf16>, vector<288x224xbf16>, vector<14x224xf32> -> vector<14x224xf32>
    %95 = vector.extract_strided_slice %87 {offsets = [1, 0], sizes = [7, 288], strides = [1, 1]} : vector<18x288xf32> to vector<7x288xf32>
    %96 = vector.extract_strided_slice %87 {offsets = [10, 0], sizes = [7, 288], strides = [1, 1]} : vector<18x288xf32> to vector<7x288xf32>
    %97 = tpu.concatenate %95, %96 in 0 : vector<7x288xf32>, vector<7x288xf32> -> vector<14x288xf32>
    %98 = arith.truncf %97 : vector<14x288xf32> to vector<14x288xbf16>
    %c1_73 = arith.constant 1 : index
    %c0_74 = arith.constant 0 : index
    %c0_75 = arith.constant 0 : index
    %99 = vector.load %arg5[%c1_73, %c0_74, %c0_75] : memref<3x288x224xbf16, #tpu.memory_space<vmem>>, vector<1x288x224xbf16>
    %100 = vector.shape_cast %99 : vector<1x288x224xbf16> to vector<288x224xbf16>
    %cst_76 = arith.constant dense<0.000000e+00> : vector<14x224xf32>
    %101 = tpu.matmul %98, %100, %cst_76 {dimension_numbers = #tpu.dot_dimension_numbers<[1], [0], [0], [1], [0, 0, 1, 1], [], []>} : vector<14x288xbf16>, vector<288x224xbf16>, vector<14x224xf32> -> vector<14x224xf32>
    %102 = arith.addf %94, %101 : vector<14x224xf32>
    %103 = vector.extract_strided_slice %87 {offsets = [2, 0], sizes = [7, 288], strides = [1, 1]} : vector<18x288xf32> to vector<7x288xf32>
    %104 = vector.extract_strided_slice %87 {offsets = [11, 0], sizes = [7, 288], strides = [1, 1]} : vector<18x288xf32> to vector<7x288xf32>
    %105 = tpu.concatenate %103, %104 in 0 : vector<7x288xf32>, vector<7x288xf32> -> vector<14x288xf32>
    %106 = arith.truncf %105 : vector<14x288xf32> to vector<14x288xbf16>
    %c2_77 = arith.constant 2 : index
    %c0_78 = arith.constant 0 : index
    %c0_79 = arith.constant 0 : index
    %107 = vector.load %arg5[%c2_77, %c0_78, %c0_79] : memref<3x288x224xbf16, #tpu.memory_space<vmem>>, vector<1x288x224xbf16>
    %108 = vector.shape_cast %107 : vector<1x288x224xbf16> to vector<288x224xbf16>
    %cst_80 = arith.constant dense<0.000000e+00> : vector<14x224xf32>
    %109 = tpu.matmul %106, %108, %cst_80 {dimension_numbers = #tpu.dot_dimension_numbers<[1], [0], [0], [1], [0, 0, 1, 1], [], []>} : vector<14x288xbf16>, vector<288x224xbf16>, vector<14x224xf32> -> vector<14x224xf32>
    %110 = arith.addf %102, %109 : vector<14x224xf32>
    %c0_81 = arith.constant 0 : index
    %c0_82 = arith.constant 0 : index
    %111 = vector.load %arg6[%c0_81, %c0_82] : memref<1x224xf32, #tpu.memory_space<vmem>>, vector<1x224xf32>
    %112 = vector.broadcast %111 : vector<1x224xf32> to vector<14x224xf32>
    %113 = arith.addf %110, %112 : vector<14x224xf32>
    %cst_83 = arith.constant 0.000000e+00 : f32
    %114 = vector.broadcast %cst_83 : f32 to vector<14x224xf32>
    %115 = arith.maximumf %113, %114 : vector<14x224xf32>
    %116 = vector.extract_strided_slice %115 {offsets = [0, 0], sizes = [1, 224], strides = [1, 1]} : vector<14x224xf32> to vector<1x224xf32>
    %117 = vector.extract_strided_slice %115 {offsets = [7, 0], sizes = [1, 224], strides = [1, 1]} : vector<14x224xf32> to vector<1x224xf32>
    %118 = tpu.concatenate %116, %117 in 0 : vector<1x224xf32>, vector<1x224xf32> -> vector<2x224xf32>
    %119 = arith.truncf %118 : vector<2x224xf32> to vector<2x224xbf16>
    %c0_84 = arith.constant 0 : index
    %c0_85 = arith.constant 0 : index
    %c0_86 = arith.constant 0 : index
    %120 = vector.load %arg7[%c0_84, %c0_85, %c0_86] : memref<7x224x256xbf16, #tpu.memory_space<vmem>>, vector<1x224x256xbf16>
    %121 = vector.shape_cast %120 : vector<1x224x256xbf16> to vector<224x256xbf16>
    %cst_87 = arith.constant dense<0.000000e+00> : vector<2x256xf32>
    %122 = tpu.matmul %119, %121, %cst_87 {dimension_numbers = #tpu.dot_dimension_numbers<[1], [0], [0], [1], [0, 0, 1, 1], [], []>} : vector<2x224xbf16>, vector<224x256xbf16>, vector<2x256xf32> -> vector<2x256xf32>
    %123 = vector.extract_strided_slice %115 {offsets = [1, 0], sizes = [1, 224], strides = [1, 1]} : vector<14x224xf32> to vector<1x224xf32>
    %124 = vector.extract_strided_slice %115 {offsets = [8, 0], sizes = [1, 224], strides = [1, 1]} : vector<14x224xf32> to vector<1x224xf32>
    %125 = tpu.concatenate %123, %124 in 0 : vector<1x224xf32>, vector<1x224xf32> -> vector<2x224xf32>
    %126 = arith.truncf %125 : vector<2x224xf32> to vector<2x224xbf16>
    %c1_88 = arith.constant 1 : index
    %c0_89 = arith.constant 0 : index
    %c0_90 = arith.constant 0 : index
    %127 = vector.load %arg7[%c1_88, %c0_89, %c0_90] : memref<7x224x256xbf16, #tpu.memory_space<vmem>>, vector<1x224x256xbf16>
    %128 = vector.shape_cast %127 : vector<1x224x256xbf16> to vector<224x256xbf16>
    %cst_91 = arith.constant dense<0.000000e+00> : vector<2x256xf32>
    %129 = tpu.matmul %126, %128, %cst_91 {dimension_numbers = #tpu.dot_dimension_numbers<[1], [0], [0], [1], [0, 0, 1, 1], [], []>} : vector<2x224xbf16>, vector<224x256xbf16>, vector<2x256xf32> -> vector<2x256xf32>
    %130 = arith.addf %122, %129 : vector<2x256xf32>
    %131 = vector.extract_strided_slice %115 {offsets = [2, 0], sizes = [1, 224], strides = [1, 1]} : vector<14x224xf32> to vector<1x224xf32>
    %132 = vector.extract_strided_slice %115 {offsets = [9, 0], sizes = [1, 224], strides = [1, 1]} : vector<14x224xf32> to vector<1x224xf32>
    %133 = tpu.concatenate %131, %132 in 0 : vector<1x224xf32>, vector<1x224xf32> -> vector<2x224xf32>
    %134 = arith.truncf %133 : vector<2x224xf32> to vector<2x224xbf16>
    %c2_92 = arith.constant 2 : index
    %c0_93 = arith.constant 0 : index
    %c0_94 = arith.constant 0 : index
    %135 = vector.load %arg7[%c2_92, %c0_93, %c0_94] : memref<7x224x256xbf16, #tpu.memory_space<vmem>>, vector<1x224x256xbf16>
    %136 = vector.shape_cast %135 : vector<1x224x256xbf16> to vector<224x256xbf16>
    %cst_95 = arith.constant dense<0.000000e+00> : vector<2x256xf32>
    %137 = tpu.matmul %134, %136, %cst_95 {dimension_numbers = #tpu.dot_dimension_numbers<[1], [0], [0], [1], [0, 0, 1, 1], [], []>} : vector<2x224xbf16>, vector<224x256xbf16>, vector<2x256xf32> -> vector<2x256xf32>
    %138 = arith.addf %130, %137 : vector<2x256xf32>
    %139 = vector.extract_strided_slice %115 {offsets = [3, 0], sizes = [1, 224], strides = [1, 1]} : vector<14x224xf32> to vector<1x224xf32>
    %140 = vector.extract_strided_slice %115 {offsets = [10, 0], sizes = [1, 224], strides = [1, 1]} : vector<14x224xf32> to vector<1x224xf32>
    %141 = tpu.concatenate %139, %140 in 0 : vector<1x224xf32>, vector<1x224xf32> -> vector<2x224xf32>
    %142 = arith.truncf %141 : vector<2x224xf32> to vector<2x224xbf16>
    %c3_96 = arith.constant 3 : index
    %c0_97 = arith.constant 0 : index
    %c0_98 = arith.constant 0 : index
    %143 = vector.load %arg7[%c3_96, %c0_97, %c0_98] : memref<7x224x256xbf16, #tpu.memory_space<vmem>>, vector<1x224x256xbf16>
    %144 = vector.shape_cast %143 : vector<1x224x256xbf16> to vector<224x256xbf16>
    %cst_99 = arith.constant dense<0.000000e+00> : vector<2x256xf32>
    %145 = tpu.matmul %142, %144, %cst_99 {dimension_numbers = #tpu.dot_dimension_numbers<[1], [0], [0], [1], [0, 0, 1, 1], [], []>} : vector<2x224xbf16>, vector<224x256xbf16>, vector<2x256xf32> -> vector<2x256xf32>
    %146 = arith.addf %138, %145 : vector<2x256xf32>
    %147 = vector.extract_strided_slice %115 {offsets = [4, 0], sizes = [1, 224], strides = [1, 1]} : vector<14x224xf32> to vector<1x224xf32>
    %148 = vector.extract_strided_slice %115 {offsets = [11, 0], sizes = [1, 224], strides = [1, 1]} : vector<14x224xf32> to vector<1x224xf32>
    %149 = tpu.concatenate %147, %148 in 0 : vector<1x224xf32>, vector<1x224xf32> -> vector<2x224xf32>
    %150 = arith.truncf %149 : vector<2x224xf32> to vector<2x224xbf16>
    %c4_100 = arith.constant 4 : index
    %c0_101 = arith.constant 0 : index
    %c0_102 = arith.constant 0 : index
    %151 = vector.load %arg7[%c4_100, %c0_101, %c0_102] : memref<7x224x256xbf16, #tpu.memory_space<vmem>>, vector<1x224x256xbf16>
    %152 = vector.shape_cast %151 : vector<1x224x256xbf16> to vector<224x256xbf16>
    %cst_103 = arith.constant dense<0.000000e+00> : vector<2x256xf32>
    %153 = tpu.matmul %150, %152, %cst_103 {dimension_numbers = #tpu.dot_dimension_numbers<[1], [0], [0], [1], [0, 0, 1, 1], [], []>} : vector<2x224xbf16>, vector<224x256xbf16>, vector<2x256xf32> -> vector<2x256xf32>
    %154 = arith.addf %146, %153 : vector<2x256xf32>
    %155 = vector.extract_strided_slice %115 {offsets = [5, 0], sizes = [1, 224], strides = [1, 1]} : vector<14x224xf32> to vector<1x224xf32>
    %156 = vector.extract_strided_slice %115 {offsets = [12, 0], sizes = [1, 224], strides = [1, 1]} : vector<14x224xf32> to vector<1x224xf32>
    %157 = tpu.concatenate %155, %156 in 0 : vector<1x224xf32>, vector<1x224xf32> -> vector<2x224xf32>
    %158 = arith.truncf %157 : vector<2x224xf32> to vector<2x224xbf16>
    %c5_104 = arith.constant 5 : index
    %c0_105 = arith.constant 0 : index
    %c0_106 = arith.constant 0 : index
    %159 = vector.load %arg7[%c5_104, %c0_105, %c0_106] : memref<7x224x256xbf16, #tpu.memory_space<vmem>>, vector<1x224x256xbf16>
    %160 = vector.shape_cast %159 : vector<1x224x256xbf16> to vector<224x256xbf16>
    %cst_107 = arith.constant dense<0.000000e+00> : vector<2x256xf32>
    %161 = tpu.matmul %158, %160, %cst_107 {dimension_numbers = #tpu.dot_dimension_numbers<[1], [0], [0], [1], [0, 0, 1, 1], [], []>} : vector<2x224xbf16>, vector<224x256xbf16>, vector<2x256xf32> -> vector<2x256xf32>
    %162 = arith.addf %154, %161 : vector<2x256xf32>
    %163 = vector.extract_strided_slice %115 {offsets = [6, 0], sizes = [1, 224], strides = [1, 1]} : vector<14x224xf32> to vector<1x224xf32>
    %164 = vector.extract_strided_slice %115 {offsets = [13, 0], sizes = [1, 224], strides = [1, 1]} : vector<14x224xf32> to vector<1x224xf32>
    %165 = tpu.concatenate %163, %164 in 0 : vector<1x224xf32>, vector<1x224xf32> -> vector<2x224xf32>
    %166 = arith.truncf %165 : vector<2x224xf32> to vector<2x224xbf16>
    %c6_108 = arith.constant 6 : index
    %c0_109 = arith.constant 0 : index
    %c0_110 = arith.constant 0 : index
    %167 = vector.load %arg7[%c6_108, %c0_109, %c0_110] : memref<7x224x256xbf16, #tpu.memory_space<vmem>>, vector<1x224x256xbf16>
    %168 = vector.shape_cast %167 : vector<1x224x256xbf16> to vector<224x256xbf16>
    %cst_111 = arith.constant dense<0.000000e+00> : vector<2x256xf32>
    %169 = tpu.matmul %166, %168, %cst_111 {dimension_numbers = #tpu.dot_dimension_numbers<[1], [0], [0], [1], [0, 0, 1, 1], [], []>} : vector<2x224xbf16>, vector<224x256xbf16>, vector<2x256xf32> -> vector<2x256xf32>
    %170 = arith.addf %162, %169 : vector<2x256xf32>
    %c0_112 = arith.constant 0 : index
    %c0_113 = arith.constant 0 : index
    %171 = vector.load %arg8[%c0_112, %c0_113] : memref<1x256xf32, #tpu.memory_space<vmem>>, vector<1x256xf32>
    %172 = vector.broadcast %171 : vector<1x256xf32> to vector<2x256xf32>
    %173 = arith.addf %170, %172 : vector<2x256xf32>
    %cst_114 = arith.constant 0.000000e+00 : f32
    %174 = vector.broadcast %cst_114 : f32 to vector<2x256xf32>
    %175 = arith.maximumf %173, %174 : vector<2x256xf32>
    %176 = arith.truncf %175 : vector<2x256xf32> to vector<2x256xbf16>
    %c0_115 = arith.constant 0 : index
    %c0_116 = arith.constant 0 : index
    %177 = vector.load %arg9[%c0_115, %c0_116] : memref<256x5xbf16, #tpu.memory_space<vmem>>, vector<256x5xbf16>
    %cst_117 = arith.constant dense<0.000000e+00> : vector<2x5xf32>
    %178 = tpu.matmul %176, %177, %cst_117 {dimension_numbers = #tpu.dot_dimension_numbers<[1], [0], [0], [1], [0, 0, 1, 1], [], []>} : vector<2x256xbf16>, vector<256x5xbf16>, vector<2x5xf32> -> vector<2x5xf32>
    %c0_118 = arith.constant 0 : index
    %c0_119 = arith.constant 0 : index
    %179 = vector.load %arg10[%c0_118, %c0_119] : memref<1x5xf32, #tpu.memory_space<vmem>>, vector<1x5xf32>
    %180 = vector.broadcast %179 : vector<1x5xf32> to vector<2x5xf32>
    %181 = arith.addf %178, %180 : vector<2x5xf32>
    %c0_120 = arith.constant 0 : index
    %c0_121 = arith.constant 0 : index
    %182 = vector.load %arg11[%c0_120, %c0_121] : memref<2x5xf32, #tpu.memory_space<vmem>>, vector<2x5xf32>
    tpu.vector_store %arg11[%c0_120, %c0_121], %181 {strides = array<i32>} : memref<2x5xf32, #tpu.memory_space<vmem>>, vector<2x5xf32>,
    return
  }
}

</mosaic_0001>

<bundles_post_ra>
// kernel: il_forward.1
= control target key start
LH: loop header
LB: loop body
LE: loop exit
PB: predicated region body
PF: predicated region fallthrough
CT: control target
= control target key end

     0   :  { %v10817_v1 = vmov 0.0   ;;  %vm10818_vm0 = vmmov 0   ;;  %v10819_v8 = vmov 0   ;;  %vm207_vm1 = vcmask 1041408   ;;  %s13791_s0 = inlined_call_operand.vmem [shape: bf16[8,40,84], index: 0, kind: input, shape index: {}]   ;;  %s13792_s1 = inlined_call_operand.vmem [shape: bf16[8,84,320], index: 1, kind: input, shape index: {}]   ;;  %s13793_s2 = inlined_call_operand.vmem [shape: f32[1,320], index: 2, kind: input, shape index: {}]   ;;  %s13794_s3 = inlined_call_operand.vmem [shape: bf16[4,320,288], index: 3, kind: input, shape index: {}]   ;;  %s13795_s4 = inlined_call_operand.vmem [shape: f32[1,288], index: 4, kind: input, shape index: {}]   ;;  %s13796_s5 = inlined_call_operand.vmem [shape: bf16[3,288,224], index: 5, kind: input, shape index: {}]   ;;  %s13797_s6 = inlined_call_operand.vmem [shape: f32[1,224], index: 6, kind: input, shape index: {}]   ;;  %s13798_s7 = inlined_call_operand.vmem [shape: bf16[7,224,256], index: 7, kind: input, shape index: {}]   ;;  %s13799_s8 = inlined_call_operand.vmem [shape: f32[1,256], index: 8, kind: input, shape index: {}]   ;;  %s13800_s9 = inlined_call_operand.vmem [shape: bf16[256,5], index: 9, kind: input, shape index: {}]   ;;  %s13801_s10 = inlined_call_operand.vmem [shape: f32[1,5], index: 10, kind: input, shape index: {}]   ;;  %s13802_s11 = inlined_call_operand.hbm [shape: f32[2,5], index: 11, kind: output, shape index: {}]  }
   0x1   :  { %v9793_v0 = vld [vmem:[%s13792_s1 + $0x88] ss:$12 sps:$4 sm:$0xff]   ;;  %9445 = vmatprep.subr.bf16.mxu1 %v10817_v1  ;;  %v9795_v2 = vld [vmem:[%s13792_s1 + $0x8c] ss:$12 sps:$4 sm:$0xff]   ;;  %v9796_v3 = vld [vmem:[%s13792_s1 + $0x84] ss:$12 sps:$4 sm:$0xff]   ;;  %9457 = vmatprep.mubr.msk.bf16.mxu1 %vm10818_vm0, %v10817_v1 }
   0x2   :  { %217 = vmatprep.subr.bf16.mxu0 %v9793_v0  ;;  %9446 = vmatpush3.bf16.msra.mxu1 %v9795_v2  ;;  %v9797_v4 = vld [vmem:[%s13792_s1 + $0xa0] ss:$12 sps:$4 sm:$0xff]   ;;  %v9799_v5 = vld [vmem:[%s13792_s1 + $0xa4] ss:$12 sps:$4 sm:$0xff]   ;;  %v9800_v6 = vld [vmem:[%s13792_s1 + $0x9c] ss:$12 sps:$4 sm:$0xff]  }
   0x3   :  { %218 = vmatpush1.bf16.msra.mxu0 %v9796_v3  ;;  %9447 = vmatprep.subr.bf16.mxu1 %v10817_v1  ;;  %v9801_v7 = vld [vmem:[%s13792_s1 + $0xb8] ss:$12 sps:$4 sm:$0xff]   ;;  %v9803_v9 = vld [vmem:[%s13792_s1 + $0xbc] ss:$12 sps:$4 sm:$0xff]   ;;  %v9804_v10 = vld [vmem:[%s13792_s1 + $0xb4] ss:$12 sps:$4 sm:$0xff]  }
   0x4   :  { %219 = vmatprep.subr.bf16.mxu0 %v9797_v4  ;;  %249 = vmatprep.mubr.bf16.mxu0 %v10819_v8  ;;  %v9805_v11 = vld [vmem:[%s13792_s1 + $0xd0] ss:$12 sps:$4 sm:$0xff]   ;;  %v9807_v12 = vld [vmem:[%s13792_s1 + $0xd4] ss:$12 sps:$4 sm:$0xff]   ;;  %v9808_v13 = vld [vmem:[%s13792_s1 + $0xcc] ss:$12 sps:$4 sm:$0xff]  }
   0x5   :  { %v9809_v14 = vld [vmem:[%s13792_s1 + $0xe8] ss:$12 sps:$4 sm:$0xff]   ;;  %v7760_v15 = vld [vmem:[%s13792_s1 + $0xfc] sm:$0x33]  ;;  %v9811_v16 = vld [vmem:[%s13792_s1 + $0xec] ss:$12 sps:$4 sm:$0xff]  }
   0x6   :  { %9448 = vmatpush3.bf16.msra.mxu1 %v9799_v5  ;;  %v9812_v17 = vld [vmem:[%s13792_s1 + $0xe4] ss:$12 sps:$4 sm:$0xff]   ;;  %v7781_v19 = vcombine.high %v7760_v15, %v7760_v15  ;;  %v7780_v20 = vcombine.low %v7760_v15, %v7760_v15  ;;  %v9816_v24 = vld [vmem:[%s13791_s0 + $0x14] sm:$0xff]   ;;  %vm197_vm2 = vcmask 687104   ;;  %v9817_v26 = vld [vmem:[%s13792_s1] ss:$12 sps:$4 sm:$0xff]  }
   0x7   :  { %220 = vmatpush1.bf16.msra.mxu0 %v9800_v6  ;;  %9449 = vmatprep.subr.bf16.mxu1 %v10817_v1  ;;  %v9814_v18 = vld [vmem:[%s13792_s1 + $0x104] ss:$0 sps:$4 sm:$0x33]   ;;  %v9820_v25 = vld [vmem:[%s13792_s1 + $0x8] ss:$12 sps:$4 sm:$0xff]   ;;  %v9825_v31 = vld [vmem:[%s13791_s0 + $0x1c] sm:$0xff]  }
   0x8   :  { %221 = vmatprep.subr.bf16.mxu0 %v9801_v7  ;;  %v215_v21 = vsel %vm207_vm1, %v9814_v18, 0  ;;  %v209_v22 = vsel %vm207_vm1, %v7780_v20, 0  ;;  %v9819_v23 = vld [vmem:[%s13792_s1 + $0x4] ss:$12 sps:$4 sm:$0xff]   ;;  %v9823_v27 = vld [vmem:[%s13792_s1 + $0x1c] ss:$12 sps:$4 sm:$0xff]  }
   0x9   :  { %v9824_v28 = vld [vmem:[%s13792_s1 + $0x20] ss:$12 sps:$4 sm:$0xff]   ;;  %v9821_v29 = vld [vmem:[%s13792_s1 + $0x18] ss:$12 sps:$4 sm:$0xff]   ;;  %v9826_v33 = vld [vmem:[%s13792_s1 + $0x30] ss:$12 sps:$4 sm:$0xff]  }
   0xa   :  { %9450 = vmatpush3.bf16.msra.mxu1 %v9803_v9  ;;  %v9828_v30 = vld [vmem:[%s13792_s1 + $0x34] ss:$12 sps:$4 sm:$0xff]   ;;  %v9829_v32 = vld [vmem:[%s13792_s1 + $0x38] ss:$12 sps:$4 sm:$0xff]   ;;  %v9833_v36 = vld [vmem:[%s13792_s1 + $0x50] ss:$12 sps:$4 sm:$0xff]  }
   0xb   :  { %222 = vmatpush1.bf16.msra.mxu0 %v9804_v10  ;;  %9451 = vmatprep.subr.bf16.mxu1 %v10817_v1  ;;  %v9832_v34 = vld [vmem:[%s13792_s1 + $0x4c] ss:$12 sps:$4 sm:$0xff]   ;;  %v9830_v35 = vld [vmem:[%s13792_s1 + $0x48] ss:$12 sps:$4 sm:$0xff]   ;;  %v9834_v37 = vld [vmem:[%s13791_s0 + $0x24] ss:$0 sps:$4 sm:$0xff]  }
   0xc   :  { %223 = vmatprep.subr.bf16.mxu0 %v9805_v11  ;;  %v9837_v38 = vld [vmem:[%s13792_s1 + $0x64] ss:$12 sps:$4 sm:$0xff]   ;;  %v9835_v39 = vld [vmem:[%s13792_s1 + $0x60] ss:$12 sps:$4 sm:$0xff]   ;;  %v65_v40 = vld [vmem:[%s13792_s1 + $0x78] sm:$0x33] }
   0xd   :  { %v9838_v41 = vld [vmem:[%s13792_s1 + $0x68] ss:$12 sps:$4 sm:$0xff]   ;;  %v9840_v42 = vld [vmem:[%s13792_s1 + $0x80] ss:$0 sps:$4 sm:$0x33]   ;;  %v7809_v43 = vcombine.high %v65_v40, %v65_v40  ;;  %v7808_v44 = vcombine.low %v65_v40, %v65_v40 }
   0xe   :  { %9452 = vmatpush3.bf16.msra.mxu1 %v9807_v12  ;;  %v451_v45 = vsel %vm207_vm1, %v9840_v42, 0  ;;  %v9845_v47 = vld [vmem:[%s13792_s1 + $0x10c] ss:$12 sps:$4 sm:$0xff]   ;;  %v9842_v48 = vld [vmem:[%s13791_s0] sm:$0xff]   ;;  %v9846_v49 = vld [vmem:[%s13792_s1 + $0x110] ss:$12 sps:$4 sm:$0xff]  }
   0xf   :  { %224 = vmatpush1.bf16.msra.mxu0 %v9808_v13  ;;  %9453 = vmatprep.subr.bf16.mxu1 %v10817_v1  ;;  %v445_v46 = vsel %vm207_vm1, %v7808_v44, 0  ;;  %v9843_v50 = vld [vmem:[%s13792_s1 + $0x108] ss:$12 sps:$4 sm:$0xff]   ;;  %v9849_v51 = vld [vmem:[%s13792_s1 + $0x124] ss:$12 sps:$4 sm:$0xff]  }
  0x10   :  { %225 = vmatprep.subr.bf16.mxu0 %v9809_v14  ;;  %v9850_v52 = vld [vmem:[%s13792_s1 + $0x128] ss:$12 sps:$4 sm:$0xff]   ;;  %v9847_v53 = vld [vmem:[%s13792_s1 + $0x120] ss:$12 sps:$4 sm:$0xff]   ;;  %v9852_v57 = vld [vmem:[%s13792_s1 + $0x138] ss:$12 sps:$4 sm:$0xff]  }
  0x11   :  { %v9854_v54 = vld [vmem:[%s13792_s1 + $0x13c] ss:$12 sps:$4 sm:$0xff]   ;;  %v9855_v56 = vld [vmem:[%s13792_s1 + $0x140] ss:$12 sps:$4 sm:$0xff]   ;;  %v9859_v59 = vld [vmem:[%s13792_s1 + $0x158] ss:$12 sps:$4 sm:$0xff]  }
  0x12   :  { %9454 = vmatpush3.bf16.msra.mxu1 %v9811_v16  ;;  %v9851_v55 = vld [vmem:[%s13791_s0 + $0x8] sm:$0xff]   ;;  %v9858_v58 = vld [vmem:[%s13792_s1 + $0x154] ss:$12 sps:$4 sm:$0xff]   ;;  %v9856_v60 = vld [vmem:[%s13792_s1 + $0x150] ss:$12 sps:$4 sm:$0xff]  }
  0x13   :  { %226 = vmatpush1.bf16.msra.mxu0 %v9812_v17  ;;  %9455 = vmatprep.subr.bf16.mxu1 %v10817_v1  ;;  %v9860_v61 = vld [vmem:[%s13791_s0 + $0x10] ss:$0 sps:$4 sm:$0xff]   ;;  %v9863_v62 = vld [vmem:[%s13792_s1 + $0x16c] ss:$12 sps:$4 sm:$0xff]   ;;  %v7843_v63 = vld [vmem:[%s13792_s1 + $0x180] sm:$0x33] }
  0x14   :  { %7783 = vmatprep.subr.msk.bf16.mxu0 %vm207_vm1, %v7781_v19  ;;  %v9864_v0 = vld [vmem:[%s13792_s1 + $0x170] ss:$12 sps:$4 sm:$0xff]   ;;  %v9866_v2 = vld [vmem:[%s13792_s1 + $0x188] ss:$0 sps:$4 sm:$0x33]   ;;  %v7864_v4 = vcombine.high %v7843_v63, %v7843_v63  ;;  %v7863_v5 = vcombine.low %v7843_v63, %v7843_v63 }
  0x15   :  { %v9861_v3 = vld [vmem:[%s13792_s1 + $0x168] ss:$12 sps:$4 sm:$0xff]   ;;  %v716_v6 = vsel %vm207_vm1, %v9866_v2, 0  ;;  %v9871_v9 = vld [vmem:[%s13792_s1 + $0x190] ss:$12 sps:$4 sm:$0xff]  }
  0x16   :  { %9456 = vmatpush3.bf16.msra.mxu1 %v215_v21  ;;  %v710_v7 = vsel %vm207_vm1, %v7863_v5, 0  ;;  %v9868_v10 = vld [vmem:[%s13791_s0 + $0x28] sm:$0xff]   ;;  %v9872_v11 = vld [vmem:[%s13792_s1 + $0x194] ss:$12 sps:$4 sm:$0xff]   ;;  %v9873_v15 = vld [vmem:[%s13792_s1 + $0x1a4] ss:$12 sps:$4 sm:$0xff]  }
  0x17   :  { %228 = vmatpush1.bf16.msra.mxu0 %v209_v22  ;;  %9469 = vmatprep.subr.bf16.mxu1 %v10817_v1  ;;  %v9869_v12 = vld [vmem:[%s13792_s1 + $0x18c] ss:$12 sps:$4 sm:$0xff]   ;;  %v9875_v13 = vld [vmem:[%s13792_s1 + $0x1a8] ss:$12 sps:$4 sm:$0xff]   ;;  %v9881_v18 = vld [vmem:[%s13792_s1 + $0x1c4] ss:$12 sps:$4 sm:$0xff]  }
  0x18   :  { %453 = vmatprep.subr.bf16.mxu0 %v9819_v23  ;;  %v9876_v14 = vld [vmem:[%s13792_s1 + $0x1ac] ss:$12 sps:$4 sm:$0xff]   ;;  %v9877_v17 = vld [vmem:[%s13791_s0 + $0x30] sm:$0xff]   ;;  %v9878_v19 = vld [vmem:[%s13792_s1 + $0x1bc] ss:$12 sps:$4 sm:$0xff]  }
  0x19   :  { %9458 = vmatmul.mubr.msk.bf16.vlgmr.msra.gmra.mrb[0].mxu1 %vm197_vm2, %v9816_v24  ;;  %v9880_v16 = vld [vmem:[%s13792_s1 + $0x1c0] ss:$12 sps:$4 sm:$0xff]   ;;  %v9884_v20 = vld [vmem:[%s13792_s1 + $0x1d8] ss:$12 sps:$4 sm:$0xff]   ;;  %v9885_v21 = vld [vmem:[%s13792_s1 + $0x1dc] ss:$12 sps:$4 sm:$0xff]  }
  0x1a   :  { %7784 = vmatmul.mubr.msk.bf16.vlgmr.msra.gmra.mrb[0].mxu0 %vm197_vm2, %v9816_v24  ;;  %9470 = vmatpush3.bf16.msra.mxu1 %v9820_v25  ;;  %v9882_v22 = vld [vmem:[%s13792_s1 + $0x1d4] ss:$12 sps:$4 sm:$0xff]   ;;  %v9886_v23 = vld [vmem:[%s13791_s0 + $0x38] ss:$0 sps:$4 sm:$0xff]   ;;  %v9889_v24 = vld [vmem:[%s13792_s1 + $0x1f0] ss:$12 sps:$4 sm:$0xff]  }
  0x1b   :  { %454 = vmatpush1.bf16.msra.mxu0 %v9817_v26  ;;  %9471 = vmatprep.subr.bf16.mxu1 %v10817_v1  ;;  %v7898_v25 = vld [vmem:[%s13792_s1 + $0x204] sm:$0x33]  ;;  %v9890_v26 = vld [vmem:[%s13792_s1 + $0x1f4] ss:$12 sps:$4 sm:$0xff]   ;;  %v9929_v2 = vld [vmem:[%s13791_s0 + $0x58] sm:$0xff]  }
  0x1c   :  { %455 = vmatprep.subr.bf16.mxu0 %v9823_v27  ;;  %9461 = vmatprep.mubr.msk.bf16.mxu1 %vm10818_vm0, %v10817_v1  ;;  %v9892_v27 = vld [vmem:[%s13792_s1 + $0x20c] ss:$0 sps:$4 sm:$0x33]   ;;  %v9906_v40 = vld [vmem:[%s13792_s1 + $0x244] ss:$12 sps:$4 sm:$0xff]  }
  0x1d   :  { %259 = vmatprep.mubr.bf16.mxu0 %v10819_v8  ;;  %v9907_v42 = vld [vmem:[%s13792_s1 + $0x248] ss:$12 sps:$4 sm:$0xff]   ;;  %v9936_v5 = vld [vmem:[%s13792_s1 + $0x2e0] ss:$12 sps:$4 sm:$0xff]  }
  0x1e   :  { %9472 = vmatpush3.bf16.msra.mxu1 %v9824_v28  ;;  %v9887_v28 = vld [vmem:[%s13792_s1 + $0x1ec] ss:$12 sps:$4 sm:$0xff]   ;;  %v9910_v44 = vld [vmem:[%s13792_s1 + $0x25c] ss:$12 sps:$4 sm:$0xff]   ;;  %v9928_v63 = vld [vmem:[%s13792_s1 + $0x2b4] ss:$12 sps:$4 sm:$0xff]  }
  0x1f   :  { %456 = vmatpush1.bf16.msra.mxu0 %v9821_v29  ;;  %9473 = vmatprep.subr.bf16.mxu1 %v10817_v1  ;;  %v7919_v29 = vcombine.high %v7898_v25, %v7898_v25 }
  0x20   :  { %457 = vmatprep.subr.bf16.mxu0 %v9828_v30  ;;  %v7918_v30 = vcombine.low %v7898_v25, %v7898_v25  ;;  %v9951_v25 = vld [vmem:[%s13792_s1 + $0x330] ss:$12 sps:$4 sm:$0xff]  }
  0x21   :  { %9462 = vmatmul.mubr.msk.bf16.gmra.mrb[4].mxu1 %vm197_vm2, %v9825_v31 }
  0x22   :  { %7785 = vmatmul.mubr.msk.bf16.gmra.mrb[4].mxu0 %vm197_vm2, %v9825_v31  ;;  %9474 = vmatpush3.bf16.msra.mxu1 %v9829_v32  ;;  %v996_v31 = vsel %vm207_vm1, %v9892_v27, 0  ;;  %v990_v32 = vsel %vm207_vm1, %v7918_v30, 0  ;;  %v9955_v27 = vld [vmem:[%s13791_s0 + $0x6c] sm:$0xff]  }
  0x23   :  { %458 = vmatpush1.bf16.msra.mxu0 %v9826_v33  ;;  %9475 = vmatprep.subr.bf16.mxu1 %v10817_v1  ;;  %v9897_v33 = vld [vmem:[%s13792_s1 + $0x214] ss:$12 sps:$4 sm:$0xff]   ;;  %v9962_v30 = vld [vmem:[%s13792_s1 + $0x364] ss:$12 sps:$4 sm:$0xff]  }
  0x24   :  { %459 = vmatprep.subr.bf16.mxu0 %v9832_v34  ;;  %9465 = vmatprep.mubr.msk.bf16.mxu1 %vm10818_vm0, %v10817_v1  ;;  %v9894_v34 = vld [vmem:[%s13791_s0 + $0x3c] sm:$0xff]  }
  0x25   :  { %269 = vmatprep.mubr.bf16.mxu0 %v10819_v8 }
  0x26   :  { %9476 = vmatpush3.bf16.msra.mxu1 %v9833_v36  ;;  %v9895_v36 = vld [vmem:[%s13792_s1 + $0x210] ss:$12 sps:$4 sm:$0xff]  }
  0x27   :  { %460 = vmatpush1.bf16.msra.mxu0 %v9830_v35  ;;  %9477 = vmatprep.subr.bf16.mxu1 %v10817_v1  ;;  %v9898_v35 = vld [vmem:[%s13792_s1 + $0x218] ss:$12 sps:$4 sm:$0xff]  }
  0x28   :  { %461 = vmatprep.subr.bf16.mxu0 %v9837_v38  ;;  %v9902_v38 = vld [vmem:[%s13792_s1 + $0x230] ss:$12 sps:$4 sm:$0xff]  }
  0x29   :  { %9466 = vmatmul.mubr.msk.bf16.gmra.mrb[8].mxu1 %vm197_vm2, %v9834_v37 }
  0x2a   :  { %7786 = vmatmul.mubr.msk.bf16.gmra.mrb[8].mxu0 %vm197_vm2, %v9834_v37  ;;  %9478 = vmatpush3.bf16.msra.mxu1 %v9838_v41  ;;  %v9901_v37 = vld [vmem:[%s13792_s1 + $0x22c] ss:$12 sps:$4 sm:$0xff]   ;;  %v9903_v41 = vld [vmem:[%s13791_s0 + $0x44] sm:$0xff]  }
  0x2b   :  { %462 = vmatpush1.bf16.msra.mxu0 %v9835_v39  ;;  %9479 = vmatprep.subr.bf16.mxu1 %v10817_v1  ;;  %v9899_v39 = vld [vmem:[%s13792_s1 + $0x228] ss:$12 sps:$4 sm:$0xff]  }
  0x2c   :  { %7811 = vmatprep.subr.msk.bf16.mxu0 %vm207_vm1, %v7809_v43  ;;  %9481 = vmatprep.mubr.msk.bf16.mxu1 %vm10818_vm0, %v10817_v1  ;;  %v9904_v43 = vld [vmem:[%s13792_s1 + $0x240] ss:$12 sps:$4 sm:$0xff]  }
  0x2d   :  { %485 = vmatprep.mubr.bf16.mxu0 %v10819_v8 }
  0x2e   :  { %9480 = vmatpush3.bf16.msra.mxu1 %v451_v45  ;;  %v9911_v45 = vld [vmem:[%s13792_s1 + $0x260] ss:$12 sps:$4 sm:$0xff]  }
  0x2f   :  { %464 = vmatpush1.bf16.msra.mxu0 %v445_v46  ;;  %9493 = vmatprep.subr.bf16.mxu1 %v10817_v1  ;;  %v9908_v46 = vld [vmem:[%s13792_s1 + $0x258] ss:$12 sps:$4 sm:$0xff]  }
  0x30   :  { %718 = vmatprep.subr.bf16.mxu0 %v9845_v47  ;;  %v9912_v47 = vld [vmem:[%s13791_s0 + $0x4c] ss:$0 sps:$4 sm:$0xff]  }
  0x31   :  { %9482 = vmatmul.mubr.msk.bf16.vlgmr.msra.gmra.mrb[12].mxu1 %vm197_vm2, %v9842_v48 }
  0x32   :  { %7812 = vmatmul.mubr.msk.bf16.vlgmr.msra.gmra.mrb[0].mxu0 %vm197_vm2, %v9842_v48  ;;  %9494 = vmatpush3.bf16.msra.mxu1 %v9846_v49  ;;  %v9915_v48 = vld [vmem:[%s13792_s1 + $0x274] ss:$12 sps:$4 sm:$0xff]   ;;  %v9913_v49 = vld [vmem:[%s13792_s1 + $0x270] ss:$12 sps:$4 sm:$0xff]  }
  0x33   :  { %719 = vmatpush1.bf16.msra.mxu0 %v9843_v50  ;;  %9495 = vmatprep.subr.bf16.mxu1 %v10817_v1  ;;  %v7953_v50 = vld [vmem:[%s13792_s1 + $0x288] sm:$0x33] }
  0x34   :  { %720 = vmatprep.subr.bf16.mxu0 %v9849_v51  ;;  %9485 = vmatprep.mubr.msk.bf16.mxu1 %vm10818_vm0, %v10817_v1  ;;  %v9916_v51 = vld [vmem:[%s13792_s1 + $0x278] ss:$12 sps:$4 sm:$0xff]  }
  0x35   :  { %495 = vmatprep.mubr.bf16.mxu0 %v10819_v8 }
  0x36   :  { %9496 = vmatpush3.bf16.msra.mxu1 %v9850_v52  ;;  %v9918_v52 = vld [vmem:[%s13792_s1 + $0x290] ss:$0 sps:$4 sm:$0x33]  }
  0x37   :  { %721 = vmatpush1.bf16.msra.mxu0 %v9847_v53  ;;  %9497 = vmatprep.subr.bf16.mxu1 %v10817_v1  ;;  %v7974_v53 = vcombine.high %v7953_v50, %v7953_v50 }
  0x38   :  { %722 = vmatprep.subr.bf16.mxu0 %v9854_v54  ;;  %v7973_v54 = vcombine.low %v7953_v50, %v7953_v50  ;;  %v9984_v50 = vld [vmem:[%s13792_s1 + $0x3d0] ss:$12 sps:$4 sm:$0xff]  }
  0x39   :  { %9486 = vmatmul.mubr.msk.bf16.gmra.mrb[16].mxu1 %vm197_vm2, %v9851_v55 }
  0x3a   :  { %7813 = vmatmul.mubr.msk.bf16.gmra.mrb[4].mxu0 %vm197_vm2, %v9851_v55  ;;  %9498 = vmatpush3.bf16.msra.mxu1 %v9855_v56  ;;  %v1276_v55 = vsel %vm207_vm1, %v9918_v52, 0  ;;  %v1270_v56 = vsel %vm207_vm1, %v7973_v54, 0  ;;  %v9985_v52 = vld [vmem:[%s13792_s1 + $0x3d4] ss:$12 sps:$4 sm:$0xff]  }
  0x3b   :  { %723 = vmatpush1.bf16.msra.mxu0 %v9852_v57  ;;  %9499 = vmatprep.subr.bf16.mxu1 %v10817_v1  ;;  %v9923_v57 = vld [vmem:[%s13792_s1 + $0x298] ss:$12 sps:$4 sm:$0xff]   ;;  %v9988_v54 = vld [vmem:[%s13792_s1 + $0x3e8] ss:$12 sps:$4 sm:$0xff]  }
  0x3c   :  { %724 = vmatprep.subr.bf16.mxu0 %v9858_v58  ;;  %9489 = vmatprep.mubr.msk.bf16.mxu1 %vm10818_vm0, %v10817_v1  ;;  %v9920_v58 = vld [vmem:[%s13791_s0 + $0x50] sm:$0xff]  }
  0x3d   :  { %505 = vmatprep.mubr.bf16.mxu0 %v10819_v8 }
  0x3e   :  { %9500 = vmatpush3.bf16.msra.mxu1 %v9859_v59  ;;  %v9924_v59 = vld [vmem:[%s13792_s1 + $0x29c] ss:$12 sps:$4 sm:$0xff]  }
  0x3f   :  { %725 = vmatpush1.bf16.msra.mxu0 %v9856_v60  ;;  %9501 = vmatprep.subr.bf16.mxu1 %v10817_v1  ;;  %v9921_v60 = vld [vmem:[%s13792_s1 + $0x294] ss:$12 sps:$4 sm:$0xff]  }
  0x40   :  { %726 = vmatprep.subr.bf16.mxu0 %v9863_v62  ;;  %v9925_v62 = vld [vmem:[%s13792_s1 + $0x2ac] ss:$12 sps:$4 sm:$0xff]  }
  0x41   :  { %9490 = vmatmul.mubr.msk.bf16.gmra.mrb[20].mxu1 %vm197_vm2, %v9860_v61 }
  0x42   :  { %7814 = vmatmul.mubr.msk.bf16.gmra.mrb[12].mxu0 %vm197_vm2, %v9860_v61  ;;  %9502 = vmatpush3.bf16.msra.mxu1 %v9864_v0  ;;  %v9927_v61 = vld [vmem:[%s13792_s1 + $0x2b0] ss:$12 sps:$4 sm:$0xff]   ;;  %v9932_v0 = vld [vmem:[%s13792_s1 + $0x2c8] ss:$12 sps:$4 sm:$0xff]  }
  0x43   :  { %727 = vmatpush1.bf16.msra.mxu0 %v9861_v3  ;;  %9503 = vmatprep.subr.bf16.mxu1 %v10817_v1  ;;  %v9933_v3 = vld [vmem:[%s13792_s1 + $0x2cc] ss:$12 sps:$4 sm:$0xff]  }
  0x44   :  { %7866 = vmatprep.subr.msk.bf16.mxu0 %vm207_vm1, %v7864_v4  ;;  %9505 = vmatprep.mubr.msk.bf16.mxu1 %vm10818_vm0, %v10817_v1  ;;  %v9930_v4 = vld [vmem:[%s13792_s1 + $0x2c4] ss:$12 sps:$4 sm:$0xff]  }
  0x45   :  { %750 = vmatprep.mubr.bf16.mxu0 %v10819_v8 }
  0x46   :  { %9504 = vmatpush3.bf16.msra.mxu1 %v716_v6  ;;  %v9937_v6 = vld [vmem:[%s13792_s1 + $0x2e4] ss:$12 sps:$4 sm:$0xff]  }
  0x47   :  { %729 = vmatpush1.bf16.msra.mxu0 %v710_v7  ;;  %9517 = vmatprep.subr.bf16.mxu1 %v10817_v1  ;;  %v9934_v7 = vld [vmem:[%s13792_s1 + $0x2dc] ss:$12 sps:$4 sm:$0xff]  }
  0x48   :  { %998 = vmatprep.subr.bf16.mxu0 %v9871_v9  ;;  %v9941_v9 = vld [vmem:[%s13792_s1 + $0x2f8] ss:$12 sps:$4 sm:$0xff]  }
  0x49   :  { %9506 = vmatmul.mubr.msk.bf16.vlgmr.msra.gmra.mrb[24].mxu1 %vm197_vm2, %v9868_v10 }
  0x4a   :  { %7867 = vmatmul.mubr.msk.bf16.vlgmr.msra.gmra.mrb[0].mxu0 %vm197_vm2, %v9868_v10  ;;  %9518 = vmatpush3.bf16.msra.mxu1 %v9872_v11  ;;  %v9938_v10 = vld [vmem:[%s13791_s0 + $0x60] ss:$0 sps:$4 sm:$0xff]   ;;  %v8008_v11 = vld [vmem:[%s13792_s1 + $0x30c] sm:$0x33] }
  0x4b   :  { %999 = vmatpush1.bf16.msra.mxu0 %v9869_v12  ;;  %9519 = vmatprep.subr.bf16.mxu1 %v10817_v1  ;;  %v9942_v12 = vld [vmem:[%s13792_s1 + $0x2fc] ss:$12 sps:$4 sm:$0xff]  }
  0x4c   :  { %1000 = vmatprep.subr.bf16.mxu0 %v9875_v13  ;;  %9509 = vmatprep.mubr.msk.bf16.mxu1 %vm10818_vm0, %v10817_v1  ;;  %v9944_v13 = vld [vmem:[%s13792_s1 + $0x314] ss:$0 sps:$4 sm:$0x33]  }
  0x4d   :  { %760 = vmatprep.mubr.bf16.mxu0 %v10819_v8 }
  0x4e   :  { %9520 = vmatpush3.bf16.msra.mxu1 %v9876_v14  ;;  %v9939_v14 = vld [vmem:[%s13792_s1 + $0x2f4] ss:$12 sps:$4 sm:$0xff]  }
  0x4f   :  { %1001 = vmatpush1.bf16.msra.mxu0 %v9873_v15  ;;  %9521 = vmatprep.subr.bf16.mxu1 %v10817_v1  ;;  %v8029_v15 = vcombine.high %v8008_v11, %v8008_v11 }
  0x50   :  { %1002 = vmatprep.subr.bf16.mxu0 %v9880_v16  ;;  %v8028_v16 = vcombine.low %v8008_v11, %v8008_v11 }
  0x51   :  { %9510 = vmatmul.mubr.msk.bf16.gmra.mrb[28].mxu1 %vm197_vm2, %v9877_v17 }
  0x52   :  { %7868 = vmatmul.mubr.msk.bf16.gmra.mrb[4].mxu0 %vm197_vm2, %v9877_v17  ;;  %9522 = vmatpush3.bf16.msra.mxu1 %v9881_v18  ;;  %v1556_v17 = vsel %vm207_vm1, %v9944_v13, 0  ;;  %v9949_v18 = vld [vmem:[%s13792_s1 + $0x31c] ss:$12 sps:$4 sm:$0xff]  }
  0x53   :  { %1003 = vmatpush1.bf16.msra.mxu0 %v9878_v19  ;;  %9523 = vmatprep.subr.bf16.mxu1 %v10817_v1  ;;  %v9946_v19 = vld [vmem:[%s13791_s0 + $0x64] sm:$0xff]  }
  0x54   :  { %1004 = vmatprep.subr.bf16.mxu0 %v9884_v20  ;;  %9513 = vmatprep.mubr.msk.bf16.mxu1 %vm10818_vm0, %v10817_v1  ;;  %v1550_v20 = vsel %vm207_vm1, %v8028_v16, 0 }
  0x55   :  { %770 = vmatprep.mubr.bf16.mxu0 %v10819_v8 }
  0x56   :  { %9524 = vmatpush3.bf16.msra.mxu1 %v9885_v21  ;;  %v9950_v21 = vld [vmem:[%s13792_s1 + $0x320] ss:$12 sps:$4 sm:$0xff]  }
  0x57   :  { %1005 = vmatpush1.bf16.msra.mxu0 %v9882_v22  ;;  %9525 = vmatprep.subr.bf16.mxu1 %v10817_v1  ;;  %v9947_v22 = vld [vmem:[%s13792_s1 + $0x318] ss:$12 sps:$4 sm:$0xff]  }
  0x58   :  { %1006 = vmatprep.subr.bf16.mxu0 %v9889_v24  ;;  %v9954_v24 = vld [vmem:[%s13792_s1 + $0x338] ss:$12 sps:$4 sm:$0xff]  }
  0x59   :  { %9514 = vmatmul.mubr.msk.bf16.gmra.mrb[32].mxu1 %vm197_vm2, %v9886_v23 }
  0x5a   :  { %7869 = vmatmul.mubr.msk.bf16.gmra.mrb[16].mxu0 %vm197_vm2, %v9886_v23  ;;  %9526 = vmatpush3.bf16.msra.mxu1 %v9890_v26  ;;  %v9953_v23 = vld [vmem:[%s13792_s1 + $0x334] ss:$12 sps:$4 sm:$0xff]   ;;  %v9958_v26 = vld [vmem:[%s13792_s1 + $0x34c] ss:$12 sps:$4 sm:$0xff]  }
  0x5b   :  { %1007 = vmatpush1.bf16.msra.mxu0 %v9887_v28  ;;  %9527 = vmatprep.subr.bf16.mxu1 %v10817_v1  ;;  %v9959_v28 = vld [vmem:[%s13792_s1 + $0x350] ss:$12 sps:$4 sm:$0xff]  }
  0x5c   :  { %7921 = vmatprep.subr.msk.bf16.mxu0 %vm207_vm1, %v7919_v29  ;;  %9529 = vmatprep.mubr.msk.bf16.mxu1 %vm10818_vm0, %v10817_v1  ;;  %v9956_v29 = vld [vmem:[%s13792_s1 + $0x348] ss:$12 sps:$4 sm:$0xff]  }
  0x5d   :  { %1030 = vmatprep.mubr.bf16.mxu0 %v10819_v8 }
  0x5e   :  { %9528 = vmatpush3.bf16.msra.mxu1 %v996_v31  ;;  %v9963_v31 = vld [vmem:[%s13792_s1 + $0x368] ss:$12 sps:$4 sm:$0xff]  }
  0x5f   :  { %1009 = vmatpush1.bf16.msra.mxu0 %v990_v32  ;;  %9541 = vmatprep.subr.bf16.mxu1 %v10817_v1  ;;  %v9960_v32 = vld [vmem:[%s13792_s1 + $0x360] ss:$12 sps:$4 sm:$0xff]  }
  0x60   :  { %1278 = vmatprep.subr.bf16.mxu0 %v9897_v33  ;;  %v9967_v33 = vld [vmem:[%s13792_s1 + $0x37c] ss:$12 sps:$4 sm:$0xff]  }
  0x61   :  { %9530 = vmatmul.mubr.msk.bf16.vlgmr.msra.gmra.mrb[36].mxu1 %vm197_vm2, %v9894_v34 }
  0x62   :  { %7922 = vmatmul.mubr.msk.bf16.vlgmr.msra.gmra.mrb[0].mxu0 %vm197_vm2, %v9894_v34  ;;  %9542 = vmatpush3.bf16.msra.mxu1 %v9898_v35  ;;  %v9964_v34 = vld [vmem:[%s13791_s0 + $0x74] ss:$0 sps:$4 sm:$0xff]  }
  0x63   :  { %1279 = vmatpush1.bf16.msra.mxu0 %v9895_v36  ;;  %9543 = vmatprep.subr.bf16.mxu1 %v10817_v1  ;;  %v8063_v35 = vld [vmem:[%s13792_s1 + $0x390] sm:$0x33]  ;;  %v9968_v36 = vld [vmem:[%s13792_s1 + $0x380] ss:$12 sps:$4 sm:$0xff]  }
  0x64   :  { %1280 = vmatprep.subr.bf16.mxu0 %v9901_v37  ;;  %9533 = vmatprep.mubr.msk.bf16.mxu1 %vm10818_vm0, %v10817_v1  ;;  %v9965_v37 = vld [vmem:[%s13792_s1 + $0x378] ss:$12 sps:$4 sm:$0xff]  }
  0x65   :  { %1040 = vmatprep.mubr.bf16.mxu0 %v10819_v8 }
  0x66   :  { %9544 = vmatpush3.bf16.msra.mxu1 %v9902_v38  ;;  %v9970_v38 = vld [vmem:[%s13792_s1 + $0x398] ss:$0 sps:$4 sm:$0x33]  }
  0x67   :  { %1281 = vmatpush1.bf16.msra.mxu0 %v9899_v39  ;;  %9545 = vmatprep.subr.bf16.mxu1 %v10817_v1  ;;  %v8084_v39 = vcombine.high %v8063_v35, %v8063_v35 }
  0x68   :  { %1282 = vmatprep.subr.bf16.mxu0 %v9906_v40  ;;  %v8083_v40 = vcombine.low %v8063_v35, %v8063_v35 }
  0x69   :  { %9534 = vmatmul.mubr.msk.bf16.gmra.mrb[40].mxu1 %vm197_vm2, %v9903_v41 }
  0x6a   :  { %7923 = vmatmul.mubr.msk.bf16.gmra.mrb[4].mxu0 %vm197_vm2, %v9903_v41  ;;  %9546 = vmatpush3.bf16.msra.mxu1 %v9907_v42  ;;  %v9975_v41 = vld [vmem:[%s13792_s1 + $0x3a0] ss:$12 sps:$4 sm:$0xff]   ;;  %v1836_v42 = vsel %vm207_vm1, %v9970_v38, 0  ;;  %v10016_v38 = vld [vmem:[%s13794_s3 + $0x258] ss:$12 sps:$4 sm:$0xff]  }
  0x6b   :  { %1283 = vmatpush1.bf16.msra.mxu0 %v9904_v43  ;;  %9547 = vmatprep.subr.bf16.mxu1 %v10817_v1  ;;  %v9972_v43 = vld [vmem:[%s13791_s0 + $0x78] sm:$0xff]  }
  0x6c   :  { %1284 = vmatprep.subr.bf16.mxu0 %v9910_v44  ;;  %9537 = vmatprep.mubr.msk.bf16.mxu1 %vm10818_vm0, %v10817_v1  ;;  %v1830_v44 = vsel %vm207_vm1, %v8083_v40, 0 }
  0x6d   :  { %1050 = vmatprep.mubr.bf16.mxu0 %v10819_v8 }
  0x6e   :  { %9548 = vmatpush3.bf16.msra.mxu1 %v9911_v45  ;;  %v9976_v45 = vld [vmem:[%s13792_s1 + $0x3a4] ss:$12 sps:$4 sm:$0xff]  }
  0x6f   :  { %1285 = vmatpush1.bf16.msra.mxu0 %v9908_v46  ;;  %9549 = vmatprep.subr.bf16.mxu1 %v10817_v1  ;;  %v9973_v46 = vld [vmem:[%s13792_s1 + $0x39c] ss:$12 sps:$4 sm:$0xff]  }
  0x70   :  { %1286 = vmatprep.subr.bf16.mxu0 %v9915_v48  ;;  %v9980_v48 = vld [vmem:[%s13792_s1 + $0x3bc] ss:$12 sps:$4 sm:$0xff]  }
  0x71   :  { %9538 = vmatmul.mubr.msk.bf16.gmra.mrb[44].mxu1 %vm197_vm2, %v9912_v47 }
  0x72   :  { %7924 = vmatmul.mubr.msk.bf16.gmra.mrb[20].mxu0 %vm197_vm2, %v9912_v47  ;;  %9550 = vmatpush3.bf16.msra.mxu1 %v9916_v51  ;;  %v9979_v47 = vld [vmem:[%s13792_s1 + $0x3b8] ss:$12 sps:$4 sm:$0xff]  }
  0x73   :  { %1287 = vmatpush1.bf16.msra.mxu0 %v9913_v49  ;;  %9551 = vmatprep.subr.bf16.mxu1 %v10817_v1  ;;  %v9977_v49 = vld [vmem:[%s13792_s1 + $0x3b4] ss:$12 sps:$4 sm:$0xff]  }
  0x74   :  { %7976 = vmatprep.subr.msk.bf16.mxu0 %vm207_vm1, %v7974_v53  ;;  %9553 = vmatprep.mubr.msk.bf16.mxu1 %vm10818_vm0, %v10817_v1  ;;  %v9981_v51 = vld [vmem:[%s13791_s0 + $0x80] sm:$0xff]   ;;  %v9982_v53 = vld [vmem:[%s13792_s1 + $0x3cc] ss:$12 sps:$4 sm:$0xff]  }
  0x75   :  { %1310 = vmatprep.mubr.bf16.mxu0 %v10819_v8 }
  0x76   :  { %9552 = vmatpush3.bf16.msra.mxu1 %v1276_v55  ;;  %v9989_v55 = vld [vmem:[%s13792_s1 + $0x3ec] ss:$12 sps:$4 sm:$0xff]  }
  0x77   :  { %1289 = vmatpush1.bf16.msra.mxu0 %v1270_v56  ;;  %9565 = vmatprep.subr.bf16.mxu1 %v10817_v1  ;;  %v9986_v56 = vld [vmem:[%s13792_s1 + $0x3e4] ss:$12 sps:$4 sm:$0xff]  }
  0x78   :  { %1558 = vmatprep.subr.bf16.mxu0 %v9923_v57  ;;  %v9993_v57 = vld [vmem:[%s13792_s1 + $0x400] ss:$12 sps:$4 sm:$0xff]  }
  0x79   :  { %9554 = vmatmul.mubr.msk.bf16.vlgmr.msra.gmra.mrb[48].mxu1 %vm197_vm2, %v9920_v58 }
  0x7a   :  { %7977 = vmatmul.mubr.msk.bf16.vlgmr.msra.gmra.mrb[0].mxu0 %vm197_vm2, %v9920_v58  ;;  %9566 = vmatpush3.bf16.msra.mxu1 %v9924_v59  ;;  %v9990_v58 = vld [vmem:[%s13791_s0 + $0x88] ss:$0 sps:$4 sm:$0xff]   ;;  %v8118_v59 = vld [vmem:[%s13792_s1 + $0x414] sm:$0x33] }
  0x7b   :  { %1559 = vmatpush1.bf16.msra.mxu0 %v9921_v60  ;;  %9567 = vmatprep.subr.bf16.mxu1 %v10817_v1  ;;  %v9994_v60 = vld [vmem:[%s13792_s1 + $0x404] ss:$12 sps:$4 sm:$0xff]  }
  0x7c   :  { %1560 = vmatprep.subr.bf16.mxu0 %v9927_v61  ;;  %9557 = vmatprep.mubr.msk.bf16.mxu1 %vm10818_vm0, %v10817_v1  ;;  %v9991_v61 = vld [vmem:[%s13792_s1 + $0x3fc] ss:$12 sps:$4 sm:$0xff]  }
  0x7d   :  { %1320 = vmatprep.mubr.bf16.mxu0 %v10819_v8 }
  0x7e   :  { %9568 = vmatpush3.bf16.msra.mxu1 %v9928_v63  ;;  %v8139_v63 = vcombine.high %v8118_v59, %v8118_v59 }
  0x7f   :  { %1561 = vmatpush1.bf16.msra.mxu0 %v9925_v62  ;;  %9569 = vmatprep.subr.bf16.mxu1 %v10817_v1  ;;  %v9996_v62 = vld [vmem:[%s13792_s1 + $0x41c] ss:$0 sps:$4 sm:$0x33]  }
  0x80   :  { %1562 = vmatprep.subr.bf16.mxu0 %v9932_v0  ;;  %v8138_v0 = vcombine.low %v8118_v59, %v8118_v59  ;;  %v10032_v59 = vld [vmem:[%s13794_s3 + $0x2bc] ss:$12 sps:$4 sm:$0xff]  }
  0x81   :  { %9558 = vmatmul.mubr.msk.bf16.gmra.mrb[52].mxu1 %vm197_vm2, %v9929_v2 }
  0x82   :  { %7978 = vmatmul.mubr.msk.bf16.gmra.mrb[4].mxu0 %vm197_vm2, %v9929_v2  ;;  %9570 = vmatpush3.bf16.msra.mxu1 %v9933_v3  ;;  %v2116_v2 = vsel %vm207_vm1, %v9996_v62, 0  ;;  %v9998_v3 = vld [vmem:[%s13791_s0 + $0x8c] sm:$0xff]  }
  0x83   :  { %1563 = vmatpush1.bf16.msra.mxu0 %v9930_v4  ;;  %9571 = vmatprep.subr.bf16.mxu1 %v10817_v1  ;;  %v2110_v4 = vsel %vm207_vm1, %v8138_v0, 0  ;;  %v10030_v0 = vld [vmem:[%s13794_s3 + $0x2b8] ss:$12 sps:$4 sm:$0xff]  }
  0x84   :  { %1564 = vmatprep.subr.bf16.mxu0 %v9936_v5  ;;  %9561 = vmatprep.mubr.msk.bf16.mxu1 %vm10818_vm0, %v10817_v1  ;;  %v9999_v5 = vld [vmem:[%s13791_s0 + $0x94] sm:$0xff]  }
  0x85   :  { %1330 = vmatprep.mubr.bf16.mxu0 %v10819_v8 }
  0x86   :  { %9572 = vmatpush3.bf16.msra.mxu1 %v9937_v6  ;;  %v10000_v6 = vld [vmem:[%s13791_s0 + $0x9c] ss:$0 sps:$4 sm:$0xff]  }
  0x87   :  { %1565 = vmatpush1.bf16.msra.mxu0 %v9934_v7  ;;  %9573 = vmatprep.subr.bf16.mxu1 %v10817_v1 }
  0x88   :  { %1566 = vmatprep.subr.bf16.mxu0 %v9941_v9 }
  0x89   :  { %9562 = vmatmul.mubr.msk.bf16.gmra.mrb[56].mxu1 %vm197_vm2, %v9938_v10 }
  0x8a   :  { %7979 = vmatmul.mubr.msk.bf16.gmra.mrb[24].mxu0 %vm197_vm2, %v9938_v10  ;;  %9574 = vmatpush3.bf16.msra.mxu1 %v9942_v12  ;;  %v10001_v12 = vld [vmem:[%s13794_s3 + $0x1e0] ss:$12 sps:$4 sm:$0xff]  }
  0x8b   :  { %1567 = vmatpush1.bf16.msra.mxu0 %v9939_v14  ;;  %9575 = vmatprep.subr.bf16.mxu1 %v10817_v1 }
  0x8c   :  { %8031 = vmatprep.subr.msk.bf16.mxu0 %vm207_vm1, %v8029_v15  ;;  %9577 = vmatprep.mubr.msk.bf16.mxu1 %vm10818_vm0, %v10817_v1  ;;  %v10006_v15 = vld [vmem:[%s13794_s3 + $0x1fc] ss:$12 sps:$4 sm:$0xff]  }
  0x8d   :  { %1590 = vmatprep.mubr.bf16.mxu0 %v10819_v8 }
  0x8e   :  { %9576 = vmatpush3.bf16.msra.mxu1 %v1556_v17  ;;  %v10004_v17 = vld [vmem:[%s13794_s3 + $0x1f8] ss:$12 sps:$4 sm:$0xff]  }
  0x8f   :  { %1569 = vmatpush1.bf16.msra.mxu0 %v1550_v20  ;;  %9589 = vmatprep.subr.bf16.mxu1 %v10817_v1  ;;  %v10009_v20 = vld [vmem:[%s13794_s3 + $0x214] ss:$12 sps:$4 sm:$0xff]  }
  0x90   :  { %1838 = vmatprep.subr.bf16.mxu0 %v9949_v18 }
  0x91   :  { %9578 = vmatmul.mubr.msk.bf16.vlgmr.msra.gmra.mrb[60].mxu1 %vm197_vm2, %v9946_v19 }
  0x92   :  { %8032 = vmatmul.mubr.msk.bf16.vlgmr.msra.gmra.mrb[0].mxu0 %vm197_vm2, %v9946_v19  ;;  %9590 = vmatpush3.bf16.msra.mxu1 %v9950_v21  ;;  %v10007_v19 = vld [vmem:[%s13794_s3 + $0x210] ss:$12 sps:$4 sm:$0xff]  }
  0x93   :  { %1839 = vmatpush1.bf16.msra.mxu0 %v9947_v22  ;;  %9591 = vmatprep.subr.bf16.mxu1 %v10817_v1 }
  0x94   :  { %1840 = vmatprep.subr.bf16.mxu0 %v9953_v23  ;;  %9581 = vmatprep.mubr.msk.bf16.mxu1 %vm10818_vm0, %v10817_v1 }
  0x95   :  { %1600 = vmatprep.mubr.bf16.mxu0 %v10819_v8 }
  0x96   :  { %9592 = vmatpush3.bf16.msra.mxu1 %v9954_v24  ;;  %v10012_v24 = vld [vmem:[%s13794_s3 + $0x22c] ss:$12 sps:$4 sm:$0xff]  }
  0x97   :  { %1841 = vmatpush1.bf16.msra.mxu0 %v9951_v25  ;;  %9593 = vmatprep.subr.bf16.mxu1 %v10817_v1 }
  0x98   :  { %1842 = vmatprep.subr.bf16.mxu0 %v9958_v26 }
  0x99   :  { %9582 = vmatmul.mubr.msk.bf16.gmra.mrb[64].mxu1 %vm197_vm2, %v9955_v27 }
  0x9a   :  { %8033 = vmatmul.mubr.msk.bf16.gmra.mrb[4].mxu0 %vm197_vm2, %v9955_v27  ;;  %9594 = vmatpush3.bf16.msra.mxu1 %v9959_v28  ;;  %v10010_v27 = vld [vmem:[%s13794_s3 + $0x228] ss:$12 sps:$4 sm:$0xff]  }
  0x9b   :  { %1843 = vmatpush1.bf16.msra.mxu0 %v9956_v29  ;;  %9595 = vmatprep.subr.bf16.mxu1 %v10817_v1 }
  0x9c   :  { %1844 = vmatprep.subr.bf16.mxu0 %v9962_v30  ;;  %9585 = vmatprep.mubr.msk.bf16.mxu1 %vm10818_vm0, %v10817_v1  ;;  %v10013_v30 = vld [vmem:[%s13794_s3 + $0x240] ss:$12 sps:$4 sm:$0xff]  }
  0x9d   :  { %1610 = vmatprep.mubr.bf16.mxu0 %v10819_v8 }
  0x9e   :  { %9596 = vmatpush3.bf16.msra.mxu1 %v9963_v31  ;;  %v10015_v31 = vld [vmem:[%s13794_s3 + $0x244] ss:$12 sps:$4 sm:$0xff]  }
  0x9f   :  { %1845 = vmatpush1.bf16.msra.mxu0 %v9960_v32  ;;  %9597 = vmatprep.subr.bf16.mxu1 %v10817_v1 }
  0xa0   :  { %1846 = vmatprep.subr.bf16.mxu0 %v9967_v33 }
  0xa1   :  { %9586 = vmatmul.mubr.msk.bf16.gmra.mrb[68].mxu1 %vm197_vm2, %v9964_v34 }
  0xa2   :  { %8034 = vmatmul.mubr.msk.bf16.gmra.mrb[28].mxu0 %vm197_vm2, %v9964_v34  ;;  %9598 = vmatpush3.bf16.msra.mxu1 %v9968_v36  ;;  %v10018_v36 = vld [vmem:[%s13794_s3 + $0x25c] ss:$12 sps:$4 sm:$0xff]  }
  0xa3   :  { %1847 = vmatpush1.bf16.msra.mxu0 %v9965_v37  ;;  %9599 = vmatprep.subr.bf16.mxu1 %v10817_v1 }
  0xa4   :  { %8086 = vmatprep.subr.msk.bf16.mxu0 %vm207_vm1, %v8084_v39  ;;  %9601 = vmatprep.mubr.msk.bf16.mxu1 %vm10818_vm0, %v10817_v1 }
  0xa5   :  { %1870 = vmatprep.mubr.bf16.mxu0 %v10819_v8 }
  0xa6   :  { %9600 = vmatpush3.bf16.msra.mxu1 %v1836_v42  ;;  %v10021_v42 = vld [vmem:[%s13794_s3 + $0x274] ss:$12 sps:$4 sm:$0xff]  }
  0xa7   :  { %1849 = vmatpush1.bf16.msra.mxu0 %v1830_v44  ;;  %9613 = vmatprep.subr.bf16.mxu1 %v10817_v1 }
  0xa8   :  { %2118 = vmatprep.subr.bf16.mxu0 %v9975_v41  ;;  %v10019_v41 = vld [vmem:[%s13794_s3 + $0x270] ss:$12 sps:$4 sm:$0xff]  }
  0xa9   :  { %9602 = vmatmul.mubr.msk.bf16.vlgmr.msra.gmra.mrb[72].mxu1 %vm197_vm2, %v9972_v43 }
  0xaa   :  { %8087 = vmatmul.mubr.msk.bf16.vlgmr.msra.gmra.mrb[0].mxu0 %vm197_vm2, %v9972_v43  ;;  %9614 = vmatpush3.bf16.msra.mxu1 %v9976_v45 }
  0xab   :  { %2119 = vmatpush1.bf16.msra.mxu0 %v9973_v46  ;;  %9615 = vmatprep.subr.bf16.mxu1 %v10817_v1  ;;  %v10024_v46 = vld [vmem:[%s13794_s3 + $0x28c] ss:$12 sps:$4 sm:$0xff]  }
  0xac   :  { %2120 = vmatprep.subr.bf16.mxu0 %v9979_v47  ;;  %9605 = vmatprep.mubr.msk.bf16.mxu1 %vm10818_vm0, %v10817_v1 }
  0xad   :  { %1880 = vmatprep.mubr.bf16.mxu0 %v10819_v8 }
  0xae   :  { %9616 = vmatpush3.bf16.msra.mxu1 %v9980_v48  ;;  %v10022_v48 = vld [vmem:[%s13794_s3 + $0x288] ss:$12 sps:$4 sm:$0xff]  }
  0xaf   :  { %2121 = vmatpush1.bf16.msra.mxu0 %v9977_v49  ;;  %9617 = vmatprep.subr.bf16.mxu1 %v10817_v1 }
  0xb0   :  { %2122 = vmatprep.subr.bf16.mxu0 %v9984_v50 }
  0xb1   :  { %9606 = vmatmul.mubr.msk.bf16.gmra.mrb[76].mxu1 %vm197_vm2, %v9981_v51 }
  0xb2   :  { %8088 = vmatmul.mubr.msk.bf16.gmra.mrb[4].mxu0 %vm197_vm2, %v9981_v51  ;;  %9618 = vmatpush3.bf16.msra.mxu1 %v9985_v52  ;;  %v10025_v51 = vld [vmem:[%s13794_s3 + $0x2a0] ss:$12 sps:$4 sm:$0xff]   ;;  %v10027_v52 = vld [vmem:[%s13794_s3 + $0x2a4] ss:$12 sps:$4 sm:$0xff]  }
  0xb3   :  { %2123 = vmatpush1.bf16.msra.mxu0 %v9982_v53  ;;  %9619 = vmatprep.subr.bf16.mxu1 %v10817_v1  ;;  %v10028_v53 = vld [vmem:[%s13794_s3 + $0x2a8] ss:$12 sps:$4 sm:$0xff]  }
  0xb4   :  { %2124 = vmatprep.subr.bf16.mxu0 %v9988_v54  ;;  %9609 = vmatprep.mubr.msk.bf16.mxu1 %vm10818_vm0, %v10817_v1  ;;  %v10029_v54 = vld [vmem:[%s13794_s3 + $0x1e8] ss:$12 sps:$4 sm:$0xff]  }
  0xb5   :  { %1890 = vmatprep.mubr.bf16.mxu0 %v10819_v8 }
  0xb6   :  { %9620 = vmatpush3.bf16.msra.mxu1 %v9989_v55 }
  0xb7   :  { %2125 = vmatpush1.bf16.msra.mxu0 %v9986_v56  ;;  %9621 = vmatprep.subr.bf16.mxu1 %v10817_v1 }
  0xb8   :  { %2126 = vmatprep.subr.bf16.mxu0 %v9993_v57 }
  0xb9   :  { %9610 = vmatmul.mubr.msk.bf16.gmra.mrb[80].mxu1 %vm197_vm2, %v9990_v58 }
  0xba   :  { %8089 = vmatmul.mubr.msk.bf16.gmra.mrb[32].mxu0 %vm197_vm2, %v9990_v58  ;;  %9622 = vmatpush3.bf16.msra.mxu1 %v9994_v60  ;;  %v10033_v60 = vld [vmem:[%s13794_s3 + $0x2c0] ss:$12 sps:$4 sm:$0xff]  }
  0xbb   :  { %2127 = vmatpush1.bf16.msra.mxu0 %v9991_v61  ;;  %9623 = vmatprep.subr.bf16.mxu1 %v10817_v1 }
  0xbc   :  { %8141 = vmatprep.subr.msk.bf16.mxu0 %vm207_vm1, %v8139_v63  ;;  %9625 = vmatprep.mubr.msk.bf16.mxu1 %vm10818_vm0, %v10817_v1 }
  0xbd   :  { %2150 = vmatprep.mubr.bf16.mxu0 %v10819_v8 }
  0xbe   :  { %9624 = vmatpush3.bf16.msra.mxu1 %v2116_v2 }
  0xbf   :  { %2129 = vmatpush1.bf16.msra.mxu0 %v2110_v4  ;;  %9287 = vmatprep.subr.bf16.mxu1 %v10028_v53  ;;  %v10064_v53 = vld [vmem:[%s13794_s3 + $0x290] ss:$12 sps:$4 sm:$0xff]  }
  0xc1   :  { %9626 = vmatmul.mubr.msk.bf16.vlgmr.msra.gmra.mrb[84].mxu1 %vm197_vm2, %v9998_v3 }
  0xc2   :  { %8142 = vmatmul.mubr.msk.bf16.vlgmr.msra.gmra.mrb[0].mxu0 %vm197_vm2, %v9998_v3  ;;  %9629 = vmatprep.mubr.msk.bf16.mxu1 %vm10818_vm0, %v10817_v1 }
  0xc3   :  { %2160 = vmatprep.mubr.bf16.mxu0 %v10819_v8  ;;  %9288 = vmatpush3.bf16.msra.mxu1 %v10029_v54 }
  0xc4   :  { %9289 = vmatprep.subr.bf16.mxu1 %v10033_v60 }
  0xc9   :  { %9630 = vmatmul.mubr.msk.bf16.gmra.mrb[88].mxu1 %vm197_vm2, %v9999_v5 }
  0xca   :  { %8143 = vmatmul.mubr.msk.bf16.gmra.mrb[4].mxu0 %vm197_vm2, %v9999_v5  ;;  %9633 = vmatprep.mubr.msk.bf16.mxu1 %vm10818_vm0, %v10817_v1  ;;  %v10003_v1 = vld [vmem:[%s13794_s3 + $0x1e4] ss:$12 sps:$4 sm:$0xff]   ;;  %v10034_v5 = vld [vmem:[%s13794_s3 + $0x200] ss:$12 sps:$4 sm:$0xff]  }
  0xcb   :  { %2170 = vmatprep.mubr.bf16.mxu0 %v10819_v8  ;;  %2864 = vmatprep.subr.bf16.mxu0 %v10003_v1 }
  0xcc   :  { %2865 = vmatpush1.bf16.msra.mxu0 %v10001_v12  ;;  %9290 = vmatpush3.bf16.msra.mxu1 %v10034_v5 }
  0xcd   :  { %2866 = vmatprep.subr.bf16.mxu0 %v10006_v15 }
  0xd0   :  { %2867 = vmatpush1.bf16.msra.mxu0 %v10004_v17  ;;  %v10042_v17 = vld [vmem:[%s13794_s3 + $0x2ec] ss:$12 sps:$4 sm:$0xff]  }
  0xd1   :  { %9634 = vmatmul.mubr.msk.bf16.gmra.mrb[92].mxu1 %vm197_vm2, %v10000_v6  ;;  %2868 = vmatprep.subr.bf16.mxu0 %v10009_v20  ;;  %v10044_v20 = vld [vmem:[%s13794_s3 + $0x230] ss:$12 sps:$4 sm:$0xff]  }
  0xd2   :  { %8144 = vmatmul.mubr.msk.bf16.gmra.mrb[36].mxu0 %vm197_vm2, %v10000_v6 }
  0xd4   :  { %2869 = vmatpush1.bf16.msra.mxu0 %v10007_v19  ;;  %v10040_v19 = vld [vmem:[%s13794_s3 + $0x2e8] ss:$12 sps:$4 sm:$0xff]  }
  0xd5   :  { %2870 = vmatprep.subr.bf16.mxu0 %v10012_v24  ;;  %v10047_v24 = vld [vmem:[%s13794_s3 + $0x304] ss:$12 sps:$4 sm:$0xff]  }
  0xd8   :  { %2871 = vmatpush1.bf16.msra.mxu0 %v10010_v27  ;;  %v10045_v27 = vld [vmem:[%s13794_s3 + $0x300] ss:$12 sps:$4 sm:$0xff]  }
  0xd9   :  { %2872 = vmatprep.subr.bf16.mxu0 %v10015_v31  ;;  %v10052_v31 = vld [vmem:[%s13794_s3 + $0x31c] ss:$12 sps:$4 sm:$0xff]  }
  0xdc   :  { %2873 = vmatpush1.bf16.msra.mxu0 %v10013_v30 }
  0xdd   :  { %2874 = vmatprep.subr.bf16.mxu0 %v10018_v36 }
  0xe0   :  { %2875 = vmatpush1.bf16.msra.mxu0 %v10016_v38 }
  0xe1   :  { %2876 = vmatprep.subr.bf16.mxu0 %v10021_v42 }
  0xe4   :  { %2877 = vmatpush1.bf16.msra.mxu0 %v10019_v41 }
  0xe5   :  { %2878 = vmatprep.subr.bf16.mxu0 %v10024_v46 }
  0xe8   :  { %2879 = vmatpush1.bf16.msra.mxu0 %v10022_v48 }
  0xe9   :  { %2880 = vmatprep.subr.bf16.mxu0 %v10027_v52  ;;  %v10060_v52 = vld [vmem:[%s13794_s3 + $0x348] ss:$12 sps:$4 sm:$0xff]  }
  0xec   :  { %v312_v7 = vpop.f32.mrb[0].mxu1  ;;  %2881 = vmatpush1.bf16.msra.mxu0 %v10025_v51  ;;  %v10063_v51 = vld [vmem:[%s13794_s3 + $0x350] ss:$12 sps:$4 sm:$0xff]  }
  0xed   :  { %v9459_v9 = vpop.f32.mrb[1].mxu1  ;;  %2882 = vmatprep.subr.bf16.mxu0 %v10032_v59  ;;  %v11717_v59 = vld [vmem:[%s13794_s3 + $0x368] ss:$12 sps:$4 sm:$0xff]  }
  0xee   :  { %v315_v10 = vpop.f32.mrb[2].mxu1  ;;  %v10038_v9 = vld [vmem:[%s13794_s3 + $0x2d8] ss:$12 sps:$4 sm:$0xff]  }
  0xef   :  { %v9460_v11 = vpop.f32.mrb[3].mxu1  ;;  %9291 = vmatprep.subr.bf16.mxu1 %v10038_v9 }
  0xf0   :  { %2883 = vmatpush1.bf16.msra.mxu0 %v10030_v0  ;;  %v10039_v11 = vld [vmem:[%s13794_s3 + $0x218] ss:$12 sps:$4 sm:$0xff]  }
  0xf1   :  { %9292 = vmatpush3.bf16.msra.mxu1 %v10039_v11 }
  0xf4   :  { %v320_v13 = vpop.f32.mrb[4].mxu1 }
  0xf5   :  { %v9463_v14 = vpop.f32.mrb[5].mxu1 }
  0xf6   :  { %v323_v16 = vpop.f32.mrb[6].mxu1 }
  0xf7   :  { %v9464_v18 = vpop.f32.mrb[7].mxu1 }
  0xf8   :  { %v10043_v18 = vld [vmem:[%s13794_s3 + $0x2f0] ss:$12 sps:$4 sm:$0xff]  }
  0xf9   :  { %9293 = vmatprep.subr.bf16.mxu1 %v10043_v18 }
  0xfa   :  { %9294 = vmatpush3.bf16.msra.mxu1 %v10044_v20 }
  0xfc   :  { %v328_v21 = vpop.f32.mrb[8].mxu1 }
  0xfd   :  { %v271_v22 = vpop.f32.mrb[8].mxu0  ;;  %v9467_v23 = vpop.f32.mrb[9].mxu1 }
  0xfe   :  { %v273_v25 = vpop.f32.mrb[9].mxu0  ;;  %v331_v26 = vpop.f32.mrb[10].mxu1 }
  0xff   :  { %v275_v28 = vpop.f32.mrb[10].mxu0  ;;  %v9468_v29 = vpop.f32.mrb[11].mxu1 }
 0x100   :  { %v276_v32 = vpop.f32.mrb[11].mxu0  ;;  %v10049_v28 = vld [vmem:[%s13794_s3 + $0x248] ss:$12 sps:$4 sm:$0xff]  }
 0x101   :  { %v10053_v32 = vld [vmem:[%s13794_s3 + $0x320] ss:$12 sps:$4 sm:$0xff]  }
 0x104   :  { %v548_v33 = vpop.f32.mrb[12].mxu1 }
 0x105   :  { %v549_v34 = vadd.f32 %v548_v33, %v312_v7  ;;  %v9483_v35 = vpop.f32.mrb[13].mxu1  ;;  %v10037_v7 = vld [vmem:[%s13794_s3 + $0x2d4] ss:$12 sps:$4 sm:$0xff]   ;;  %v10050_v33 = vld [vmem:[%s13794_s3 + $0x318] ss:$12 sps:$4 sm:$0xff]  }
 0x106   :  { %v551_v37 = vpop.f32.mrb[14].mxu1  ;;  %2884 = vmatprep.subr.bf16.mxu0 %v10037_v7 }
 0x107   :  { %v552_v39 = vadd.f32 %v551_v37, %v315_v10  ;;  %v9484_v40 = vpop.f32.mrb[15].mxu1  ;;  %v10035_v10 = vld [vmem:[%s13794_s3 + $0x2d0] ss:$12 sps:$4 sm:$0xff]  }
 0x108   :  { %2885 = vmatpush1.bf16.msra.mxu0 %v10035_v10  ;;  %v10058_v40 = vld [vmem:[%s13794_s3 + $0x338] ss:$12 sps:$4 sm:$0xff]  }
 0x109   :  { %2886 = vmatprep.subr.bf16.mxu0 %v10042_v17 }
 0x10c   :  { %v556_v43 = vpop.f32.mrb[16].mxu1  ;;  %2887 = vmatpush1.bf16.msra.mxu0 %v10040_v19 }
 0x10d   :  { %v557_v44 = vadd.f32 %v556_v43, %v320_v13  ;;  %v9487_v45 = vpop.f32.mrb[17].mxu1  ;;  %2888 = vmatprep.subr.bf16.mxu0 %v10047_v24 }
 0x10e   :  { %v559_v47 = vpop.f32.mrb[18].mxu1  ;;  %v10059_v45 = vld [vmem:[%s13794_s3 + $0x278] ss:$12 sps:$4 sm:$0xff]  }
 0x10f   :  { %v560_v49 = vadd.f32 %v559_v47, %v323_v16  ;;  %v9488_v50 = vpop.f32.mrb[19].mxu1 }
 0x110   :  { %2889 = vmatpush1.bf16.msra.mxu0 %v10045_v27  ;;  %v10062_v50 = vld [vmem:[%s13794_s3 + $0x34c] ss:$12 sps:$4 sm:$0xff]  }
 0x111   :  { %2890 = vmatprep.subr.bf16.mxu0 %v10052_v31 }
 0x114   :  { %v564_v55 = vpop.f32.mrb[20].mxu1  ;;  %2891 = vmatpush1.bf16.msra.mxu0 %v10050_v33 }
 0x115   :  { %v11613_v56 = vadd.f32 %v564_v55, %v328_v21  ;;  %v507_v57 = vpop.f32.mrb[12].mxu0  ;;  %v9491_v58 = vpop.f32.mrb[21].mxu1 }
 0x116   :  { %v11621_v61 = vadd.f32 %v507_v57, %v271_v22  ;;  %v509_v62 = vpop.f32.mrb[13].mxu0  ;;  %v567_v63 = vpop.f32.mrb[22].mxu1  ;;  %v10067_v57 = vld [vmem:[%s13794_s3 + $0x364] ss:$12 sps:$4 sm:$0xff]  }
 0x117   :  { %v11626_v2 = vadd.f32 %v509_v62, %v273_v25  ;;  %v511_v3 = vpop.f32.mrb[14].mxu0  ;;  %v9492_v4 = vpop.f32.mrb[23].mxu1  ;;  %v10048_v25 = vld [vmem:[%s13794_s3 + $0x308] ss:$12 sps:$4 sm:$0xff]  }
 0x118   :  { %v512_v6 = vpop.f32.mrb[15].mxu0  ;;  %9295 = vmatprep.subr.bf16.mxu1 %v10048_v25 }
 0x119   :  { %9296 = vmatpush3.bf16.msra.mxu1 %v10049_v28 }
 0x11a   :  { %9297 = vmatprep.subr.bf16.mxu1 %v10053_v32 }
 0x11c   :  { %v813_v12 = vpop.f32.mrb[24].mxu1 }
 0x11d   :  { %v11643_v1 = vadd.f32 %v813_v12, %v549_v34  ;;  %v9507_v13 = vpop.f32.mrb[25].mxu1  ;;  %v10054_v34 = vld [vmem:[%s13794_s3 + $0x260] ss:$12 sps:$4 sm:$0xff]  }
 0x11e   :  { %v816_v14 = vpop.f32.mrb[26].mxu1  ;;  %9298 = vmatpush3.bf16.msra.mxu1 %v10054_v34 }
 0x11f   :  { %v11645_v15 = vadd.f32 %v816_v14, %v552_v39  ;;  %v9508_v16 = vpop.f32.mrb[27].mxu1  ;;  %v10057_v39 = vld [vmem:[%s13794_s3 + $0x334] ss:$12 sps:$4 sm:$0xff]   ;;  %9299 = vmatprep.subr.bf16.mxu1 %v10058_v40 }
 0x120   :  { %2892 = vmatprep.subr.bf16.mxu0 %v10057_v39 }
 0x122   :  { %9300 = vmatpush3.bf16.msra.mxu1 %v10059_v45 }
 0x123   :  { %9301 = vmatprep.subr.bf16.mxu1 %v10063_v51 }
 0x124   :  { %v821_v21 = vpop.f32.mrb[28].mxu1 }
 0x125   :  { %v843_v22 = vadd.f32 %v821_v21, %v557_v44  ;;  %v9511_v23 = vpop.f32.mrb[29].mxu1  ;;  %v10055_v44 = vld [vmem:[%s13794_s3 + $0x330] ss:$12 sps:$4 sm:$0xff]  }
 0x126   :  { %v824_v26 = vpop.f32.mrb[30].mxu1  ;;  %2893 = vmatpush1.bf16.msra.mxu0 %v10055_v44  ;;  %9302 = vmatpush3.bf16.msra.mxu1 %v10064_v53 }
 0x127   :  { %v846_v29 = vadd.f32 %v824_v26, %v560_v49  ;;  %v9512_v30 = vpop.f32.mrb[31].mxu1  ;;  %2894 = vmatprep.subr.bf16.mxu0 %v10062_v50  ;;  %9637 = vmatprep.subr.bf16.mxu1 %v11717_v59 }
 0x12a   :  { %2895 = vmatpush1.bf16.msra.mxu0 %v10060_v52 }
 0x12b   :  { %2915 = vmatprep.subr.bf16.mxu0 %v10067_v57 }
 0x12c   :  { %v829_v35 = vpop.f32.mrb[32].mxu1 }
 0x12d   :  { %v849_v36 = vadd.f32 %v829_v35, %v11613_v56  ;;  %v772_v37 = vpop.f32.mrb[16].mxu0  ;;  %v9515_v38 = vpop.f32.mrb[33].mxu1 }
 0x12e   :  { %v847_v41 = vadd.f32 %v772_v37, %v11621_v61  ;;  %v774_v42 = vpop.f32.mrb[17].mxu0  ;;  %v832_v43 = vpop.f32.mrb[34].mxu1 }
 0x12f   :  { %v848_v46 = vadd.f32 %v774_v42, %v11626_v2  ;;  %v776_v47 = vpop.f32.mrb[18].mxu0  ;;  %v9516_v48 = vpop.f32.mrb[35].mxu1 }
 0x130   :  { %v777_v49 = vpop.f32.mrb[19].mxu0 }
 0x134   :  { %v1093_v54 = vpop.f32.mrb[36].mxu1 }
 0x135   :  { %v1117_v55 = vadd.f32 %v1093_v54, %v11643_v1  ;;  %v9531_v56 = vpop.f32.mrb[37].mxu1 }
 0x136   :  { %v1096_v58 = vpop.f32.mrb[38].mxu1 }
 0x137   :  { %v1120_v60 = vadd.f32 %v1096_v58, %v11645_v15  ;;  %v9532_v61 = vpop.f32.mrb[39].mxu1 }
 0x13c   :  { %v1101_v62 = vpop.f32.mrb[40].mxu1 }
 0x13d   :  { %v1123_v63 = vadd.f32 %v1101_v62, %v843_v22  ;;  %v9535_v0 = vpop.f32.mrb[41].mxu1 }
 0x13e   :  { %v1104_v2 = vpop.f32.mrb[42].mxu1 }
 0x13f   :  { %v1126_v3 = vadd.f32 %v1104_v2, %v846_v29  ;;  %v9536_v4 = vpop.f32.mrb[43].mxu1 }
 0x144   :  { %v1109_v5 = vpop.f32.mrb[44].mxu1 }
 0x145   :  { %v1129_v6 = vadd.f32 %v1109_v5, %v849_v36  ;;  %v1052_v7 = vpop.f32.mrb[20].mxu0  ;;  %v9539_v9 = vpop.f32.mrb[45].mxu1 }
 0x146   :  { %v1127_v10 = vadd.f32 %v1052_v7, %v847_v41  ;;  %v1054_v11 = vpop.f32.mrb[21].mxu0  ;;  %v1112_v12 = vpop.f32.mrb[46].mxu1 }
 0x147   :  { %v1128_v1 = vadd.f32 %v1054_v11, %v848_v46  ;;  %v1056_v13 = vpop.f32.mrb[22].mxu0  ;;  %v9540_v14 = vpop.f32.mrb[47].mxu1 }
 0x148   :  { %v1057_v15 = vpop.f32.mrb[23].mxu0 }
 0x14c   :  { %v1373_v16 = vpop.f32.mrb[48].mxu1 }
 0x14d   :  { %v1397_v17 = vadd.f32 %v1373_v16, %v1117_v55  ;;  %v9555_v18 = vpop.f32.mrb[49].mxu1 }
 0x14e   :  { %v1376_v19 = vpop.f32.mrb[50].mxu1 }
 0x14f   :  { %v1400_v20 = vadd.f32 %v1376_v19, %v1120_v60  ;;  %v9556_v21 = vpop.f32.mrb[51].mxu1 }
 0x154   :  { %v1381_v22 = vpop.f32.mrb[52].mxu1 }
 0x155   :  { %v1403_v23 = vadd.f32 %v1381_v22, %v1123_v63  ;;  %v9559_v24 = vpop.f32.mrb[53].mxu1 }
 0x156   :  { %v1384_v25 = vpop.f32.mrb[54].mxu1 }
 0x157   :  { %v1406_v26 = vadd.f32 %v1384_v25, %v1126_v3  ;;  %v9560_v27 = vpop.f32.mrb[55].mxu1 }
 0x15c   :  { %v1389_v28 = vpop.f32.mrb[56].mxu1 }
 0x15d   :  { %v1409_v29 = vadd.f32 %v1389_v28, %v1129_v6  ;;  %v1332_v30 = vpop.f32.mrb[24].mxu0  ;;  %v9563_v31 = vpop.f32.mrb[57].mxu1 }
 0x15e   :  { %v1407_v32 = vadd.f32 %v1332_v30, %v1127_v10  ;;  %v1334_v33 = vpop.f32.mrb[25].mxu0  ;;  %v1392_v34 = vpop.f32.mrb[58].mxu1 }
 0x15f   :  { %v1408_v35 = vadd.f32 %v1334_v33, %v1128_v1  ;;  %v1336_v36 = vpop.f32.mrb[26].mxu0  ;;  %v9564_v37 = vpop.f32.mrb[59].mxu1 }
 0x160   :  { %v1337_v38 = vpop.f32.mrb[27].mxu0 }
 0x164   :  { %v1653_v39 = vpop.f32.mrb[60].mxu1 }
 0x165   :  { %v1677_v40 = vadd.f32 %v1653_v39, %v1397_v17  ;;  %v9579_v41 = vpop.f32.mrb[61].mxu1 }
 0x166   :  { %v1656_v42 = vpop.f32.mrb[62].mxu1 }
 0x167   :  { %v1680_v43 = vadd.f32 %v1656_v42, %v1400_v20  ;;  %v9580_v44 = vpop.f32.mrb[63].mxu1 }
 0x16c   :  { %v1661_v45 = vpop.f32.mrb[64].mxu1 }
 0x16d   :  { %v1683_v46 = vadd.f32 %v1661_v45, %v1403_v23  ;;  %v9583_v47 = vpop.f32.mrb[65].mxu1 }
 0x16e   :  { %v1664_v48 = vpop.f32.mrb[66].mxu1 }
 0x16f   :  { %v1686_v49 = vadd.f32 %v1664_v48, %v1406_v26  ;;  %v9584_v50 = vpop.f32.mrb[67].mxu1 }
 0x174   :  { %v1669_v51 = vpop.f32.mrb[68].mxu1 }
 0x175   :  { %v1689_v52 = vadd.f32 %v1669_v51, %v1409_v29  ;;  %v1612_v53 = vpop.f32.mrb[28].mxu0  ;;  %v9587_v54 = vpop.f32.mrb[69].mxu1 }
 0x176   :  { %v1687_v55 = vadd.f32 %v1612_v53, %v1407_v32  ;;  %v1614_v56 = vpop.f32.mrb[29].mxu0  ;;  %v1672_v57 = vpop.f32.mrb[70].mxu1 }
 0x177   :  { %v1688_v58 = vadd.f32 %v1614_v56, %v1408_v35  ;;  %v1616_v60 = vpop.f32.mrb[30].mxu0  ;;  %v9588_v61 = vpop.f32.mrb[71].mxu1 }
 0x178   :  { %v1617_v62 = vpop.f32.mrb[31].mxu0 }
 0x17c   :  { %v1933_v63 = vpop.f32.mrb[72].mxu1 }
 0x17d   :  { %v1957_v0 = vadd.f32 %v1933_v63, %v1677_v40  ;;  %v9603_v2 = vpop.f32.mrb[73].mxu1 }
 0x17e   :  { %v1936_v3 = vpop.f32.mrb[74].mxu1 }
 0x17f   :  { %v1960_v4 = vadd.f32 %v1936_v3, %v1680_v43  ;;  %v9604_v5 = vpop.f32.mrb[75].mxu1 }
 0x180   :  { %16 = vsyncpa [#allocation3], 0  ;;  %v2252_v11 = vlaneseq  ;;  %v2250_v25 = vld [vmem:[%s13793_s2] sm:$0x7]  ;;  %vm3589_vm3 = vcmask 1046528   ;;  %vm2412_vm4 = vcmask 1045504  }
 0x181   :  { %vm2319_vm5 = vcmask 1040384   ;;  %vm2303_vm6 = vcmask 1044480   ;;  %vm3605_vm7 = vcmask 1043456   ;;  %vm2431_vm8 = vcmask 1042432   ;;  %s10820_s30 = smov [#allocation2]  }
 0x182   :  { %v11721_v13 = vshrl.u32 %v2252_v11, 7  ;;  %vm2857_vm9 = vcmask 523264   ;;  %vm5230_vm10 = vcmask 261120   ;;  %vm6170_vm11 = vcmask 785408   ;;  %s7727_s12 = sshll.u32 %s10820_s30, 4  ;;  %s7728_s12 = int_to_ptr.vmem [resolvable:$true] %s7727_s12 }
 0x183   :  { %vm7719_vm12 = vcmask 33792   ;;  %s10793_s13 = scalar_lea.vmem %s7728_s12, 32  ;;  %p10798_p1 = scmp.lt.s32.totalorder %s7728_s12, %s7728_s12 }
 0x184   :  { %v1941_v6 = vpop.f32.mrb[76].mxu1  ;;  %v11728_v21 = vsub.s32 0, %v11721_v13  ;;  %v2262_v26 = vsub.s32 2, %v11721_v13  ;;  %v11737_v27 = vsub.s32 1, %v11721_v13  ;;  %p10794_p0 = scmp.ne.s32.totalorder %s7728_s12, %s10793_s13  ;;  %p10799_p2 = scmp.lt.s32.totalorder %s10793_s13, %s10793_s13 }
 0x185   :  { %v1963_v7 = vadd.f32 %v1941_v6, %v1683_v46  ;;  %v9607_v9 = vpop.f32.mrb[77].mxu1 }
 0x186   :  { %v1944_v10 = vpop.f32.mrb[78].mxu1  ;;  %v11740_v29 = vrot.slane %v2250_v25, %v11728_v21  ;;  %v11744_v30 = vrot.slane %v2250_v25, %v2262_v26  ;;  %v11747_v31 = vrot.slane %v2250_v25, %v11737_v27  ;;  %p10800_p3 = por %p10799_p2, %p10798_p1 }
 0x187   :  { %v1966_v12 = vadd.f32 %v1944_v10, %v1686_v49  ;;  %v9608_v1 = vpop.f32.mrb[79].mxu1 }
 0x188   :  { %p10801_p4 = pnand %p10800_p3, %p10794_p0 }
 0x18c   :  { %v1949_v14 = vpop.f32.mrb[80].mxu1 }
 0x18d   :  { %v11723_v15 = vadd.f32 %v1949_v14, %v1689_v52  ;;  %v1892_v16 = vpop.f32.mrb[32].mxu0  ;;  %v9611_v17 = vpop.f32.mrb[81].mxu1 }
 0x18e   :  { %v11725_v18 = vadd.f32 %v1892_v16, %v1687_v55  ;;  %v1894_v19 = vpop.f32.mrb[33].mxu0  ;;  %v1952_v20 = vpop.f32.mrb[82].mxu1 }
 0x18f   :  { %v11730_v22 = vadd.f32 %v1894_v19, %v1688_v58  ;;  %v1896_v23 = vpop.f32.mrb[34].mxu0  ;;  %v9612_v24 = vpop.f32.mrb[83].mxu1 }
 0x190   :  { %v1897_v28 = vpop.f32.mrb[35].mxu0 }
 0x194   :  { %v2213_v32 = vpop.f32.mrb[84].mxu1 }
 0x195   :  { %v2237_v33 = vadd.f32 %v2213_v32, %v1957_v0  ;;  %v2152_v34 = vpop.f32.mrb[0].mxu0  ;;  %v9627_v35 = vpop.f32.mrb[85].mxu1 }
 0x196   :  { %v11750_v36 = vadd.f32 %v11740_v29, %v2152_v34  ;;  %v2154_v37 = vpop.f32.mrb[1].mxu0  ;;  %v2216_v38 = vpop.f32.mrb[86].mxu1 }
 0x197   :  { %v11753_v39 = vadd.f32 %v11744_v30, %v2237_v33  ;;  %v11756_v40 = vadd.f32 %v11747_v31, %v2154_v37  ;;  %v2240_v41 = vadd.f32 %v2216_v38, %v1960_v4  ;;  %v2156_v42 = vpop.f32.mrb[2].mxu0  ;;  %v9628_v43 = vpop.f32.mrb[87].mxu1 }
 0x198   :  { %v2270_v44 = vadd.f32 %v11740_v29, %v2156_v42  ;;  %v2158_v45 = vpop.f32.mrb[3].mxu0  ;;  %v2282_v47 = vmax.f32 %v11750_v36, 0.0 }
 0x199   :  { %v2284_v46 = vmax.f32 %v11753_v39, 0.0  ;;  %v2272_v48 = vadd.f32 %v11744_v30, %v2240_v41  ;;  %v2271_v49 = vadd.f32 %v11747_v31, %v2158_v45  ;;  %v2283_v50 = vmax.f32 %v11756_v40, 0.0  ;;  %v10071_v39 = vld [vmem:[%s13794_s3 + $0x37c] ss:$12 sps:$4 sm:$0xff]  }
 0x19a   :  { %v11764_v51 = vmax.f32 %v2270_v44, 0.0  ;;  %v3590_v57 = vrot.slane %v2282_v47, 1 }
 0x19b   :  { %v11766_v52 = vmax.f32 %v2272_v48, 0.0  ;;  %v11768_v53 = vmax.f32 %v2271_v49, 0.0  ;;  %v3596_v56 = vrot.slane %v2284_v46, 1  ;;  %v3593_v62 = vrot.slane %v2283_v50, 1 }
 0x19c   :  { %v3591_v54 = vrot.slane %v11764_v51, 1  ;;  %v2221_v55 = vpop.f32.mrb[88].mxu1  ;;  %v2413_v17 = vrot.slane %v11764_v51, 2  ;;  %v4244_v33 = vrot.slane %v11764_v51, 3 }
 0x19d   :  { %v3597_v58 = vrot.slane %v11766_v52, 1  ;;  %v2162_v60 = vpop.f32.mrb[4].mxu0  ;;  %v9631_v61 = vpop.f32.mrb[89].mxu1  ;;  %v3594_v63 = vrot.slane %v11768_v53, 1  ;;  %v2243_v0 = vadd.f32 %v2221_v55, %v1963_v7  ;;  %v2419_v38 = vrot.slane %v11766_v52, 2 }
 0x19e   :  { %v2273_v2 = vadd.f32 %v11740_v29, %v2162_v60  ;;  %v2164_v3 = vpop.f32.mrb[5].mxu0  ;;  %v2224_v4 = vpop.f32.mrb[90].mxu1  ;;  %v11784_v11 = vsel %vm3589_vm3, %v3590_v57, %v3591_v54  ;;  %v2416_v41 = vrot.slane %v11768_v53, 2 }
 0x19f   :  { %v2274_v5 = vadd.f32 %v11747_v31, %v2164_v3  ;;  %v2246_v6 = vadd.f32 %v2224_v4, %v1966_v12  ;;  %v2166_v9 = vpop.f32.mrb[6].mxu0  ;;  %v9632_v10 = vpop.f32.mrb[91].mxu1  ;;  %v11789_v1 = vsel %vm3589_vm3, %v3596_v56, %v3597_v58  ;;  %v2275_v7 = vadd.f32 %v11744_v30, %v2243_v0 }
 0x1a0   :  { %v11792_v14 = vmax.f32 %v2273_v2, 0.0  ;;  %v2168_v16 = vpop.f32.mrb[7].mxu0  ;;  %v11797_v12 = vsel %vm3589_vm3, %v3593_v62, %v3594_v63  ;;  %v2276_v25 = vadd.f32 %v11740_v29, %v2166_v9 }
 0x1a1   :  { %v11800_v19 = vmax.f32 %v2274_v5, 0.0  ;;  %v2278_v20 = vadd.f32 %v11744_v30, %v2246_v6  ;;  %v11803_v23 = vmax.f32 %v2275_v7, 0.0  ;;  %v2277_v28 = vadd.f32 %v11747_v31, %v2168_v16 }
 0x1a2   :  { %v2414_v24 = vrot.slane %v11792_v14, 2  ;;  %v11819_v43 = vrot.slane %v11792_v14, 3  ;;  %v2291_v48 = vmax.f32 %v2276_v25, 0.0  ;;  %v3606_v61 = vrot.slane %v11792_v14, 4 }
 0x1a3   :  { %v2417_v32 = vrot.slane %v11800_v19, 2  ;;  %v2293_v35 = vmax.f32 %v2278_v20, 0.0  ;;  %v2420_v42 = vrot.slane %v11803_v23, 2  ;;  %v11821_v49 = vmax.f32 %v2277_v28, 0.0 }
 0x1a4   :  { %v11813_v34 = vsel %vm2412_vm4, %v2413_v17, %v2414_v24  ;;  %v2229_v37 = vpop.f32.mrb[92].mxu1  ;;  %v11827_v62 = vrot.slane %v11800_v19, 3  ;;  %v11834_v5 = vrot.slane %v11803_v23, 3  ;;  %v11839_v6 = vrot.slane %v2291_v48, 3 }
 0x1a5   :  { %v2172_v44 = vpop.f32.mrb[36].mxu0  ;;  %v9635_v45 = vpop.f32.mrb[93].mxu1  ;;  %v2249_v55 = vadd.f32 %v2229_v37, %v11723_v15  ;;  %v2418_v3 = vsel %vm2412_vm4, %v2416_v41, %v2417_v32  ;;  %v3609_v15 = vrot.slane %v11800_v19, 4  ;;  %v2438_v10 = vrot.slane %v2293_v35, 5 }
 0x1a6   :  { %v2247_v56 = vadd.f32 %v2172_v44, %v11725_v18  ;;  %v2174_v57 = vpop.f32.mrb[37].mxu0  ;;  %v2232_v60 = vpop.f32.mrb[94].mxu1  ;;  %v11837_v18 = vrot.slane %v2293_v35, 3  ;;  %v4262_v7 = vrot.slane %v2293_v35, 6  ;;  %v11845_v16 = vrot.slane %v11821_v49, 4 }
 0x1a7   :  { %v2248_v0 = vadd.f32 %v2174_v57, %v11730_v22  ;;  %v2176_v2 = vpop.f32.mrb[38].mxu0  ;;  %v9636_v4 = vpop.f32.mrb[95].mxu1  ;;  %v11842_v22 = vrot.slane %v11821_v49, 3  ;;  %v2281_v17 = vadd.f32 %v11744_v30, %v2249_v55  ;;  %v2421_v28 = vsel %vm2412_vm4, %v2419_v38, %v2420_v42 }
 0x1a8   :  { %v2177_v9 = vpop.f32.mrb[39].mxu0  ;;  %v2279_v20 = vadd.f32 %v11740_v29, %v2247_v56  ;;  %v2432_v37 = vrot.slane %v2291_v48, 5  ;;  %v4256_v41 = vrot.slane %v2291_v48, 6  ;;  %v2306_v45 = vsel %vm2303_vm6, %v11819_v43, %v11839_v6 }
 0x1a9   :  { %v2280_v25 = vadd.f32 %v11747_v31, %v2248_v0  ;;  %v2309_v44 = vsel %vm2303_vm6, %v11827_v62, %v11842_v22  ;;  %v2296_v57 = vmax.f32 %v2281_v17, 0.0  ;;  %v2320_v31 = vsel %vm2319_vm5, %v11764_v51, %v2306_v45 }
 0x1aa   :  { %v2294_v60 = vmax.f32 %v2279_v20, 0.0  ;;  %v2321_v29 = vsel %vm2319_vm5, %v11768_v53, %v2309_v44  ;;  %v2312_v38 = vsel %vm2303_vm6, %v11834_v5, %v11837_v18  ;;  %v3611_v55 = vsel %vm3605_vm7, %v3609_v15, %v11845_v16 }
 0x1ab   :  { %v2295_v2 = vmax.f32 %v2280_v25, 0.0  ;;  %v11861_v30 = vpack.c.bf16 %v2321_v29, %v2283_v50  ;;  %v11870_v56 = vrot.slane %v2296_v57, 5  ;;  %v11872_v0 = vrot.slane %v2296_v57, 6 }
 0x1ac   :  { %v11874_v4 = vrot.slane %v2294_v60, 5  ;;  %v11876_v9 = vrot.slane %v2294_v60, 6  ;;  %v2435_v40 = vrot.slane %v11821_v49, 5  ;;  %v11881_v17 = vpack.c.bf16 %v2320_v31, %v2282_v47 }
 0x1ad   :  { %v2436_v50 = vrot.slane %v2295_v2, 5  ;;  %v2322_v20 = vsel %vm2319_vm5, %v11766_v52, %v2312_v38  ;;  %v3612_v15 = vrot.slane %v11803_v23, 4  ;;  %v11886_v25 = vrot.slane %v2291_v48, 4 }
 0x1ae   :  { %v2440_v44 = vsel %vm2431_vm8, %v2438_v10, %v11870_v56  ;;  %v4264_v45 = vsel %vm207_vm1, %v4262_v7, %v11872_v0  ;;  %v11892_v57 = vrot.slane %v2293_v35, 4  ;;  %v2434_v36 = vsel %vm2431_vm8, %v2432_v37, %v11874_v4  ;;  %v10065_v37 = vld [vmem:[%s13794_s3 + $0x360] ss:$12 sps:$4 sm:$0xff]  }
 0x1af   :  { %v4258_v47 = vsel %vm207_vm1, %v4256_v41, %v11876_v9  ;;  %v2437_v60 = vsel %vm2431_vm8, %v2435_v40, %v2436_v50  ;;  %v2447_v23 = vsel %vm2319_vm5, %v2414_v24, %v2434_v36  ;;  %v11902_v48 = vrot.slane %v2295_v2, 6 }
 0x1b0   :  { %v2448_v10 = vsel %vm2319_vm5, %v2417_v32, %v2437_v60  ;;  %v2449_v35 = vsel %vm2319_vm5, %v2420_v42, %v2440_v44  ;;  %v2450_v41 = vpack.c.bf16 %v2447_v23, %v11813_v34  ;;  %v11916_v14 = vpack.c.bf16 %v2322_v20, %v2284_v46  ;;  %v10072_v46 = vld [vmem:[%s13794_s3 + $0x380] ss:$12 sps:$4 sm:$0xff]   ;;  %v10077_v20 = vld [vmem:[%s13794_s3 + $0x3a8] ss:$12 sps:$4 sm:$0xff]  }
 0x1b1   :  { %v2451_v7 = vpack.c.bf16 %v2448_v10, %v2418_v3  ;;  %v11912_v29 = vpack.c.bf16 %v2449_v35, %v2421_v28  ;;  %v4246_v24 = vrot.slane %v11768_v53, 3  ;;  %v2454_v19 = vpack.c.bf16 %v2436_v50, %v2436_v50  ;;  %v10079_v50 = vld [vmem:[%s13794_s3 + $0x3ac] ss:$12 sps:$4 sm:$0xff]   ;;  %v10093_v10 = vld [vmem:[%s13794_s3 + $0x34] ss:$12 sps:$4 sm:$0xff]  }
 0x1b2   :  { %v3622_v32 = vsel %vm2319_vm5, %v3594_v63, %v3611_v55  ;;  %v3608_v42 = vsel %vm3605_vm7, %v3606_v61, %v11886_v25  ;;  %v4259_v3 = vrot.slane %v11821_v49, 6  ;;  %v3614_v63 = vsel %vm3605_vm7, %v3612_v15, %v11892_v57  ;;  %v10084_v15 = vld [vmem:[%s13794_s3 + $0xc8] ss:$12 sps:$4 sm:$0xff]   ;;  %v10081_v44 = vld [vmem:[%s13794_s3] ss:$12 sps:$4 sm:$0xff]  }
 0x1b3   :  { %2896 = vmatprep.mubr.bf16.mxu0 %v2451_v7  ;;  %2998 = vmatprep.mubr.bf16.mxu1 %v2451_v7  ;;  %v11932_v34 = vpack.c.bf16 %v3622_v32, %v11797_v12  ;;  %v3621_v53 = vsel %vm2319_vm5, %v3591_v54, %v3608_v42  ;;  %v3623_v61 = vsel %vm2319_vm5, %v3597_v58, %v3614_v63  ;;  %v10069_v54 = vld [vmem:[%s13794_s3 + $0x378] ss:$12 sps:$4 sm:$0xff]   ;;  %v4248_v2 = vrot.slane %v11766_v52, 3  ;;  %v10089_v60 = vld [vmem:[%s13794_s3 + $0xe0] ss:$12 sps:$4 sm:$0xff]  }
 0x1b4   :  { %2897 = vmatmul.mubr.bf16.vlgmr.msra.gmra.mrb[40].mxu0 %v2450_v41  ;;  %2999 = vmatmul.mubr.bf16.vlgmr.msra.gmra.mrb[96].mxu1 %v2450_v41  ;;  %v11940_v49 = vpack.c.bf16 %v3621_v53, %v11784_v11  ;;  %v4247_v12 = vsel %vm2303_vm6, %v4246_v24, %v11827_v62  ;;  %v11952_v28 = vpack.c.bf16 %v3623_v61, %v11789_v1  ;;  %v10076_v1 = vld [vmem:[%s13794_s3 + $0x398] ss:$12 sps:$4 sm:$0xff]   ;;  %v10090_v23 = vld [vmem:[%s13794_s3 + $0x20] ss:$12 sps:$4 sm:$0xff]   ;;  %v10091_v7 = vld [vmem:[%s13794_s3 + $0x30] ss:$12 sps:$4 sm:$0xff]  }
 0x1b5   :  { %2916 = vmatpush1.bf16.msra.mxu0 %v10065_v37  ;;  %9638 = vmatpush3.bf16.msra.mxu1 %v11717_v59  ;;  %v4261_v11 = vsel %vm207_vm1, %v4259_v3, %v11902_v48  ;;  %v4245_v58 = vsel %vm2303_vm6, %v4244_v33, %v11819_v43  ;;  %v10075_v59 = vld [vmem:[%s13794_s3 + $0x394] ss:$12 sps:$4 sm:$0xff]   ;;  %v4271_v51 = vsel %vm2319_vm5, %v11819_v43, %v4258_v47  ;;  %v10088_v47 = vld [vmem:[%s13794_s3 + $0x1c] ss:$12 sps:$4 sm:$0xff]   ;;  %v10094_v35 = vld [vmem:[%s13794_s3 + $0xf8] ss:$12 sps:$4 sm:$0xff]  }
 0x1b6   :  { %2906 = vmatprep.mubr.bf16.mxu0 %v2454_v19  ;;  %3006 = vmatprep.mubr.bf16.mxu1 %v2454_v19  ;;  %v4272_v31 = vsel %vm2319_vm5, %v11827_v62, %v4261_v11  ;;  %v11973_v52 = vpack.c.bf16 %v4271_v51, %v4245_v58  ;;  %v4249_v38 = vsel %vm2303_vm6, %v4248_v2, %v11834_v5  ;;  %v10073_v62 = vld [vmem:[%s13794_s3 + $0x390] ss:$12 sps:$4 sm:$0xff]   ;;  %v10095_v37 = vld [vmem:[%s13794_s3 + $0x38] ss:$12 sps:$4 sm:$0xff]   ;;  %v10096_v24 = vld [vmem:[%s13794_s3 + $0x48] ss:$12 sps:$4 sm:$0xff]  }
 0x1b7   :  { %2917 = vmatprep.subr.bf16.mxu0 %v10071_v39  ;;  %9639 = vmatprep.subr.bf16.mxu1 %v10072_v46  ;;  %v11971_v33 = vpack.c.bf16 %v4272_v31, %v4247_v12  ;;  %v4273_v55 = vsel %vm2319_vm5, %v11834_v5, %v4264_v45  ;;  %v2453_v43 = vpack.c.bf16 %v11874_v4, %v11874_v4  ;;  %v10080_v5 = vld [vmem:[%s13794_s3 + $0x3b0] ss:$12 sps:$4 sm:$0xff]   ;;  %v10085_v45 = vld [vmem:[%s13794_s3 + $0x8] ss:$12 sps:$4 sm:$0xff]   ;;  %v10098_v41 = vld [vmem:[%s13794_s3 + $0x4c] ss:$12 sps:$4 sm:$0xff]  }
 0x1b8   :  { %v11982_v40 = vpack.c.bf16 %v4273_v55, %v4249_v38  ;;  %v10083_v4 = vld [vmem:[%s13794_s3 + $0x4] ss:$12 sps:$4 sm:$0xff]   ;;  %v2455_v36 = vpack.c.bf16 %v11870_v56, %v11870_v56  ;;  %v10104_v42 = vld [vmem:[%s13794_s3 + $0x128] ss:$12 sps:$4 sm:$0xff]   ;;  %v10101_v3 = vld [vmem:[%s13794_s3 + $0x60] ss:$12 sps:$4 sm:$0xff]  }
 0x1b9   :  { %2918 = vmatpush1.bf16.msra.mxu0 %v10069_v54  ;;  %9640 = vmatpush3.bf16.msra.mxu1 %v10072_v46  ;;  %v10086_v56 = vld [vmem:[%s13794_s3 + $0x18] ss:$12 sps:$4 sm:$0xff]   ;;  %v10100_v19 = vld [vmem:[%s13794_s3 + $0x50] ss:$12 sps:$4 sm:$0xff]   ;;  %v10109_v46 = vld [vmem:[%s13794_s3 + $0x140] ss:$12 sps:$4 sm:$0xff]  }
 0x1ba   :  { %2919 = vmatprep.subr.bf16.mxu0 %v10075_v59  ;;  %9641 = vmatprep.subr.bf16.mxu1 %v10076_v1  ;;  %v10103_v32 = vld [vmem:[%s13794_s3 + $0x64] ss:$12 sps:$4 sm:$0xff]   ;;  %v10108_v39 = vld [vmem:[%s13794_s3 + $0x7c] ss:$12 sps:$4 sm:$0xff]   ;;  %v10110_v63 = vld [vmem:[%s13794_s3 + $0x80] ss:$12 sps:$4 sm:$0xff]  }
 0x1bb   :  { %v10106_v53 = vld [vmem:[%s13794_s3 + $0x78] ss:$12 sps:$4 sm:$0xff]   ;;  %v10113_v61 = vld [vmem:[%s13794_s3 + $0x94] ss:$12 sps:$4 sm:$0xff]   ;;  %v10111_v54 = vld [vmem:[%s13794_s3 + $0x90] ss:$12 sps:$4 sm:$0xff]  }
 0x1bc   :  { %2907 = vmatmul.mubr.bf16.gmra.mrb[44].mxu0 %v2453_v43  ;;  %3007 = vmatmul.mubr.bf16.gmra.mrb[100].mxu1 %v2453_v43  ;;  %v10114_v12 = vld [vmem:[%s13794_s3 + $0x158] ss:$12 sps:$4 sm:$0xff]   ;;  %v10119_v2 = vld [vmem:[%s13794_s3 + $0x170] ss:$12 sps:$4 sm:$0xff]   ;;  %v10116_v59 = vld [vmem:[%s13794_s3 + $0xa8] ss:$12 sps:$4 sm:$0xff]  }
 0x1bd   :  { %2920 = vmatpush1.bf16.msra.mxu0 %v10073_v62  ;;  %9642 = vmatpush3.bf16.msra.mxu1 %v10076_v1  ;;  %v10115_v11 = vld [vmem:[%s13794_s3 + $0x98] ss:$12 sps:$4 sm:$0xff]   ;;  %v10120_v1 = vld [vmem:[%s13794_s3 + $0xb0] ss:$12 sps:$4 sm:$0xff]   ;;  %v10124_v51 = vld [vmem:[%s13794_s3 + $0x188] ss:$12 sps:$4 sm:$0xff]   ;;  %v12117_v62 = vpack.c.bf16 %v11842_v22, %v11842_v22 }
 0x1be   :  { %9645 = vmatprep.mubr.msk.bf16.mxu1 %vm2857_vm9, %v11912_v29  ;;  %2921 = vmatprep.subr.bf16.mxu0 %v10079_v50  ;;  %v10118_v58 = vld [vmem:[%s13794_s3 + $0xac] ss:$12 sps:$4 sm:$0xff]   ;;  %v10123_v31 = vld [vmem:[%s13794_s3 + $0xc4] ss:$12 sps:$4 sm:$0xff]   ;;  %v10127_v55 = vld [vmem:[%s13794_s3 + $0xdc] ss:$12 sps:$4 sm:$0xff]  }
 0x1bf   :  { %9643 = vmatprep.subr.bf16.mxu1 %v10080_v5  ;;  %2947 = vmatprep.mubr.bf16.mxu0 %v10819_v8  ;;  %v10121_v38 = vld [vmem:[%s13794_s3 + $0xc0] ss:$12 sps:$4 sm:$0xff]   ;;  %v10125_v50 = vld [vmem:[%s13794_s3 + $0xd8] ss:$12 sps:$4 sm:$0xff]  }
 0x1c0   :  { %v10128_v43 = vld [vmem:[%s13794_s3 + $0x1a0] ss:$12 sps:$4 sm:$0xff]  }
 0x1c1   :  { %2922 = vmatpush1.bf16.msra.mxu0 %v10077_v20  ;;  %9644 = vmatpush3.bf16.msra.mxu1 %v10080_v5  ;;  %v10131_v22 = vld [vmem:[%s13794_s3 + $0xf4] ss:$12 sps:$4 sm:$0xff]   ;;  %v10132_v5 = vld [vmem:[%s13794_s3 + $0x1b8] ss:$12 sps:$4 sm:$0xff]   ;;  %v10129_v20 = vld [vmem:[%s13794_s3 + $0xf0] ss:$12 sps:$4 sm:$0xff]  }
 0x1c2   :  { %3388 = vmatprep.subr.bf16.mxu0 %v10083_v4  ;;  %9321 = vmatprep.subr.bf16.mxu1 %v10084_v15  ;;  %v12138_v4 = vpack.c.bf16 %v11839_v6, %v11839_v6  ;;  %v10135_v15 = vld [vmem:[%s13794_s3 + $0x10c] ss:$12 sps:$4 sm:$0xff]   ;;  %v10133_v6 = vld [vmem:[%s13794_s3 + $0x108] ss:$12 sps:$4 sm:$0xff]  }
 0x1c4   :  { %8288 = vmatmul.mubr.msk.bf16.vlgmr.msra.gmra.mrb[40].mxu0 %vm2857_vm9, %v11912_v29  ;;  %9646 = vmatmul.mubr.msk.bf16.vlgmr.msra.gmra.mrb[104].mxu1 %vm2857_vm9, %v2455_v36  ;;  %v10099_v29 = vld [vmem:[%s13794_s3 + $0x110] ss:$12 sps:$4 sm:$0xff]  }
 0x1c5   :  { %3389 = vmatpush1.bf16.msra.mxu0 %v10081_v44  ;;  %9322 = vmatpush3.bf16.msra.mxu1 %v10085_v45  ;;  %v10136_v44 = vld [vmem:[%s13794_s3 + $0x1d0] ss:$12 sps:$4 sm:$0xff]  }
 0x1c6   :  { %3522 = vmatprep.mubr.bf16.mxu1 %v11861_v30  ;;  %3390 = vmatprep.subr.bf16.mxu0 %v10088_v47  ;;  %v10139_v45 = vld [vmem:[%s13794_s3 + $0x124] ss:$12 sps:$4 sm:$0xff]   ;;  %v10137_v47 = vld [vmem:[%s13794_s3 + $0x120] ss:$12 sps:$4 sm:$0xff]  }
 0x1c7   :  { %9323 = vmatprep.subr.bf16.mxu1 %v10089_v60  ;;  %2957 = vmatprep.mubr.bf16.mxu0 %v10819_v8  ;;  %v10141_v60 = vld [vmem:[%s13794_s3 + $0x3c8] ss:$12 sps:$4 sm:$0xff]  }
 0x1c9   :  { %3391 = vmatpush1.bf16.msra.mxu0 %v10086_v56  ;;  %9324 = vmatpush3.bf16.msra.mxu1 %v10090_v23  ;;  %v12166_v56 = vpack.c.bf16 %v11837_v18, %v11837_v18  ;;  %v10144_v23 = vld [vmem:[%s13794_s3 + $0x13c] ss:$12 sps:$4 sm:$0xff]   ;;  %v10146_v18 = vld [vmem:[%s13794_s3 + $0x3e0] ss:$12 sps:$4 sm:$0xff]  }
 0x1ca   :  { %3392 = vmatprep.subr.bf16.mxu0 %v10093_v10  ;;  %9325 = vmatprep.subr.bf16.mxu1 %v10094_v35  ;;  %v10145_v10 = vld [vmem:[%s13794_s3 + $0x4a0] ss:$12 sps:$4 sm:$0xff]   ;;  %v10142_v35 = vld [vmem:[%s13794_s3 + $0x138] ss:$12 sps:$4 sm:$0xff]  }
 0x1cc   :  { %8289 = vmatmul.mubr.msk.bf16.gmra.mrb[48].mxu0 %vm2857_vm9, %v2455_v36  ;;  %v10140_v36 = vld [vmem:[%s13794_s3 + $0x488] ss:$12 sps:$4 sm:$0xff]  }
 0x1cd   :  { %3393 = vmatpush1.bf16.msra.mxu0 %v10091_v7  ;;  %9326 = vmatpush3.bf16.msra.mxu1 %v10095_v37  ;;  %v10149_v7 = vld [vmem:[%s13794_s3 + $0x154] ss:$12 sps:$4 sm:$0xff]   ;;  %v10150_v37 = vld [vmem:[%s13794_s3 + $0x4b8] ss:$12 sps:$4 sm:$0xff]  }
 0x1ce   :  { %3420 = vmatprep.mubr.bf16.mxu0 %v11861_v30  ;;  %3394 = vmatprep.subr.bf16.mxu0 %v10098_v41  ;;  %v10105_v30 = vld [vmem:[%s13794_s3 + $0x68] ss:$12 sps:$4 sm:$0xff]   ;;  %v10147_v41 = vld [vmem:[%s13794_s3 + $0x150] ss:$12 sps:$4 sm:$0xff]  }
 0x1cf   :  { %9327 = vmatprep.subr.bf16.mxu1 %v10099_v29  ;;  %v10151_v29 = vld [vmem:[%s13794_s3 + $0x3f8] ss:$12 sps:$4 sm:$0xff]  }
 0x1d1   :  { %3395 = vmatpush1.bf16.msra.mxu0 %v10096_v24  ;;  %9328 = vmatpush3.bf16.msra.mxu1 %v10100_v19  ;;  %v10154_v24 = vld [vmem:[%s13794_s3 + $0x16c] ss:$12 sps:$4 sm:$0xff]   ;;  %v10155_v19 = vld [vmem:[%s13794_s3 + $0x4d0] ss:$12 sps:$4 sm:$0xff]  }
 0x1d2   :  { %3396 = vmatprep.subr.bf16.mxu0 %v10103_v32  ;;  %9329 = vmatprep.subr.bf16.mxu1 %v10104_v42  ;;  %v10152_v32 = vld [vmem:[%s13794_s3 + $0x168] ss:$12 sps:$4 sm:$0xff]   ;;  %v10156_v42 = vld [vmem:[%s13794_s3 + $0x410] ss:$12 sps:$4 sm:$0xff]  }
 0x1d5   :  { %3397 = vmatpush1.bf16.msra.mxu0 %v10101_v3  ;;  %9330 = vmatpush3.bf16.msra.mxu1 %v10105_v30  ;;  %v10159_v3 = vld [vmem:[%s13794_s3 + $0x184] ss:$12 sps:$4 sm:$0xff]   ;;  %v10160_v30 = vld [vmem:[%s13794_s3 + $0x4e8] ss:$12 sps:$4 sm:$0xff]  }
 0x1d6   :  { %3398 = vmatprep.subr.bf16.mxu0 %v10108_v39  ;;  %9331 = vmatprep.subr.bf16.mxu1 %v10109_v46  ;;  %v10157_v39 = vld [vmem:[%s13794_s3 + $0x180] ss:$12 sps:$4 sm:$0xff]   ;;  %v10161_v46 = vld [vmem:[%s13794_s3 + $0x428] ss:$12 sps:$4 sm:$0xff]  }
 0x1d9   :  { %3399 = vmatpush1.bf16.msra.mxu0 %v10106_v53  ;;  %9332 = vmatpush3.bf16.msra.mxu1 %v10110_v63  ;;  %v10164_v53 = vld [vmem:[%s13794_s3 + $0x19c] ss:$12 sps:$4 sm:$0xff]   ;;  %v10165_v63 = vld [vmem:[%s13794_s3 + $0x500] ss:$12 sps:$4 sm:$0xff]  }
 0x1da   :  { %3400 = vmatprep.subr.bf16.mxu0 %v10113_v61  ;;  %9333 = vmatprep.subr.bf16.mxu1 %v10114_v12  ;;  %v10162_v61 = vld [vmem:[%s13794_s3 + $0x198] ss:$12 sps:$4 sm:$0xff]   ;;  %v10166_v12 = vld [vmem:[%s13794_s3 + $0x440] ss:$12 sps:$4 sm:$0xff]  }
 0x1dd   :  { %3401 = vmatpush1.bf16.msra.mxu0 %v10111_v54  ;;  %9334 = vmatpush3.bf16.msra.mxu1 %v10115_v11  ;;  %v10169_v54 = vld [vmem:[%s13794_s3 + $0x1b4] ss:$12 sps:$4 sm:$0xff]   ;;  %v10167_v11 = vld [vmem:[%s13794_s3 + $0x1b0] ss:$12 sps:$4 sm:$0xff]  }
 0x1de   :  { %3402 = vmatprep.subr.bf16.mxu0 %v10118_v58  ;;  %9335 = vmatprep.subr.bf16.mxu1 %v10119_v2  ;;  %v10171_v58 = vld [vmem:[%s13794_s3 + $0x458] ss:$12 sps:$4 sm:$0xff]  }
 0x1df   :  { %v10174_v2 = vld [vmem:[%s13794_s3 + $0x1cc] ss:$12 sps:$4 sm:$0xff]  }
 0x1e1   :  { %3403 = vmatpush1.bf16.msra.mxu0 %v10116_v59  ;;  %9336 = vmatpush3.bf16.msra.mxu1 %v10120_v1  ;;  %v10175_v59 = vld [vmem:[%s13794_s3 + $0x530] ss:$12 sps:$4 sm:$0xff]   ;;  %v10172_v1 = vld [vmem:[%s13794_s3 + $0x1c8] ss:$12 sps:$4 sm:$0xff]  }
 0x1e2   :  { %3404 = vmatprep.subr.bf16.mxu0 %v10123_v31  ;;  %9649 = vmatprep.subr.bf16.mxu1 %v10124_v51  ;;  %v10176_v31 = vld [vmem:[%s13794_s3 + $0x470] ss:$12 sps:$4 sm:$0xff]  }
 0x1e4   :  { %3523 = vmatmul.mubr.bf16.vlgmr.msra.gmra.mrb[108].mxu1 %v11881_v17 }
 0x1e5   :  { %3405 = vmatpush1.bf16.msra.mxu0 %v10121_v38  ;;  %3530 = vmatprep.mubr.bf16.mxu1 %v12117_v62  ;;  %v10180_v38 = vld [vmem:[%s13794_s3 + $0x548] ss:$12 sps:$4 sm:$0xff]  }
 0x1e6   :  { %9650 = vmatpush3.bf16.msra.mxu1 %v10124_v51  ;;  %3406 = vmatprep.subr.bf16.mxu0 %v10127_v55  ;;  %v10179_v51 = vld [vmem:[%s13794_s3 + $0x3c4] ss:$12 sps:$4 sm:$0xff]   ;;  %v10177_v55 = vld [vmem:[%s13794_s3 + $0x3c0] ss:$12 sps:$4 sm:$0xff]  }
 0x1e7   :  { %9651 = vmatprep.subr.bf16.mxu1 %v10128_v43 }
 0x1e9   :  { %3407 = vmatpush1.bf16.msra.mxu0 %v10125_v50  ;;  %v12278_v50 = vpack.c.bf16 %v11845_v16, %v11845_v16  ;;  %v10188_v16 = vld [vmem:[%s13794_s3 + $0x578] ss:$12 sps:$4 sm:$0xff]  }
 0x1ea   :  { %9652 = vmatpush3.bf16.msra.mxu1 %v10128_v43  ;;  %3408 = vmatprep.subr.bf16.mxu0 %v10131_v22  ;;  %v10184_v43 = vld [vmem:[%s13794_s3 + $0x560] ss:$12 sps:$4 sm:$0xff]   ;;  %v10181_v22 = vld [vmem:[%s13794_s3 + $0x3d8] ss:$12 sps:$4 sm:$0xff]  }
 0x1eb   :  { %9653 = vmatprep.subr.bf16.mxu1 %v10132_v5 }
 0x1ec   :  { %3531 = vmatmul.mubr.bf16.gmra.mrb[112].mxu1 %v12138_v4 }
 0x1ed   :  { %3409 = vmatpush1.bf16.msra.mxu0 %v10129_v20  ;;  %9657 = vmatprep.mubr.msk.bf16.mxu1 %vm2857_vm9, %v11916_v14  ;;  %v12297_v20 = vpack.c.bf16 %v11886_v25, %v11886_v25  ;;  %v10189_v25 = vld [vmem:[%s13794_s3 + $0x408] ss:$12 sps:$4 sm:$0xff]  }
 0x1ee   :  { %9654 = vmatpush3.bf16.msra.mxu1 %v10132_v5  ;;  %3410 = vmatprep.subr.bf16.mxu0 %v10135_v15  ;;  %v10187_v5 = vld [vmem:[%s13794_s3 + $0x3f4] ss:$12 sps:$4 sm:$0xff]   ;;  %v10192_v15 = vld [vmem:[%s13794_s3 + $0x590] ss:$12 sps:$4 sm:$0xff]  }
 0x1ef   :  { %9655 = vmatprep.subr.bf16.mxu1 %v10136_v44 }
 0x1f1   :  { %3411 = vmatpush1.bf16.msra.mxu0 %v10133_v6  ;;  %v10196_v6 = vld [vmem:[%s13794_s3 + $0x668] ss:$12 sps:$4 sm:$0xff]  }
 0x1f2   :  { %9656 = vmatpush3.bf16.msra.mxu1 %v10136_v44  ;;  %3412 = vmatprep.subr.bf16.mxu0 %v10139_v45  ;;  %v10195_v44 = vld [vmem:[%s13794_s3 + $0x424] ss:$12 sps:$4 sm:$0xff]   ;;  %v10193_v45 = vld [vmem:[%s13794_s3 + $0x420] ss:$12 sps:$4 sm:$0xff]  }
 0x1f3   :  { %9355 = vmatprep.subr.bf16.mxu1 %v10140_v36  ;;  %v12328_v36 = vpack.c.bf16 %v11892_v57, %v11892_v57  ;;  %v10202_v57 = vld [vmem:[%s13794_s3 + $0x5c0] ss:$12 sps:$4 sm:$0xff]  }
 0x1f5   :  { %9658 = vmatmul.mubr.msk.bf16.vlgmr.msra.gmra.mrb[116].mxu1 %vm2857_vm9, %v12166_v56  ;;  %3413 = vmatpush1.bf16.msra.mxu0 %v10137_v47  ;;  %v10200_v47 = vld [vmem:[%s13794_s3 + $0x43c] ss:$12 sps:$4 sm:$0xff]  }
 0x1f6   :  { %9356 = vmatpush3.bf16.msra.mxu1 %v10141_v60  ;;  %4171 = vmatprep.mubr.bf16.mxu1 %v11932_v34  ;;  %v10201_v60 = vld [vmem:[%s13794_s3 + $0x680] ss:$12 sps:$4 sm:$0xff]  }
 0x1f7   :  { %3414 = vmatprep.subr.bf16.mxu0 %v10144_v23  ;;  %9357 = vmatprep.subr.bf16.mxu1 %v10145_v10  ;;  %v10205_v23 = vld [vmem:[%s13794_s3 + $0x454] ss:$12 sps:$4 sm:$0xff]   ;;  %v10206_v10 = vld [vmem:[%s13794_s3 + $0x698] ss:$12 sps:$4 sm:$0xff]  }
 0x1f9   :  { %3415 = vmatpush1.bf16.msra.mxu0 %v10142_v35  ;;  %v10203_v35 = vld [vmem:[%s13794_s3 + $0x450] ss:$12 sps:$4 sm:$0xff]  }
 0x1fa   :  { %9358 = vmatpush3.bf16.msra.mxu1 %v10146_v18  ;;  %3416 = vmatprep.subr.bf16.mxu0 %v10149_v7  ;;  %v10207_v18 = vld [vmem:[%s13794_s3 + $0x5d8] ss:$12 sps:$4 sm:$0xff]  }
 0x1fb   :  { %9359 = vmatprep.subr.bf16.mxu1 %v10150_v37  ;;  %v10210_v7 = vld [vmem:[%s13794_s3 + $0x46c] ss:$12 sps:$4 sm:$0xff]   ;;  %v10211_v37 = vld [vmem:[%s13794_s3 + $0x6b0] ss:$12 sps:$4 sm:$0xff]  }
 0x1fd   :  { %3417 = vmatpush1.bf16.msra.mxu0 %v10147_v41  ;;  %v10208_v41 = vld [vmem:[%s13794_s3 + $0x468] ss:$12 sps:$4 sm:$0xff]  }
 0x1fe   :  { %9360 = vmatpush3.bf16.msra.mxu1 %v10151_v29  ;;  %3418 = vmatprep.subr.bf16.mxu0 %v10154_v24  ;;  %v10212_v29 = vld [vmem:[%s13794_s3 + $0x5f0] ss:$12 sps:$4 sm:$0xff]  }
 0x1ff   :  { %9361 = vmatprep.subr.bf16.mxu1 %v10155_v19  ;;  %v10215_v24 = vld [vmem:[%s13794_s3 + $0x484] ss:$12 sps:$4 sm:$0xff]   ;;  %v10216_v19 = vld [vmem:[%s13794_s3 + $0x6c8] ss:$12 sps:$4 sm:$0xff]  }
 0x201   :  { %3419 = vmatpush1.bf16.msra.mxu0 %v10152_v32  ;;  %v10213_v32 = vld [vmem:[%s13794_s3 + $0x480] ss:$12 sps:$4 sm:$0xff]  }
 0x202   :  { %9362 = vmatpush3.bf16.msra.mxu1 %v10156_v42  ;;  %3439 = vmatprep.subr.bf16.mxu0 %v10159_v3  ;;  %v10217_v42 = vld [vmem:[%s13794_s3 + $0x608] ss:$12 sps:$4 sm:$0xff]  }
 0x203   :  { %9363 = vmatprep.subr.bf16.mxu1 %v10160_v30  ;;  %v10220_v3 = vld [vmem:[%s13794_s3 + $0x49c] ss:$12 sps:$4 sm:$0xff]   ;;  %v10221_v30 = vld [vmem:[%s13794_s3 + $0x6e0] ss:$12 sps:$4 sm:$0xff]  }
 0x204   :  { %3421 = vmatmul.mubr.bf16.vlgmr.msra.gmra.mrb[40].mxu0 %v11881_v17  ;;  %v10170_v17 = vld [vmem:[%s13794_s3 + $0x518] ss:$12 sps:$4 sm:$0xff]  }
 0x205   :  { %3430 = vmatprep.mubr.bf16.mxu0 %v12117_v62  ;;  %3440 = vmatpush1.bf16.msra.mxu0 %v10157_v39  ;;  %v10183_v62 = vld [vmem:[%s13794_s3 + $0x3dc] ss:$12 sps:$4 sm:$0xff]   ;;  %v10218_v39 = vld [vmem:[%s13794_s3 + $0x498] ss:$12 sps:$4 sm:$0xff]  }
 0x206   :  { %9364 = vmatpush3.bf16.msra.mxu1 %v10161_v46  ;;  %3441 = vmatprep.subr.bf16.mxu0 %v10164_v53  ;;  %v10222_v46 = vld [vmem:[%s13794_s3 + $0x620] ss:$12 sps:$4 sm:$0xff]  }
 0x207   :  { %9365 = vmatprep.subr.bf16.mxu1 %v10165_v63  ;;  %v10225_v53 = vld [vmem:[%s13794_s3 + $0x4b4] ss:$12 sps:$4 sm:$0xff]   ;;  %v10226_v63 = vld [vmem:[%s13794_s3 + $0x6f8] ss:$12 sps:$4 sm:$0xff]  }
 0x209   :  { %3442 = vmatpush1.bf16.msra.mxu0 %v10162_v61  ;;  %v10223_v61 = vld [vmem:[%s13794_s3 + $0x4b0] ss:$12 sps:$4 sm:$0xff]  }
 0x20a   :  { %9366 = vmatpush3.bf16.msra.mxu1 %v10166_v12  ;;  %3443 = vmatprep.subr.bf16.mxu0 %v10169_v54  ;;  %v10227_v12 = vld [vmem:[%s13794_s3 + $0x638] ss:$12 sps:$4 sm:$0xff]  }
 0x20b   :  { %9367 = vmatprep.subr.bf16.mxu1 %v10170_v17  ;;  %v10230_v54 = vld [vmem:[%s13794_s3 + $0x4cc] ss:$12 sps:$4 sm:$0xff]   ;;  %v10231_v17 = vld [vmem:[%s13794_s3 + $0x710] ss:$12 sps:$4 sm:$0xff]  }
 0x20c   :  { %3431 = vmatmul.mubr.bf16.gmra.mrb[52].mxu0 %v12138_v4  ;;  %v10191_v4 = vld [vmem:[%s13794_s3 + $0x40c] ss:$12 sps:$4 sm:$0xff]  }
 0x20d   :  { %3444 = vmatpush1.bf16.msra.mxu0 %v10167_v11  ;;  %3471 = vmatprep.mubr.bf16.mxu0 %v10819_v8  ;;  %v10228_v11 = vld [vmem:[%s13794_s3 + $0x4c8] ss:$12 sps:$4 sm:$0xff]  }
 0x20e   :  { %9368 = vmatpush3.bf16.msra.mxu1 %v10171_v58  ;;  %3445 = vmatprep.subr.bf16.mxu0 %v10174_v2  ;;  %v10232_v58 = vld [vmem:[%s13794_s3 + $0x650] ss:$12 sps:$4 sm:$0xff]  }
 0x20f   :  { %9369 = vmatprep.subr.bf16.mxu1 %v10175_v59  ;;  %v10235_v2 = vld [vmem:[%s13794_s3 + $0x4e4] ss:$12 sps:$4 sm:$0xff]   ;;  %v10236_v59 = vld [vmem:[%s13794_s3 + $0x728] ss:$12 sps:$4 sm:$0xff]  }
 0x211   :  { %3446 = vmatpush1.bf16.msra.mxu0 %v10172_v1  ;;  %v10233_v1 = vld [vmem:[%s13794_s3 + $0x4e0] ss:$12 sps:$4 sm:$0xff]  }
 0x212   :  { %9370 = vmatpush3.bf16.msra.mxu1 %v10176_v31  ;;  %4037 = vmatprep.subr.bf16.mxu0 %v10179_v51  ;;  %v10239_v31 = vld [vmem:[%s13794_s3 + $0x4fc] ss:$12 sps:$4 sm:$0xff]   ;;  %v10240_v51 = vld [vmem:[%s13794_s3 + $0x740] ss:$12 sps:$4 sm:$0xff]  }
 0x213   :  { %9661 = vmatprep.subr.bf16.mxu1 %v10180_v38 }
 0x214   :  { %8352 = vmatmul.mubr.msk.bf16.vlgmr.msra.gmra.mrb[40].mxu0 %vm2857_vm9, %v11916_v14  ;;  %v10185_v14 = vld [vmem:[%s13794_s3 + $0x3f0] ss:$12 sps:$4 sm:$0xff]  }
 0x215   :  { %4172 = vmatmul.mubr.bf16.vlgmr.msra.gmra.mrb[120].mxu1 %v11940_v49  ;;  %4038 = vmatpush1.bf16.msra.mxu0 %v10177_v55  ;;  %v10237_v55 = vld [vmem:[%s13794_s3 + $0x4f8] ss:$12 sps:$4 sm:$0xff]  }
 0x216   :  { %4179 = vmatprep.mubr.bf16.mxu1 %v12278_v50  ;;  %9662 = vmatpush3.bf16.msra.mxu1 %v10180_v38  ;;  %v12434_v38 = vpack.c.bf16 %v11902_v48, %v11902_v48  ;;  %v10244_v48 = vld [vmem:[%s13794_s3 + $0x758] ss:$12 sps:$4 sm:$0xff]  }
 0x217   :  { %4039 = vmatprep.subr.bf16.mxu0 %v10183_v62  ;;  %9663 = vmatprep.subr.bf16.mxu1 %v10184_v43  ;;  %v10243_v62 = vld [vmem:[%s13794_s3 + $0x514] ss:$12 sps:$4 sm:$0xff]  }
 0x218   :  { %3481 = vmatprep.mubr.bf16.mxu0 %v10819_v8 }
 0x219   :  { %4040 = vmatpush1.bf16.msra.mxu0 %v10181_v22  ;;  %v12452_v22 = vpack.c.bf16 %v11876_v9, %v11876_v9  ;;  %v10251_v9 = vld [vmem:[%s13794_s3 + $0x544] ss:$12 sps:$4 sm:$0xff]  }
 0x21a   :  { %9664 = vmatpush3.bf16.msra.mxu1 %v10184_v43  ;;  %4041 = vmatprep.subr.bf16.mxu0 %v10187_v5  ;;  %v10241_v43 = vld [vmem:[%s13794_s3 + $0x510] ss:$12 sps:$4 sm:$0xff]   ;;  %v10247_v5 = vld [vmem:[%s13794_s3 + $0x52c] ss:$12 sps:$4 sm:$0xff]  }
 0x21b   :  { %9665 = vmatprep.subr.bf16.mxu1 %v10188_v16 }
 0x21c   :  { %8353 = vmatmul.mubr.msk.bf16.gmra.mrb[56].mxu0 %vm2857_vm9, %v12166_v56  ;;  %v10198_v56 = vld [vmem:[%s13794_s3 + $0x438] ss:$12 sps:$4 sm:$0xff]  }
 0x21d   :  { %4180 = vmatmul.mubr.bf16.gmra.mrb[124].mxu1 %v12297_v20  ;;  %4042 = vmatpush1.bf16.msra.mxu0 %v10185_v14  ;;  %v10245_v14 = vld [vmem:[%s13794_s3 + $0x528] ss:$12 sps:$4 sm:$0xff]  }
 0x21e   :  { %4069 = vmatprep.mubr.bf16.mxu0 %v11932_v34  ;;  %9666 = vmatpush3.bf16.msra.mxu1 %v10188_v16  ;;  %v10197_v34 = vld [vmem:[%s13794_s3 + $0x5a8] ss:$12 sps:$4 sm:$0xff]   ;;  %v10248_v16 = vld [vmem:[%s13794_s3 + $0x770] ss:$12 sps:$4 sm:$0xff]  }
 0x21f   :  { %9669 = vmatprep.mubr.msk.bf16.mxu1 %vm2857_vm9, %v11952_v28  ;;  %4043 = vmatprep.subr.bf16.mxu0 %v10191_v4  ;;  %v10249_v4 = vld [vmem:[%s13794_s3 + $0x540] ss:$12 sps:$4 sm:$0xff]  }
 0x220   :  { %9667 = vmatprep.subr.bf16.mxu1 %v10192_v15 }
 0x221   :  { %4044 = vmatpush1.bf16.msra.mxu0 %v10189_v25  ;;  %v10254_v25 = vld [vmem:[%s13794_s3 + $0x55c] ss:$12 sps:$4 sm:$0xff]  }
 0x222   :  { %9668 = vmatpush3.bf16.msra.mxu1 %v10192_v15  ;;  %4045 = vmatprep.subr.bf16.mxu0 %v10195_v44  ;;  %v12474_v15 = vpack.c.bf16 %v11872_v0, %v11872_v0  ;;  %v10252_v44 = vld [vmem:[%s13794_s3 + $0x558] ss:$12 sps:$4 sm:$0xff]   ;;  %v10257_v0 = vld [vmem:[%s13794_s3 + $0x574] ss:$12 sps:$4 sm:$0xff]  }
 0x223   :  { %9389 = vmatprep.subr.bf16.mxu1 %v10196_v6  ;;  %v10258_v6 = vld [vmem:[%s13794_s3 + $0x588] ss:$12 sps:$4 sm:$0xff]  }
 0x225   :  { %9670 = vmatmul.mubr.msk.bf16.vlgmr.msra.gmra.mrb[128].mxu1 %vm2857_vm9, %v12328_v36  ;;  %4046 = vmatpush1.bf16.msra.mxu0 %v10193_v45  ;;  %v10263_v45 = vld [vmem:[%s13794_s3 + $0x5a4] ss:$12 sps:$4 sm:$0xff]  }
 0x226   :  { %9390 = vmatpush3.bf16.msra.mxu1 %v10197_v34  ;;  %4821 = vmatprep.mubr.bf16.mxu1 %v11971_v33  ;;  %v10261_v34 = vld [vmem:[%s13794_s3 + $0x5a0] ss:$12 sps:$4 sm:$0xff]  }
 0x227   :  { %4047 = vmatprep.subr.bf16.mxu0 %v10200_v47  ;;  %9391 = vmatprep.subr.bf16.mxu1 %v10201_v60  ;;  %v10264_v47 = vld [vmem:[%s13794_s3 + $0x5b8] ss:$12 sps:$4 sm:$0xff]   ;;  %v10269_v60 = vld [vmem:[%s13794_s3 + $0x5d4] ss:$12 sps:$4 sm:$0xff]  }
 0x229   :  { %4048 = vmatpush1.bf16.msra.mxu0 %v10198_v56  ;;  %v10267_v56 = vld [vmem:[%s13794_s3 + $0x5d0] ss:$12 sps:$4 sm:$0xff]  }
 0x22a   :  { %9392 = vmatpush3.bf16.msra.mxu1 %v10202_v57  ;;  %4049 = vmatprep.subr.bf16.mxu0 %v10205_v23  ;;  %v10270_v57 = vld [vmem:[%s13794_s3 + $0x5e8] ss:$12 sps:$4 sm:$0xff]   ;;  %v10275_v23 = vld [vmem:[%s13794_s3 + $0x604] ss:$12 sps:$4 sm:$0xff]  }
 0x22b   :  { %9393 = vmatprep.subr.bf16.mxu1 %v10206_v10  ;;  %v10273_v10 = vld [vmem:[%s13794_s3 + $0x600] ss:$12 sps:$4 sm:$0xff]  }
 0x22d   :  { %4050 = vmatpush1.bf16.msra.mxu0 %v10203_v35  ;;  %v10281_v35 = vld [vmem:[%s13794_s3 + $0x634] ss:$12 sps:$4 sm:$0xff]  }
 0x22e   :  { %9394 = vmatpush3.bf16.msra.mxu1 %v10207_v18  ;;  %4051 = vmatprep.subr.bf16.mxu0 %v10210_v7  ;;  %v10279_v18 = vld [vmem:[%s13794_s3 + $0x630] ss:$12 sps:$4 sm:$0xff]   ;;  %v10284_v7 = vld [vmem:[%s13794_s3 + $0x64c] ss:$12 sps:$4 sm:$0xff]  }
 0x22f   :  { %9395 = vmatprep.subr.bf16.mxu1 %v10211_v37  ;;  %v10282_v37 = vld [vmem:[%s13794_s3 + $0x648] ss:$12 sps:$4 sm:$0xff]  }
 0x231   :  { %4052 = vmatpush1.bf16.msra.mxu0 %v10208_v41  ;;  %v10287_v41 = vld [vmem:[%s13794_s3 + $0x664] ss:$12 sps:$4 sm:$0xff]  }
 0x232   :  { %9396 = vmatpush3.bf16.msra.mxu1 %v10212_v29  ;;  %4053 = vmatprep.subr.bf16.mxu0 %v10215_v24  ;;  %v10285_v29 = vld [vmem:[%s13794_s3 + $0x660] ss:$12 sps:$4 sm:$0xff]   ;;  %v10290_v24 = vld [vmem:[%s13794_s3 + $0x67c] ss:$12 sps:$4 sm:$0xff]  }
 0x233   :  { %9397 = vmatprep.subr.bf16.mxu1 %v10216_v19  ;;  %v10288_v19 = vld [vmem:[%s13794_s3 + $0x678] ss:$12 sps:$4 sm:$0xff]  }
 0x235   :  { %4054 = vmatpush1.bf16.msra.mxu0 %v10213_v32 }
 0x236   :  { %9398 = vmatpush3.bf16.msra.mxu1 %v10217_v42  ;;  %4055 = vmatprep.subr.bf16.mxu0 %v10220_v3  ;;  %v10293_v42 = vld [vmem:[%s13794_s3 + $0x694] ss:$12 sps:$4 sm:$0xff]  }
 0x237   :  { %9399 = vmatprep.subr.bf16.mxu1 %v10221_v30 }
 0x239   :  { %4056 = vmatpush1.bf16.msra.mxu0 %v10218_v39 }
 0x23a   :  { %9400 = vmatpush3.bf16.msra.mxu1 %v10222_v46  ;;  %4057 = vmatprep.subr.bf16.mxu0 %v10225_v53  ;;  %v10291_v53 = vld [vmem:[%s13794_s3 + $0x690] ss:$12 sps:$4 sm:$0xff]  }
 0x23b   :  { %9401 = vmatprep.subr.bf16.mxu1 %v10226_v63 }
 0x23d   :  { %4058 = vmatpush1.bf16.msra.mxu0 %v10223_v61  ;;  %v10296_v61 = vld [vmem:[%s13794_s3 + $0x6ac] ss:$12 sps:$4 sm:$0xff]  }
 0x23e   :  { %9402 = vmatpush3.bf16.msra.mxu1 %v10227_v12  ;;  %4059 = vmatprep.subr.bf16.mxu0 %v10230_v54  ;;  %v10294_v12 = vld [vmem:[%s13794_s3 + $0x6a8] ss:$12 sps:$4 sm:$0xff]  }
 0x23f   :  { %9403 = vmatprep.subr.bf16.mxu1 %v10231_v17 }
 0x241   :  { %4060 = vmatpush1.bf16.msra.mxu0 %v10228_v11  ;;  %v10299_v11 = vld [vmem:[%s13794_s3 + $0x6c4] ss:$12 sps:$4 sm:$0xff]  }
 0x242   :  { %9404 = vmatpush3.bf16.msra.mxu1 %v10232_v58  ;;  %4061 = vmatprep.subr.bf16.mxu0 %v10235_v2 }
 0x243   :  { %9673 = vmatprep.subr.bf16.mxu1 %v10236_v59 }
 0x245   :  { %4822 = vmatmul.mubr.bf16.vlgmr.msra.gmra.mrb[132].mxu1 %v11973_v52  ;;  %4062 = vmatpush1.bf16.msra.mxu0 %v10233_v1 }
 0x246   :  { %4829 = vmatprep.mubr.bf16.mxu1 %v12434_v38  ;;  %9674 = vmatpush3.bf16.msra.mxu1 %v10236_v59 }
 0x247   :  { %4063 = vmatprep.subr.bf16.mxu0 %v10239_v31  ;;  %9675 = vmatprep.subr.bf16.mxu1 %v10240_v51 }
 0x249   :  { %4064 = vmatpush1.bf16.msra.mxu0 %v10237_v55 }
 0x24a   :  { %9676 = vmatpush3.bf16.msra.mxu1 %v10240_v51  ;;  %4065 = vmatprep.subr.bf16.mxu0 %v10243_v62  ;;  %v10297_v62 = vld [vmem:[%s13794_s3 + $0x6c0] ss:$12 sps:$4 sm:$0xff]  }
 0x24b   :  { %9677 = vmatprep.subr.bf16.mxu1 %v10244_v48 }
 0x24d   :  { %4830 = vmatmul.mubr.bf16.gmra.mrb[136].mxu1 %v12452_v22  ;;  %4066 = vmatpush1.bf16.msra.mxu0 %v10241_v43  ;;  %v10300_v43 = vld [vmem:[%s13794_s3 + $0x6d8] ss:$12 sps:$4 sm:$0xff]  }
 0x24e   :  { %9678 = vmatpush3.bf16.msra.mxu1 %v10244_v48  ;;  %9681 = vmatprep.mubr.msk.bf16.mxu1 %vm2857_vm9, %v11982_v40  ;;  %v10302_v48 = vld [vmem:[%s13794_s3 + $0x6dc] ss:$12 sps:$4 sm:$0xff]  }
 0x24f   :  { %4067 = vmatprep.subr.bf16.mxu0 %v10247_v5  ;;  %9679 = vmatprep.subr.bf16.mxu1 %v10248_v16 }
 0x251   :  { %4068 = vmatpush1.bf16.msra.mxu0 %v10245_v14 }
 0x252   :  { %9680 = vmatpush3.bf16.msra.mxu1 %v10248_v16  ;;  %4088 = vmatprep.subr.bf16.mxu0 %v10251_v9  ;;  %v10305_v16 = vld [vmem:[%s13794_s3 + $0x6f4] ss:$12 sps:$4 sm:$0xff]  }
 0x254   :  { %4070 = vmatmul.mubr.bf16.vlgmr.msra.gmra.mrb[40].mxu0 %v11940_v49  ;;  %v10255_v49 = vld [vmem:[%s13794_s3 + $0x570] ss:$12 sps:$4 sm:$0xff]  }
 0x255   :  { %9682 = vmatmul.mubr.msk.bf16.vlgmr.msra.gmra.mrb[140].mxu1 %vm2857_vm9, %v12474_v15  ;;  %4079 = vmatprep.mubr.bf16.mxu0 %v12278_v50  ;;  %v10260_v50 = vld [vmem:[%s13794_s3 + $0x58c] ss:$12 sps:$4 sm:$0xff]  }
 0x256   :  { %4089 = vmatpush1.bf16.msra.mxu0 %v10249_v4 }
 0x257   :  { %4090 = vmatprep.subr.bf16.mxu0 %v10254_v25 }
 0x25a   :  { %4091 = vmatpush1.bf16.msra.mxu0 %v10252_v44 }
 0x25b   :  { %4092 = vmatprep.subr.bf16.mxu0 %v10257_v0  ;;  %v10303_v0 = vld [vmem:[%s13794_s3 + $0x6f0] ss:$12 sps:$4 sm:$0xff]  }
 0x25c   :  { %4080 = vmatmul.mubr.bf16.gmra.mrb[60].mxu0 %v12297_v20  ;;  %v10266_v20 = vld [vmem:[%s13794_s3 + $0x5bc] ss:$12 sps:$4 sm:$0xff]  }
 0x25d   :  { %4120 = vmatprep.mubr.bf16.mxu0 %v10819_v8 }
 0x25e   :  { %4093 = vmatpush1.bf16.msra.mxu0 %v10255_v49 }
 0x25f   :  { %4094 = vmatprep.subr.bf16.mxu0 %v10260_v50  ;;  %v10308_v50 = vld [vmem:[%s13794_s3 + $0x70c] ss:$12 sps:$4 sm:$0xff]  }
 0x262   :  { %4095 = vmatpush1.bf16.msra.mxu0 %v10258_v6  ;;  %v10306_v6 = vld [vmem:[%s13794_s3 + $0x708] ss:$12 sps:$4 sm:$0xff]  }
 0x263   :  { %4687 = vmatprep.subr.bf16.mxu0 %v10263_v45 }
 0x265   :  { %8496 = vmatmul.mubr.msk.bf16.vlgmr.msra.gmra.mrb[40].mxu0 %vm2857_vm9, %v11952_v28  ;;  %v10272_v28 = vld [vmem:[%s13794_s3 + $0x5ec] ss:$12 sps:$4 sm:$0xff]  }
 0x266   :  { %4688 = vmatpush1.bf16.msra.mxu0 %v10261_v34  ;;  %4130 = vmatprep.mubr.bf16.mxu0 %v10819_v8  ;;  %v10311_v34 = vld [vmem:[%s13794_s3 + $0x724] ss:$12 sps:$4 sm:$0xff]  }
 0x267   :  { %4689 = vmatprep.subr.bf16.mxu0 %v10266_v20 }
 0x26a   :  { %4690 = vmatpush1.bf16.msra.mxu0 %v10264_v47 }
 0x26b   :  { %4691 = vmatprep.subr.bf16.mxu0 %v10269_v60 }
 0x26d   :  { %8497 = vmatmul.mubr.msk.bf16.gmra.mrb[64].mxu0 %vm2857_vm9, %v12328_v36  ;;  %v10278_v36 = vld [vmem:[%s13794_s3 + $0x61c] ss:$12 sps:$4 sm:$0xff]  }
 0x26e   :  { %4692 = vmatpush1.bf16.msra.mxu0 %v10267_v56  ;;  %4719 = vmatprep.mubr.bf16.mxu0 %v11971_v33  ;;  %v10276_v33 = vld [vmem:[%s13794_s3 + $0x618] ss:$12 sps:$4 sm:$0xff]  }
 0x26f   :  { %4693 = vmatprep.subr.bf16.mxu0 %v10272_v28 }
 0x272   :  { %4694 = vmatpush1.bf16.msra.mxu0 %v10270_v57  ;;  %v10309_v57 = vld [vmem:[%s13794_s3 + $0x720] ss:$12 sps:$4 sm:$0xff]  }
 0x273   :  { %4695 = vmatprep.subr.bf16.mxu0 %v10275_v23  ;;  %v10314_v23 = vld [vmem:[%s13794_s3 + $0x73c] ss:$12 sps:$4 sm:$0xff]  }
 0x276   :  { %4696 = vmatpush1.bf16.msra.mxu0 %v10273_v10  ;;  %v10312_v10 = vld [vmem:[%s13794_s3 + $0x738] ss:$12 sps:$4 sm:$0xff]  }
 0x277   :  { %4697 = vmatprep.subr.bf16.mxu0 %v10278_v36  ;;  %v10317_v36 = vld [vmem:[%s13794_s3 + $0x754] ss:$12 sps:$4 sm:$0xff]  }
 0x27a   :  { %4698 = vmatpush1.bf16.msra.mxu0 %v10276_v33  ;;  %v10315_v33 = vld [vmem:[%s13794_s3 + $0x750] ss:$12 sps:$4 sm:$0xff]  }
 0x27b   :  { %4699 = vmatprep.subr.bf16.mxu0 %v10281_v35 }
 0x27e   :  { %4700 = vmatpush1.bf16.msra.mxu0 %v10279_v18 }
 0x27f   :  { %4701 = vmatprep.subr.bf16.mxu0 %v10284_v7 }
 0x282   :  { %4702 = vmatpush1.bf16.msra.mxu0 %v10282_v37 }
 0x283   :  { %4703 = vmatprep.subr.bf16.mxu0 %v10287_v41 }
 0x286   :  { %4704 = vmatpush1.bf16.msra.mxu0 %v10285_v29 }
 0x287   :  { %v9303_v32 = vpop.f32.mrb[96].mxu1  ;;  %4705 = vmatprep.subr.bf16.mxu0 %v10290_v24 }
 0x288   :  { %v9304_v3 = vpop.f32.mrb[97].mxu1 }
 0x289   :  { %v9305_v30 = vadd.f32 %v9304_v3, %v9303_v32  ;;  %v9306_v39 = vpop.f32.mrb[98].mxu1 }
 0x28a   :  { %4706 = vmatpush1.bf16.msra.mxu0 %v10288_v19  ;;  %v9307_v46 = vpop.f32.mrb[99].mxu1 }
 0x28b   :  { %v9308_v63 = vadd.f32 %v9307_v46, %v9306_v39  ;;  %4707 = vmatprep.subr.bf16.mxu0 %v10293_v42  ;;  %v10323_v46 = vld [vmem:[%s13796_s5 + $0x124] ss:$8 sps:$4 sm:$0xff]  }
 0x28c   :  { %5234 = vmatprep.subr.bf16.mxu1 %v10323_v46  ;;  %v10351_v46 = vld [vmem:[%s13796_s5 + $0x1c0] ss:$8 sps:$4 sm:$0xff]  }
 0x28e   :  { %4708 = vmatpush1.bf16.msra.mxu0 %v10291_v53  ;;  %v10326_v53 = vld [vmem:[%s13796_s5 + $0x134] ss:$8 sps:$4 sm:$0xff]  }
 0x28f   :  { %v2908_v54 = vpop.f32.mrb[44].mxu0  ;;  %v9309_v17 = vpop.f32.mrb[100].mxu1  ;;  %4709 = vmatprep.subr.bf16.mxu0 %v10296_v61  ;;  %v10329_v61 = vld [vmem:[%s13796_s5 + $0x144] ss:$8 sps:$4 sm:$0xff]  }
 0x290   :  { %v2910_v58 = vpop.f32.mrb[45].mxu0  ;;  %v9310_v2 = vpop.f32.mrb[101].mxu1 }
 0x291   :  { %v9311_v59 = vadd.f32 %v9310_v2, %v9309_v17  ;;  %v2912_v1 = vpop.f32.mrb[46].mxu0  ;;  %v9312_v31 = vpop.f32.mrb[102].mxu1  ;;  %v10327_v2 = vld [vmem:[%s13796_s5 + $0x140] ss:$8 sps:$4 sm:$0xff]  }
 0x292   :  { %4710 = vmatpush1.bf16.msra.mxu0 %v10294_v12  ;;  %v2913_v51 = vpop.f32.mrb[47].mxu0  ;;  %v9313_v55 = vpop.f32.mrb[103].mxu1  ;;  %v10332_v1 = vld [vmem:[%s13796_s5 + $0x154] ss:$8 sps:$4 sm:$0xff]   ;;  %v10330_v31 = vld [vmem:[%s13796_s5 + $0x150] ss:$8 sps:$4 sm:$0xff]  }
 0x293   :  { %4711 = vmatprep.subr.bf16.mxu0 %v10299_v11  ;;  %v10335_v51 = vld [vmem:[%s13796_s5 + $0x164] ss:$8 sps:$4 sm:$0xff]   ;;  %v10333_v55 = vld [vmem:[%s13796_s5 + $0x160] ss:$8 sps:$4 sm:$0xff]  }
 0x296   :  { %4712 = vmatpush1.bf16.msra.mxu0 %v10297_v62  ;;  %v10338_v62 = vld [vmem:[%s13796_s5 + $0x174] ss:$8 sps:$4 sm:$0xff]  }
 0x297   :  { %v9647_v5 = vpop.f32.mrb[104].mxu1  ;;  %4713 = vmatprep.subr.bf16.mxu0 %v10302_v48  ;;  %v10336_v48 = vld [vmem:[%s13796_s5 + $0x170] ss:$8 sps:$4 sm:$0xff]  }
 0x298   :  { %v3057_v14 = vadd.f32 %v9647_v5, %v9311_v59  ;;  %v3048_v9 = vpop.f32.mrb[105].mxu1  ;;  %v10339_v5 = vld [vmem:[%s13796_s5 + $0x180] ss:$8 sps:$4 sm:$0xff]  }
 0x299   :  { %v3049_v4 = vadd.f32 %v9305_v30, %v3048_v9  ;;  %v9648_v25 = vpop.f32.mrb[106].mxu1  ;;  %v10342_v9 = vld [vmem:[%s13796_s5 + $0x190] ss:$8 sps:$4 sm:$0xff]  }
 0x29a   :  { %4714 = vmatpush1.bf16.msra.mxu0 %v10300_v43  ;;  %v3051_v44 = vpop.f32.mrb[107].mxu1  ;;  %v10341_v43 = vld [vmem:[%s13796_s5 + $0x184] ss:$8 sps:$4 sm:$0xff]  }
 0x29b   :  { %v3052_v49 = vadd.f32 %v9308_v63, %v3051_v44  ;;  %4715 = vmatprep.subr.bf16.mxu0 %v10305_v16  ;;  %v10344_v16 = vld [vmem:[%s13796_s5 + $0x194] ss:$8 sps:$4 sm:$0xff]  }
 0x29e   :  { %4716 = vmatpush1.bf16.msra.mxu0 %v10303_v0 }
 0x29f   :  { %v2959_v45 = vpop.f32.mrb[48].mxu0  ;;  %4717 = vmatprep.subr.bf16.mxu0 %v10308_v50 }
 0x2a0   :  { %v12605_v20 = vadd.f32 %v2959_v45, %v2908_v54  ;;  %v2961_v47 = vpop.f32.mrb[49].mxu0 }
 0x2a1   :  { %v12607_v60 = vadd.f32 %v2961_v47, %v2910_v58  ;;  %v2963_v56 = vpop.f32.mrb[50].mxu0 }
 0x2a2   :  { %4718 = vmatpush1.bf16.msra.mxu0 %v10306_v6  ;;  %v2964_v28 = vpop.f32.mrb[51].mxu0 }
 0x2a3   :  { %4738 = vmatprep.subr.bf16.mxu0 %v10311_v34 }
 0x2a5   :  { %4720 = vmatmul.mubr.bf16.vlgmr.msra.gmra.mrb[40].mxu0 %v11973_v52  ;;  %v10320_v52 = vld [vmem:[%s13794_s3 + $0x76c] ss:$12 sps:$4 sm:$0xff]  }
 0x2a6   :  { %4729 = vmatprep.mubr.bf16.mxu0 %v12434_v38  ;;  %4739 = vmatpush1.bf16.msra.mxu0 %v10309_v57  ;;  %v10318_v38 = vld [vmem:[%s13794_s3 + $0x768] ss:$12 sps:$4 sm:$0xff]  }
 0x2a7   :  { %4740 = vmatprep.subr.bf16.mxu0 %v10314_v23 }
 0x2aa   :  { %4741 = vmatpush1.bf16.msra.mxu0 %v10312_v10 }
 0x2ab   :  { %4742 = vmatprep.subr.bf16.mxu0 %v10317_v36 }
 0x2ad   :  { %4730 = vmatmul.mubr.bf16.gmra.mrb[68].mxu0 %v12452_v22 }
 0x2ae   :  { %4743 = vmatpush1.bf16.msra.mxu0 %v10315_v33  ;;  %4770 = vmatprep.mubr.bf16.mxu0 %v10819_v8 }
 0x2af   :  { %4744 = vmatprep.subr.bf16.mxu0 %v10320_v52 }
 0x2b2   :  { %4745 = vmatpush1.bf16.msra.mxu0 %v10318_v38 }
 0x2b5   :  { %8640 = vmatmul.mubr.msk.bf16.vlgmr.msra.gmra.mrb[40].mxu0 %vm2857_vm9, %v11982_v40  ;;  %v10321_v40 = vld [vmem:[%s13796_s5 + $0x120] ss:$8 sps:$4 sm:$0xff]  }
 0x2b6   :  { %4780 = vmatprep.mubr.bf16.mxu0 %v10819_v8  ;;  %5235 = vmatpush1.bf16.msra.mxu1 %v10321_v40  ;;  %v10350_v40 = vld [vmem:[%s13796_s5 + $0x1b4] ss:$8 sps:$4 sm:$0xff]  }
 0x2b7   :  { %v9337_v35 = vpop.f32.mrb[108].mxu1  ;;  %5236 = vmatprep.subr.bf16.mxu1 %v10326_v53  ;;  %v10353_v53 = vld [vmem:[%s13796_s5 + $0x1c4] ss:$8 sps:$4 sm:$0xff]  }
 0x2b8   :  { %v9338_v18 = vpop.f32.mrb[109].mxu1 }
 0x2b9   :  { %v9339_v7 = vadd.f32 %v9338_v18, %v9337_v35  ;;  %v9340_v37 = vpop.f32.mrb[110].mxu1 }
 0x2ba   :  { %v9341_v41 = vpop.f32.mrb[111].mxu1 }
 0x2bb   :  { %v9342_v22 = vadd.f32 %v9341_v41, %v9340_v37  ;;  %v3525_v29 = vadd.f32 %v9339_v7, %v3049_v4 }
 0x2bd   :  { %8641 = vmatmul.mubr.msk.bf16.gmra.mrb[72].mxu0 %vm2857_vm9, %v12474_v15  ;;  %v3528_v24 = vadd.f32 %v9342_v22, %v3052_v49  ;;  %v10324_v15 = vld [vmem:[%s13796_s5 + $0x130] ss:$8 sps:$4 sm:$0xff]  }
 0x2be   :  { %5237 = vmatpush1.bf16.msra.mxu1 %v10324_v15  ;;  %v10354_v15 = vld [vmem:[%s13796_s5 + $0x1d0] ss:$8 sps:$4 sm:$0xff]  }
 0x2bf   :  { %v9343_v19 = vpop.f32.mrb[112].mxu1  ;;  %5238 = vmatprep.subr.bf16.mxu1 %v10329_v61 }
 0x2c0   :  { %v9344_v32 = vpop.f32.mrb[113].mxu1 }
 0x2c1   :  { %v9345_v42 = vadd.f32 %v9344_v32, %v9343_v19  ;;  %v9346_v3 = vpop.f32.mrb[114].mxu1 }
 0x2c2   :  { %v9347_v30 = vpop.f32.mrb[115].mxu1  ;;  %5239 = vmatpush1.bf16.msra.mxu1 %v10327_v2  ;;  %v10345_v3 = vld [vmem:[%s13796_s5 + $0x1a0] ss:$8 sps:$4 sm:$0xff]   ;;  %v10362_v2 = vld [vmem:[%s13796_s5 + $0x1f4] ss:$8 sps:$4 sm:$0xff]  }
 0x2c3   :  { %v3533_v39 = vadd.f32 %v9345_v42, %v3057_v14  ;;  %5240 = vmatprep.subr.bf16.mxu1 %v10332_v1  ;;  %v10347_v30 = vld [vmem:[%s13796_s5 + $0x1a4] ss:$8 sps:$4 sm:$0xff]  }
 0x2c6   :  { %5241 = vmatpush1.bf16.msra.mxu1 %v10330_v31  ;;  %v10360_v31 = vld [vmem:[%s13796_s5 + $0x1f0] ss:$8 sps:$4 sm:$0xff]  }
 0x2c7   :  { %5242 = vmatprep.subr.bf16.mxu1 %v10335_v51  ;;  %v10365_v51 = vld [vmem:[%s13796_s5 + $0x204] ss:$8 sps:$4 sm:$0xff]  }
 0x2c8   :  { %v9659_v63 = vpop.f32.mrb[116].mxu1 }
 0x2c9   :  { %v3581_v12 = vadd.f32 %v9659_v63, %v3533_v39  ;;  %v3572_v54 = vpop.f32.mrb[117].mxu1  ;;  %v10348_v39 = vld [vmem:[%s13796_s5 + $0x1b0] ss:$8 sps:$4 sm:$0xff]   ;;  %v10356_v63 = vld [vmem:[%s13796_s5 + $0x1d4] ss:$8 sps:$4 sm:$0xff]  }
 0x2ca   :  { %v3573_v17 = vadd.f32 %v3572_v54, %v3525_v29  ;;  %v9660_v11 = vpop.f32.mrb[118].mxu1  ;;  %5243 = vmatpush1.bf16.msra.mxu1 %v10333_v55  ;;  %v10357_v54 = vld [vmem:[%s13796_s5 + $0x1e0] ss:$8 sps:$4 sm:$0xff]  }
 0x2cb   :  { %v3575_v58 = vpop.f32.mrb[119].mxu1  ;;  %5244 = vmatprep.subr.bf16.mxu1 %v10338_v62  ;;  %v10363_v62 = vld [vmem:[%s13796_s5 + $0x200] ss:$8 sps:$4 sm:$0xff]  }
 0x2cc   :  { %v3576_v59 = vadd.f32 %v3575_v58, %v3528_v24 }
 0x2ce   :  { %5245 = vmatpush1.bf16.msra.mxu1 %v10336_v48 }
 0x2cf   :  { %5246 = vmatprep.subr.bf16.mxu1 %v10341_v43  ;;  %v10368_v43 = vld [vmem:[%s13796_s5 + $0x214] ss:$8 sps:$4 sm:$0xff]  }
 0x2d2   :  { %5247 = vmatpush1.bf16.msra.mxu1 %v10339_v5 }
 0x2d3   :  { %5248 = vmatprep.subr.bf16.mxu1 %v10344_v16 }
 0x2d6   :  { %5249 = vmatpush1.bf16.msra.mxu1 %v10342_v9  ;;  %v10366_v9 = vld [vmem:[%s13796_s5 + $0x210] ss:$8 sps:$4 sm:$0xff]  }
 0x2d7   :  { %5250 = vmatprep.subr.bf16.mxu1 %v10347_v30 }
 0x2da   :  { %5251 = vmatpush1.bf16.msra.mxu1 %v10345_v3 }
 0x2db   :  { %5252 = vmatprep.subr.bf16.mxu1 %v10350_v40 }
 0x2de   :  { %5253 = vmatpush1.bf16.msra.mxu1 %v10348_v39 }
 0x2df   :  { %v3432_v14 = vpop.f32.mrb[52].mxu0  ;;  %5254 = vmatprep.subr.bf16.mxu1 %v10353_v53 }
 0x2e0   :  { %v3433_v4 = vadd.f32 %v3432_v14, %v12605_v20  ;;  %v3434_v25 = vpop.f32.mrb[53].mxu0 }
 0x2e1   :  { %v3435_v44 = vadd.f32 %v3434_v25, %v12607_v60  ;;  %v3436_v0 = vpop.f32.mrb[54].mxu0  ;;  %v4894_v25 = vld [vmem:[%s13795_s4] sm:$0x7] }
 0x2e2   :  { %v3437_v49 = vpop.f32.mrb[55].mxu0  ;;  %5255 = vmatpush1.bf16.msra.mxu1 %v10351_v46 }
 0x2e3   :  { %5256 = vmatprep.subr.bf16.mxu1 %v10356_v63  ;;  %v4907_v49 = vrot.slane %v4894_v25, %v2262_v26 }
 0x2e6   :  { %5257 = vmatpush1.bf16.msra.mxu1 %v10354_v15 }
 0x2e8   :  { %v9371_v50 = vpop.f32.mrb[120].mxu1 }
 0x2e9   :  { %v9372_v6 = vpop.f32.mrb[121].mxu1 }
 0x2ea   :  { %v9373_v45 = vadd.f32 %v9372_v6, %v9371_v50  ;;  %v9374_v34 = vpop.f32.mrb[122].mxu1 }
 0x2eb   :  { %v9375_v47 = vpop.f32.mrb[123].mxu1 }
 0x2ec   :  { %v9376_v56 = vadd.f32 %v9375_v47, %v9374_v34 }
 0x2ef   :  { %v3483_v28 = vpop.f32.mrb[56].mxu0 }
 0x2f0   :  { %v12689_v57 = vadd.f32 %v3483_v28, %v3433_v4  ;;  %v9377_v23 = vpop.f32.mrb[124].mxu1  ;;  %v3485_v10 = vpop.f32.mrb[57].mxu0  ;;  %v10371_v4 = vld [vmem:[%s13796_s5 + $0x224] ss:$8 sps:$4 sm:$0xff]  }
 0x2f1   :  { %v12691_v36 = vadd.f32 %v3485_v10, %v3435_v44  ;;  %v9378_v20 = vpop.f32.mrb[125].mxu1  ;;  %v3487_v33 = vpop.f32.mrb[58].mxu0 }
 0x2f2   :  { %v9379_v52 = vadd.f32 %v9378_v20, %v9377_v23  ;;  %v9380_v60 = vpop.f32.mrb[126].mxu1  ;;  %v3488_v38 = vpop.f32.mrb[59].mxu0 }
 0x2f3   :  { %v9381_v35 = vpop.f32.mrb[127].mxu1 }
 0x2f8   :  { %v9671_v18 = vpop.f32.mrb[128].mxu1 }
 0x2f9   :  { %v4230_v7 = vadd.f32 %v9671_v18, %v9379_v52  ;;  %v4221_v37 = vpop.f32.mrb[129].mxu1 }
 0x2fa   :  { %v4222_v41 = vadd.f32 %v9373_v45, %v4221_v37  ;;  %v9672_v22 = vpop.f32.mrb[130].mxu1 }
 0x2fb   :  { %v4243_v29 = vadd.f32 %v4230_v7, %v3581_v12  ;;  %v4224_v24 = vpop.f32.mrb[131].mxu1 }
 0x2fc   :  { %v4237_v19 = vadd.f32 %v4222_v41, %v3573_v17  ;;  %v4225_v32 = vadd.f32 %v9376_v56, %v4224_v24  ;;  %v10359_v17 = vld [vmem:[%s13796_s5 + $0x1e4] ss:$8 sps:$4 sm:$0xff]  }
 0x2fd   :  { %5258 = vmatprep.subr.bf16.mxu1 %v10359_v17 }
 0x2fe   :  { %v4240_v42 = vadd.f32 %v4225_v32, %v3576_v59  ;;  %5259 = vmatpush1.bf16.msra.mxu1 %v10357_v54 }
 0x2ff   :  { %5260 = vmatprep.subr.bf16.mxu1 %v10362_v2 }
 0x302   :  { %5261 = vmatpush1.bf16.msra.mxu1 %v10360_v31 }
 0x303   :  { %5262 = vmatprep.subr.bf16.mxu1 %v10365_v51 }
 0x306   :  { %5263 = vmatpush1.bf16.msra.mxu1 %v10363_v62  ;;  %v4903_v62 = vrot.slane %v4894_v25, %v11737_v27 }
 0x307   :  { %5264 = vmatprep.subr.bf16.mxu1 %v10368_v43 }
 0x30a   :  { %5265 = vmatpush1.bf16.msra.mxu1 %v10366_v9 }
 0x30b   :  { %5277 = vmatprep.subr.bf16.mxu1 %v10371_v4 }
 0x318   :  { %v9405_v61 = vpop.f32.mrb[132].mxu1 }
 0x319   :  { %v9406_v12 = vpop.f32.mrb[133].mxu1 }
 0x31a   :  { %v9407_v11 = vadd.f32 %v9406_v12, %v9405_v61  ;;  %v9408_v58 = vpop.f32.mrb[134].mxu1 }
 0x31b   :  { %v9409_v59 = vpop.f32.mrb[135].mxu1 }
 0x31c   :  { %v9410_v1 = vadd.f32 %v9409_v59, %v9408_v58 }
 0x320   :  { %v9411_v55 = vpop.f32.mrb[136].mxu1 }
 0x321   :  { %v9412_v48 = vpop.f32.mrb[137].mxu1 }
 0x322   :  { %v9413_v5 = vadd.f32 %v9412_v48, %v9411_v55  ;;  %v9414_v16 = vpop.f32.mrb[138].mxu1  ;;  %v4899_v55 = vrot.slane %v4894_v25, %v11728_v21 }
 0x323   :  { %v9415_v14 = vpop.f32.mrb[139].mxu1 }
 0x328   :  { %v9683_v44 = vpop.f32.mrb[140].mxu1 }
 0x329   :  { %v4880_v0 = vadd.f32 %v9683_v44, %v9413_v5  ;;  %v4871_v50 = vpop.f32.mrb[141].mxu1 }
 0x32a   :  { %v4872_v6 = vadd.f32 %v9407_v11, %v4871_v50  ;;  %v9684_v45 = vpop.f32.mrb[142].mxu1 }
 0x32b   :  { %v4893_v34 = vadd.f32 %v4880_v0, %v4243_v29  ;;  %v4874_v47 = vpop.f32.mrb[143].mxu1 }
 0x32c   :  { %v4887_v56 = vadd.f32 %v4872_v6, %v4237_v19  ;;  %v4875_v28 = vadd.f32 %v9410_v1, %v4874_v47 }
 0x32d   :  { %v4919_v23 = vadd.f32 %v4907_v49, %v4893_v34 }
 0x32e   :  { %v4913_v10 = vadd.f32 %v4907_v49, %v4887_v56  ;;  %v4890_v20 = vadd.f32 %v4875_v28, %v4240_v42 }
 0x32f   :  { %v4928_v33 = vmax.f32 %v4919_v23, 0.0  ;;  %v4081_v52 = vpop.f32.mrb[60].mxu0 }
 0x330   :  { %v4922_v60 = vmax.f32 %v4913_v10, 0.0  ;;  %v4916_v38 = vadd.f32 %v4907_v49, %v4890_v20  ;;  %v4083_v35 = vpop.f32.mrb[61].mxu0 }
 0x331   :  { %v4085_v18 = vpop.f32.mrb[62].mxu0  ;;  %v4999_v26 = vrot.slane %v4928_v33, 3  ;;  %v5605_v19 = vrot.slane %v4928_v33, 4 }
 0x332   :  { %v4925_v7 = vmax.f32 %v4916_v38, 0.0  ;;  %v4086_v13 = vpop.f32.mrb[63].mxu0  ;;  %v4985_v37 = vrot.slane %v4922_v60, 1  ;;  %v5593_v41 = vrot.slane %v4922_v60, 2 }
 0x334   :  { %v12749_v22 = vrot.slane %v4925_v7, 2  ;;  %v4994_v29 = vrot.slane %v4925_v7, 3  ;;  %v5600_v24 = vrot.slane %v4925_v7, 4 }
 0x336   :  { %v5594_v32 = vsel %vm2412_vm4, %v5593_v41, %v12749_v22  ;;  %v12754_v42 = vsel %vm2303_vm6, %v4994_v29, %v4999_v26  ;;  %v12757_v3 = vsel %vm3589_vm3, %v4985_v37, %v4994_v29  ;;  %v12761_v30 = vsel %vm3589_vm3, %v4922_v60, %v12749_v22 }
 0x337   :  { %v5012_v39 = vpack.c.bf16 %v12754_v42, %v12757_v3  ;;  %v4943_v40 = vpack.c.bf16 %v12749_v22, %v12761_v30  ;;  %v12768_v46 = vsel %vm3605_vm7, %v5600_v24, %v5605_v19  ;;  %v12771_v53 = vsel %vm3589_vm3, %v5594_v32, %v5600_v24  ;;  %v10386_v42 = vld [vmem:[%s13796_s5 + $0x34] ss:$8 sps:$4 sm:$0xff]   ;;  %v10384_v3 = vld [vmem:[%s13796_s5 + $0x30] ss:$8 sps:$4 sm:$0xff]   ;;  %v10435_v22 = vld [vmem:[%s13796_s5 + $0x260] ss:$8 sps:$4 sm:$0xff]  }
 0x338   :  { %v5618_v15 = vpack.c.bf16 %v12768_v46, %v12771_v53  ;;  %v10440_v30 = vld [vmem:[%s13796_s5 + $0x274] ss:$8 sps:$4 sm:$0xff]   ;;  %v10501_v53 = vld [vmem:[%s13798_s7 + $0x1f0] ss:$8 sps:$4 sm:$0xff]  }
 0x339   :  { %v10503_v46 = vld [vmem:[%s13798_s7 + $0x1f4] ss:$8 sps:$4 sm:$0xff]  }
 0x340   :  { %v4132_v63 = vpop.f32.mrb[64].mxu0 }
 0x341   :  { %v4133_v61 = vadd.f32 %v4132_v63, %v4081_v52  ;;  %v4134_v12 = vpop.f32.mrb[65].mxu0 }
 0x342   :  { %v4135_v54 = vadd.f32 %v4134_v12, %v4083_v35  ;;  %v4136_v17 = vpop.f32.mrb[66].mxu0 }
 0x343   :  { %v4241_v11 = vadd.f32 %v4133_v61, %v12689_v57  ;;  %v4137_v58 = vpop.f32.mrb[67].mxu0 }
 0x344   :  { %v4242_v2 = vadd.f32 %v4135_v54, %v12691_v36 }
 0x380   :  { %v4731_v59 = vpop.f32.mrb[68].mxu0 }
 0x381   :  { %v4733_v1 = vpop.f32.mrb[69].mxu0 }
 0x382   :  { %v4735_v31 = vpop.f32.mrb[70].mxu0 }
 0x383   :  { %v4736_v51 = vpop.f32.mrb[71].mxu0 }
 0x388   :  { %v4772_v48 = vpop.f32.mrb[40].mxu0 }
 0x389   :  { %v4911_v43 = vadd.f32 %v4899_v55, %v4772_v48  ;;  %v4774_v5 = vpop.f32.mrb[41].mxu0 }
 0x38a   :  { %v4912_v16 = vadd.f32 %v4903_v62, %v4774_v5  ;;  %v4776_v14 = vpop.f32.mrb[42].mxu0 }
 0x38b   :  { %v4920_v9 = vmax.f32 %v4911_v43, 0.0  ;;  %v4914_v4 = vadd.f32 %v4899_v55, %v4776_v14  ;;  %v4778_v44 = vpop.f32.mrb[43].mxu0 }
 0x38c   :  { %v4921_v57 = vmax.f32 %v4912_v16, 0.0  ;;  %v4915_v0 = vadd.f32 %v4903_v62, %v4778_v44  ;;  %v10369_v16 = vld [vmem:[%s13796_s5 + $0x220] ss:$8 sps:$4 sm:$0xff]   ;;  %v10377_v44 = vld [vmem:[%s13796_s5 + $0x4] ss:$8 sps:$4 sm:$0xff]  }
 0x38d   :  { %v4923_v49 = vmax.f32 %v4914_v4, 0.0  ;;  %v4983_v36 = vrot.slane %v4920_v9, 1  ;;  %v5589_v50 = vrot.slane %v4920_v9, 2  ;;  %v10372_v4 = vld [vmem:[%s13796_s5 + $0x230] ss:$8 sps:$4 sm:$0xff]  }
 0x38e   :  { %v4924_v6 = vmax.f32 %v4915_v0, 0.0  ;;  %v4984_v45 = vrot.slane %v4921_v57, 1  ;;  %v5591_v25 = vrot.slane %v4921_v57, 2  ;;  %v10380_v0 = vld [vmem:[%s13796_s5 + $0x14] ss:$8 sps:$4 sm:$0xff]  }
 0x38f   :  { %v12779_v34 = vrot.slane %v4923_v49, 2  ;;  %v4992_v47 = vrot.slane %v4923_v49, 3  ;;  %v5598_v56 = vrot.slane %v4923_v49, 4  ;;  %v10378_v49 = vld [vmem:[%s13796_s5 + $0x10] ss:$8 sps:$4 sm:$0xff]  }
 0x390   :  { %v4933_v28 = vrot.slane %v4924_v6, 2  ;;  %v4993_v23 = vrot.slane %v4924_v6, 3  ;;  %v5599_v10 = vrot.slane %v4924_v6, 4  ;;  %v4782_v20 = vpop.f32.mrb[72].mxu0  ;;  %v10387_v6 = vld [vmem:[%s13796_s5 + $0x40] ss:$8 sps:$4 sm:$0xff]  }
 0x391   :  { %v5590_v33 = vsel %vm2412_vm4, %v5589_v50, %v12779_v34  ;;  %v4783_v52 = vadd.f32 %v4782_v20, %v4731_v59  ;;  %v4784_v60 = vpop.f32.mrb[73].mxu0  ;;  %v5007_v38 = vsel %vm3589_vm3, %v4983_v36, %v4992_v47  ;;  %v12786_v35 = vsel %vm3589_vm3, %v4920_v9, %v12779_v34  ;;  %v10374_v9 = vld [vmem:[%s13796_s5 + $0x234] ss:$8 sps:$4 sm:$0xff]   ;;  %v10383_v36 = vld [vmem:[%s13796_s5 + $0x24] ss:$8 sps:$4 sm:$0xff]  }
 0x392   :  { %v4785_v18 = vadd.f32 %v4784_v60, %v4733_v1  ;;  %v4786_v7 = vpop.f32.mrb[74].mxu0  ;;  %v5008_v13 = vsel %vm3589_vm3, %v4984_v45, %v4993_v23  ;;  %v4939_v26 = vsel %vm3589_vm3, %v4921_v57, %v4933_v28  ;;  %v4941_v37 = vpack.c.bf16 %v12779_v34, %v12786_v35  ;;  %v10375_v57 = vld [vmem:[%s13796_s5] ss:$8 sps:$4 sm:$0xff]   ;;  %v10392_v45 = vld [vmem:[%s13796_s5 + $0x54] ss:$8 sps:$4 sm:$0xff]  }
 0x393   :  { %v4891_v41 = vadd.f32 %v4783_v52, %v4241_v11  ;;  %v4787_v29 = vpop.f32.mrb[75].mxu0  ;;  %v4942_v24 = vpack.c.bf16 %v4933_v28, %v4939_v26  ;;  %v5592_v19 = vsel %vm2412_vm4, %v5591_v25, %v4933_v28  ;;  %v12794_v32 = vsel %vm3589_vm3, %v5590_v33, %v5598_v56  ;;  %v10381_v50 = vld [vmem:[%s13796_s5 + $0x20] ss:$8 sps:$4 sm:$0xff]   ;;  %v10398_v28 = vld [vmem:[%s13796_s5 + $0x74] ss:$8 sps:$4 sm:$0xff]  }
 0x394   :  { %v4892_v63 = vadd.f32 %v4785_v18, %v4242_v2  ;;  %v12797_v61 = vsel %vm3589_vm3, %v5592_v19, %v5599_v10  ;;  %v10393_v25 = vld [vmem:[%s13796_s5 + $0x60] ss:$8 sps:$4 sm:$0xff]   ;;  %v10488_v20 = vld [vmem:[%s13798_s7 + $0xe4] ss:$8 sps:$4 sm:$0xff]   ;;  %v10492_v60 = vld [vmem:[%s13798_s7 + $0xf0] ss:$8 sps:$4 sm:$0xff]  }
 0x395   :  { %v4917_v12 = vadd.f32 %v4899_v55, %v4891_v41  ;;  %v10401_v33 = vld [vmem:[%s13796_s5 + $0x84] ss:$8 sps:$4 sm:$0xff]   ;;  %6174 = vmatprep.subr.bf16.mxu0 %v10488_v20  ;;  %v10399_v52 = vld [vmem:[%s13796_s5 + $0x80] ss:$8 sps:$4 sm:$0xff]   ;;  %v10404_v18 = vld [vmem:[%s13796_s5 + $0x94] ss:$8 sps:$4 sm:$0xff]  }
 0x396   :  { %v4918_v54 = vadd.f32 %v4903_v62, %v4892_v63  ;;  %v10402_v7 = vld [vmem:[%s13796_s5 + $0x90] ss:$8 sps:$4 sm:$0xff]   ;;  %v10500_v26 = vld [vmem:[%s13798_s7 + $0x104] ss:$8 sps:$4 sm:$0xff]   ;;  %v10405_v29 = vld [vmem:[%s13796_s5 + $0xa0] ss:$8 sps:$4 sm:$0xff]  }
 0x397   :  { %v4926_v17 = vmax.f32 %v4917_v12, 0.0  ;;  %v10407_v41 = vld [vmem:[%s13796_s5 + $0xa4] ss:$8 sps:$4 sm:$0xff]   ;;  %v10506_v19 = vld [vmem:[%s13798_s7 + $0x114] ss:$8 sps:$4 sm:$0xff]  }
 0x398   :  { %v4927_v58 = vmax.f32 %v4918_v54, 0.0  ;;  %v10410_v63 = vld [vmem:[%s13796_s5 + $0xb4] ss:$8 sps:$4 sm:$0xff]   ;;  %v10408_v12 = vld [vmem:[%s13796_s5 + $0xb0] ss:$8 sps:$4 sm:$0xff]  }
 0x399   :  { %v4995_v59 = vrot.slane %v4926_v17, 3  ;;  %v5601_v1 = vrot.slane %v4926_v17, 4  ;;  %v10510_v54 = vld [vmem:[%s13798_s7 + $0x120] ss:$8 sps:$4 sm:$0xff]   ;;  %v10512_v17 = vld [vmem:[%s13798_s7 + $0x124] ss:$8 sps:$4 sm:$0xff]  }
 0x39a   :  { %v4997_v31 = vrot.slane %v4927_v58, 3  ;;  %v5603_v51 = vrot.slane %v4927_v58, 4  ;;  %v10413_v58 = vld [vmem:[%s13796_s5 + $0xc4] ss:$8 sps:$4 sm:$0xff]   ;;  %v10429_v35 = vld [vmem:[%s13796_s5 + $0x240] ss:$8 sps:$4 sm:$0xff]  }
 0x39b   :  { %v4996_v11 = vsel %vm2303_vm6, %v4992_v47, %v4995_v59  ;;  %v12801_v48 = vsel %vm3605_vm7, %v5598_v56, %v5601_v1  ;;  %v10390_v47 = vld [vmem:[%s13796_s5 + $0x50] ss:$8 sps:$4 sm:$0xff]   ;;  %v10395_v56 = vld [vmem:[%s13796_s5 + $0x64] ss:$8 sps:$4 sm:$0xff]   ;;  %v10411_v59 = vld [vmem:[%s13796_s5 + $0xc0] ss:$8 sps:$4 sm:$0xff]  }
 0x39c   :  { %v4998_v43 = vsel %vm2303_vm6, %v4993_v23, %v4997_v31  ;;  %v5010_v5 = vpack.c.bf16 %v4996_v11, %v5007_v38  ;;  %v12805_v2 = vsel %vm3605_vm7, %v5599_v10, %v5603_v51  ;;  %v5616_v55 = vpack.c.bf16 %v12801_v48, %v12794_v32  ;;  %v10396_v23 = vld [vmem:[%s13796_s5 + $0x70] ss:$8 sps:$4 sm:$0xff]   ;;  %v10486_v10 = vld [vmem:[%s13798_s7 + $0xe0] ss:$8 sps:$4 sm:$0xff]   ;;  %v10494_v38 = vld [vmem:[%s13798_s7 + $0xf4] ss:$8 sps:$4 sm:$0xff]  }
 0x39d   :  { %v5011_v62 = vpack.c.bf16 %v4998_v43, %v5008_v13  ;;  %v5617_v14 = vpack.c.bf16 %v12805_v2, %v12797_v61  ;;  %6175 = vmatpush1.bf16.msra.mxu0 %v10486_v10  ;;  %v10498_v13 = vld [vmem:[%s13798_s7 + $0x100] ss:$8 sps:$4 sm:$0xff]   ;;  %v10516_v1 = vld [vmem:[%s13798_s7 + $0x130] ss:$8 sps:$4 sm:$0xff]   ;;  %v10518_v31 = vld [vmem:[%s13798_s7 + $0x134] ss:$8 sps:$4 sm:$0xff]  }
 0x39e   :  { %6176 = vmatprep.subr.bf16.mxu0 %v10494_v38  ;;  %v10416_v51 = vld [vmem:[%s13796_s5 + $0xd4] ss:$8 sps:$4 sm:$0xff]   ;;  %v10414_v11 = vld [vmem:[%s13796_s5 + $0xd0] ss:$8 sps:$4 sm:$0xff]   ;;  %v10522_v43 = vld [vmem:[%s13798_s7 + $0x140] ss:$8 sps:$4 sm:$0xff]  }
 0x39f   :  { %5266 = vmatprep.mubr.bf16.mxu1 %v5011_v62  ;;  %v10419_v62 = vld [vmem:[%s13796_s5 + $0xe4] ss:$8 sps:$4 sm:$0xff]   ;;  %v10441_v2 = vld [vmem:[%s13796_s5 + $0x280] ss:$8 sps:$4 sm:$0xff]   ;;  %v10452_v20 = vld [vmem:[%s13796_s5 + $0x2b4] ss:$8 sps:$4 sm:$0xff]  }
 0x3a0   :  { %5267 = vmatmul.mubr.bf16.vlgmr.msra.gmra.mrb[144].mxu1 %v5010_v5  ;;  %v10524_v5 = vld [vmem:[%s13798_s7 + $0x144] ss:$8 sps:$4 sm:$0xff]   ;;  %v10447_v10 = vld [vmem:[%s13796_s5 + $0x2a0] ss:$8 sps:$4 sm:$0xff]   ;;  %v10458_v38 = vld [vmem:[%s13796_s5 + $0x2d4] ss:$8 sps:$4 sm:$0xff]  }
 0x3a1   :  { %5278 = vmatpush1.bf16.msra.mxu1 %v10369_v16  ;;  %5309 = vmatprep.mubr.bf16.mxu1 %v10819_v8  ;;  %v10417_v16 = vld [vmem:[%s13796_s5 + $0xe0] ss:$8 sps:$4 sm:$0xff]   ;;  %v10431_v34 = vld [vmem:[%s13796_s5 + $0x244] ss:$8 sps:$4 sm:$0xff]   ;;  %v10491_v32 = vld [vmem:[%s13798_s7 + $0x1d4] ss:$8 sps:$4 sm:$0xff]  }
 0x3a2   :  { %5279 = vmatprep.subr.bf16.mxu1 %v10374_v9  ;;  %6177 = vmatpush1.bf16.msra.mxu0 %v10492_v60  ;;  %v10528_v9 = vld [vmem:[%s13798_s7 + $0x150] ss:$8 sps:$4 sm:$0xff]   ;;  %v10443_v61 = vld [vmem:[%s13796_s5 + $0x284] ss:$8 sps:$4 sm:$0xff]   ;;  %v10453_v60 = vld [vmem:[%s13796_s5 + $0x2c0] ss:$8 sps:$4 sm:$0xff]  }
 0x3a3   :  { %6178 = vmatprep.subr.bf16.mxu0 %v10500_v26  ;;  %v10464_v26 = vld [vmem:[%s13796_s5 + $0x2f4] ss:$8 sps:$4 sm:$0xff]   ;;  %v10497_v48 = vld [vmem:[%s13798_s7 + $0x1e4] ss:$8 sps:$4 sm:$0xff]  }
 0x3a5   :  { %5280 = vmatpush1.bf16.msra.mxu1 %v10372_v4  ;;  %v10530_v4 = vld [vmem:[%s13798_s7 + $0x154] ss:$8 sps:$4 sm:$0xff]  }
 0x3a6   :  { %5503 = vmatprep.subr.bf16.mxu1 %v10377_v44  ;;  %6179 = vmatpush1.bf16.msra.mxu0 %v10498_v13  ;;  %v10422_v44 = vld [vmem:[%s13796_s5 + $0xf4] ss:$8 sps:$4 sm:$0xff]   ;;  %v10459_v13 = vld [vmem:[%s13796_s5 + $0x2e0] ss:$8 sps:$4 sm:$0xff]  }
 0x3a7   :  { %6180 = vmatprep.subr.bf16.mxu0 %v10506_v19  ;;  %v10470_v19 = vld [vmem:[%s13796_s5 + $0x314] ss:$8 sps:$4 sm:$0xff]  }
 0x3ac   :  { %8716 = vmatmul.mubr.msk.bf16.vlgmr.msra.gmra.mrb[144].mxu1 %vm5230_vm10, %v5012_v39  ;;  %v10389_v39 = vld [vmem:[%s13796_s5 + $0x44] ss:$8 sps:$4 sm:$0xff]  }
 0x3ad   :  { %5504 = vmatpush1.bf16.msra.mxu1 %v10375_v57  ;;  %5535 = vmatprep.mubr.bf16.mxu1 %v4942_v24  ;;  %v10504_v24 = vld [vmem:[%s13798_s7 + $0x110] ss:$8 sps:$4 sm:$0xff]  }
 0x3ae   :  { %5505 = vmatprep.subr.bf16.mxu1 %v10380_v0  ;;  %6181 = vmatpush1.bf16.msra.mxu0 %v10504_v24  ;;  %v10420_v57 = vld [vmem:[%s13796_s5 + $0xf0] ss:$8 sps:$4 sm:$0xff]   ;;  %v10534_v0 = vld [vmem:[%s13798_s7 + $0x160] ss:$8 sps:$4 sm:$0xff]  }
 0x3af   :  { %6182 = vmatprep.subr.bf16.mxu0 %v10512_v17  ;;  %v10465_v24 = vld [vmem:[%s13796_s5 + $0x300] ss:$8 sps:$4 sm:$0xff]   ;;  %v10476_v17 = vld [vmem:[%s13796_s5 + $0x334] ss:$8 sps:$4 sm:$0xff]  }
 0x3b1   :  { %5506 = vmatpush1.bf16.msra.mxu1 %v10378_v49  ;;  %v10536_v49 = vld [vmem:[%s13798_s7 + $0x164] ss:$8 sps:$4 sm:$0xff]  }
 0x3b2   :  { %5507 = vmatprep.subr.bf16.mxu1 %v10383_v36  ;;  %6183 = vmatpush1.bf16.msra.mxu0 %v10510_v54  ;;  %v10425_v36 = vld [vmem:[%s13796_s5 + $0x104] ss:$8 sps:$4 sm:$0xff]   ;;  %v10471_v54 = vld [vmem:[%s13796_s5 + $0x320] ss:$8 sps:$4 sm:$0xff]  }
 0x3b3   :  { %6184 = vmatprep.subr.bf16.mxu0 %v10518_v31  ;;  %v10482_v31 = vld [vmem:[%s13796_s5 + $0x354] ss:$8 sps:$4 sm:$0xff]  }
 0x3b5   :  { %5508 = vmatpush1.bf16.msra.mxu1 %v10381_v50  ;;  %v10423_v50 = vld [vmem:[%s13796_s5 + $0x100] ss:$8 sps:$4 sm:$0xff]  }
 0x3b6   :  { %5509 = vmatprep.subr.bf16.mxu1 %v10386_v42  ;;  %6185 = vmatpush1.bf16.msra.mxu0 %v10516_v1  ;;  %v10540_v42 = vld [vmem:[%s13798_s7 + $0x170] ss:$8 sps:$4 sm:$0xff]   ;;  %v10477_v1 = vld [vmem:[%s13796_s5 + $0x340] ss:$8 sps:$4 sm:$0xff]  }
 0x3b7   :  { %6186 = vmatprep.subr.bf16.mxu0 %v10524_v5  ;;  %v10507_v5 = vld [vmem:[%s13798_s7 + $0x200] ss:$8 sps:$4 sm:$0xff]  }
 0x3b9   :  { %5510 = vmatpush1.bf16.msra.mxu1 %v10384_v3  ;;  %v10542_v3 = vld [vmem:[%s13798_s7 + $0x174] ss:$8 sps:$4 sm:$0xff]  }
 0x3ba   :  { %5511 = vmatprep.subr.bf16.mxu1 %v10389_v39  ;;  %6187 = vmatpush1.bf16.msra.mxu0 %v10522_v43  ;;  %v10428_v39 = vld [vmem:[%s13796_s5 + $0x114] ss:$8 sps:$4 sm:$0xff]   ;;  %v10483_v43 = vld [vmem:[%s13798_s7 + $0x1c0] ss:$8 sps:$4 sm:$0xff]  }
 0x3bb   :  { %6188 = vmatprep.subr.bf16.mxu0 %v10530_v4  ;;  %v10519_v4 = vld [vmem:[%s13798_s7 + $0x220] ss:$8 sps:$4 sm:$0xff]  }
 0x3bd   :  { %5512 = vmatpush1.bf16.msra.mxu1 %v10387_v6  ;;  %v10426_v6 = vld [vmem:[%s13796_s5 + $0x110] ss:$8 sps:$4 sm:$0xff]  }
 0x3be   :  { %5513 = vmatprep.subr.bf16.mxu1 %v10392_v45  ;;  %6189 = vmatpush1.bf16.msra.mxu0 %v10528_v9  ;;  %v10546_v45 = vld [vmem:[%s13798_s7 + $0x180] ss:$8 sps:$4 sm:$0xff]   ;;  %v10521_v9 = vld [vmem:[%s13798_s7 + $0x224] ss:$8 sps:$4 sm:$0xff]  }
 0x3bf   :  { %6190 = vmatprep.subr.bf16.mxu0 %v10536_v49  ;;  %v10531_v49 = vld [vmem:[%s13798_s7 + $0x240] ss:$8 sps:$4 sm:$0xff]  }
 0x3c1   :  { %5514 = vmatpush1.bf16.msra.mxu1 %v10390_v47  ;;  %v10548_v47 = vld [vmem:[%s13798_s7 + $0x184] ss:$8 sps:$4 sm:$0xff]  }
 0x3c2   :  { %5515 = vmatprep.subr.bf16.mxu1 %v10395_v56  ;;  %6191 = vmatpush1.bf16.msra.mxu0 %v10534_v0  ;;  %v10432_v56 = vld [vmem:[%s13796_s5 + $0x250] ss:$8 sps:$4 sm:$0xff]   ;;  %v10533_v0 = vld [vmem:[%s13798_s7 + $0x244] ss:$8 sps:$4 sm:$0xff]  }
 0x3c3   :  { %6192 = vmatprep.subr.bf16.mxu0 %v10542_v3  ;;  %v10543_v3 = vld [vmem:[%s13798_s7 + $0x260] ss:$8 sps:$4 sm:$0xff]  }
 0x3c5   :  { %5516 = vmatpush1.bf16.msra.mxu1 %v10393_v25  ;;  %v10437_v25 = vld [vmem:[%s13796_s5 + $0x264] ss:$8 sps:$4 sm:$0xff]  }
 0x3c6   :  { %5517 = vmatprep.subr.bf16.mxu1 %v10398_v28  ;;  %6193 = vmatpush1.bf16.msra.mxu0 %v10540_v42  ;;  %v10444_v28 = vld [vmem:[%s13796_s5 + $0x290] ss:$8 sps:$4 sm:$0xff]   ;;  %v10545_v42 = vld [vmem:[%s13798_s7 + $0x264] ss:$8 sps:$4 sm:$0xff]  }
 0x3c7   :  { %6194 = vmatprep.subr.bf16.mxu0 %v10548_v47  ;;  %v10554_v47 = vld [vmem:[%s13798_s7 + $0x194] ss:$8 sps:$4 sm:$0xff]  }
 0x3c9   :  { %5518 = vmatpush1.bf16.msra.mxu1 %v10396_v23  ;;  %v10449_v23 = vld [vmem:[%s13796_s5 + $0x2a4] ss:$8 sps:$4 sm:$0xff]  }
 0x3ca   :  { %5519 = vmatprep.subr.bf16.mxu1 %v10401_v33  ;;  %6195 = vmatpush1.bf16.msra.mxu0 %v10546_v45  ;;  %v10450_v33 = vld [vmem:[%s13796_s5 + $0x2b0] ss:$8 sps:$4 sm:$0xff]  }
 0x3cb   :  { %v10552_v45 = vld [vmem:[%s13798_s7 + $0x190] ss:$8 sps:$4 sm:$0xff]   ;;  %6196 = vmatprep.subr.bf16.mxu0 %v10554_v47  ;;  %v10581_v47 = vld [vmem:[%s13798_s7 + $0x3a4] ss:$8 sps:$4 sm:$0xff]  }
 0x3cd   :  { %5520 = vmatpush1.bf16.msra.mxu1 %v10399_v52  ;;  %v10455_v52 = vld [vmem:[%s13796_s5 + $0x2c4] ss:$8 sps:$4 sm:$0xff]  }
 0x3ce   :  { %5521 = vmatprep.subr.bf16.mxu1 %v10404_v18  ;;  %v10456_v18 = vld [vmem:[%s13796_s5 + $0x2d0] ss:$8 sps:$4 sm:$0xff]   ;;  %6197 = vmatpush1.bf16.msra.mxu0 %v10552_v45 }
 0x3d1   :  { %5522 = vmatpush1.bf16.msra.mxu1 %v10402_v7  ;;  %v10461_v7 = vld [vmem:[%s13796_s5 + $0x2e4] ss:$8 sps:$4 sm:$0xff]  }
 0x3d2   :  { %5523 = vmatprep.subr.bf16.mxu1 %v10407_v41  ;;  %v10462_v41 = vld [vmem:[%s13796_s5 + $0x2f0] ss:$8 sps:$4 sm:$0xff]  }
 0x3d5   :  { %5524 = vmatpush1.bf16.msra.mxu1 %v10405_v29  ;;  %v10467_v29 = vld [vmem:[%s13796_s5 + $0x304] ss:$8 sps:$4 sm:$0xff]  }
 0x3d6   :  { %5525 = vmatprep.subr.bf16.mxu1 %v10410_v63  ;;  %v10468_v63 = vld [vmem:[%s13796_s5 + $0x310] ss:$8 sps:$4 sm:$0xff]  }
 0x3d9   :  { %5526 = vmatpush1.bf16.msra.mxu1 %v10408_v12  ;;  %v10473_v12 = vld [vmem:[%s13796_s5 + $0x324] ss:$8 sps:$4 sm:$0xff]  }
 0x3da   :  { %5527 = vmatprep.subr.bf16.mxu1 %v10413_v58  ;;  %v10474_v58 = vld [vmem:[%s13796_s5 + $0x330] ss:$8 sps:$4 sm:$0xff]  }
 0x3dd   :  { %5528 = vmatpush1.bf16.msra.mxu1 %v10411_v59  ;;  %v10479_v59 = vld [vmem:[%s13796_s5 + $0x344] ss:$8 sps:$4 sm:$0xff]  }
 0x3de   :  { %5529 = vmatprep.subr.bf16.mxu1 %v10416_v51  ;;  %v10480_v51 = vld [vmem:[%s13796_s5 + $0x350] ss:$8 sps:$4 sm:$0xff]  }
 0x3e1   :  { %5530 = vmatpush1.bf16.msra.mxu1 %v10414_v11  ;;  %v10485_v11 = vld [vmem:[%s13798_s7 + $0x1c4] ss:$8 sps:$4 sm:$0xff]  }
 0x3e2   :  { %5531 = vmatprep.subr.bf16.mxu1 %v10419_v62  ;;  %v10515_v62 = vld [vmem:[%s13798_s7 + $0x214] ss:$8 sps:$4 sm:$0xff]  }
 0x3e5   :  { %5532 = vmatpush1.bf16.msra.mxu1 %v10417_v16  ;;  %v10513_v16 = vld [vmem:[%s13798_s7 + $0x210] ss:$8 sps:$4 sm:$0xff]  }
 0x3e6   :  { %5533 = vmatprep.subr.bf16.mxu1 %v10422_v44  ;;  %v10527_v44 = vld [vmem:[%s13798_s7 + $0x234] ss:$8 sps:$4 sm:$0xff]  }
 0x3e9   :  { %5534 = vmatpush1.bf16.msra.mxu1 %v10420_v57  ;;  %v10525_v57 = vld [vmem:[%s13798_s7 + $0x230] ss:$8 sps:$4 sm:$0xff]  }
 0x3ea   :  { %5546 = vmatprep.subr.bf16.mxu1 %v10425_v36  ;;  %v10539_v36 = vld [vmem:[%s13798_s7 + $0x254] ss:$8 sps:$4 sm:$0xff]  }
 0x3ec   :  { %5536 = vmatmul.mubr.bf16.vlgmr.msra.gmra.mrb[144].mxu1 %v4941_v37  ;;  %v10434_v37 = vld [vmem:[%s13796_s5 + $0x254] ss:$8 sps:$4 sm:$0xff]  }
 0x3ed   :  { %5547 = vmatpush1.bf16.msra.mxu1 %v10423_v50  ;;  %5578 = vmatprep.mubr.bf16.mxu1 %v10819_v8  ;;  %v10537_v50 = vld [vmem:[%s13798_s7 + $0x250] ss:$8 sps:$4 sm:$0xff]  }
 0x3ee   :  { %5548 = vmatprep.subr.bf16.mxu1 %v10428_v39  ;;  %v10551_v39 = vld [vmem:[%s13798_s7 + $0x274] ss:$8 sps:$4 sm:$0xff]  }
 0x3f1   :  { %5549 = vmatpush1.bf16.msra.mxu1 %v10426_v6  ;;  %v10549_v6 = vld [vmem:[%s13798_s7 + $0x270] ss:$8 sps:$4 sm:$0xff]  }
 0x3f2   :  { %5839 = vmatprep.subr.bf16.mxu1 %v10431_v34  ;;  %v10555_v34 = vld [vmem:[%s13798_s7 + $0x280] ss:$8 sps:$4 sm:$0xff]  }
 0x3f8   :  { %8753 = vmatmul.mubr.msk.bf16.vlgmr.msra.gmra.mrb[144].mxu1 %vm5230_vm10, %v4943_v40  ;;  %v10438_v40 = vld [vmem:[%s13796_s5 + $0x270] ss:$8 sps:$4 sm:$0xff]  }
 0x3f9   :  { %5840 = vmatpush1.bf16.msra.mxu1 %v10429_v35  ;;  %5871 = vmatprep.mubr.bf16.mxu1 %v5617_v14  ;;  %v10446_v14 = vld [vmem:[%s13796_s5 + $0x294] ss:$8 sps:$4 sm:$0xff]   ;;  %v10557_v35 = vld [vmem:[%s13798_s7 + $0x284] ss:$8 sps:$4 sm:$0xff]  }
 0x3fa   :  { %5841 = vmatprep.subr.bf16.mxu1 %v10434_v37  ;;  %v10558_v37 = vld [vmem:[%s13798_s7 + $0x1a0] ss:$8 sps:$4 sm:$0xff]  }
 0x3fd   :  { %5842 = vmatpush1.bf16.msra.mxu1 %v10432_v56  ;;  %v10560_v56 = vld [vmem:[%s13798_s7 + $0x1a4] ss:$8 sps:$4 sm:$0xff]  }
 0x3fe   :  { %5843 = vmatprep.subr.bf16.mxu1 %v10437_v25  ;;  %v10563_v25 = vld [vmem:[%s13798_s7 + $0x294] ss:$8 sps:$4 sm:$0xff]   ;;  %6198 = vmatprep.subr.bf16.mxu0 %v10560_v56 }
 0x3ff   :  { %6199 = vmatpush1.bf16.msra.mxu0 %v10558_v37 }
 0x401   :  { %5844 = vmatpush1.bf16.msra.mxu1 %v10435_v22  ;;  %v10566_v22 = vld [vmem:[%s13798_s7 + $0x1b4] ss:$8 sps:$4 sm:$0xff]  }
 0x402   :  { %5845 = vmatprep.subr.bf16.mxu1 %v10440_v30  ;;  %v10561_v30 = vld [vmem:[%s13798_s7 + $0x290] ss:$8 sps:$4 sm:$0xff]   ;;  %6200 = vmatprep.subr.bf16.mxu0 %v10566_v22 }
 0x405   :  { %5846 = vmatpush1.bf16.msra.mxu1 %v10438_v40  ;;  %v10564_v40 = vld [vmem:[%s13798_s7 + $0x1b0] ss:$8 sps:$4 sm:$0xff]  }
 0x406   :  { %5847 = vmatprep.subr.bf16.mxu1 %v10443_v61  ;;  %v10569_v61 = vld [vmem:[%s13798_s7 + $0x384] ss:$8 sps:$4 sm:$0xff]   ;;  %6201 = vmatpush1.bf16.msra.mxu0 %v10564_v40 }
 0x409   :  { %5848 = vmatpush1.bf16.msra.mxu1 %v10441_v2  ;;  %v10572_v2 = vld [vmem:[%s13798_s7 + $0x4] ss:$8 sps:$4 sm:$0xff]  }
 0x40a   :  { %5849 = vmatprep.subr.bf16.mxu1 %v10446_v14  ;;  %6358 = vmatprep.subr.bf16.mxu0 %v10572_v2  ;;  %v5929_v14 = vld [vmem:[%s13797_s6] sm:$0x3] }
 0x40d   :  { %5850 = vmatpush1.bf16.msra.mxu1 %v10444_v28  ;;  %v5934_v28 = vrot.slane %v5929_v14, %v11728_v21 }
 0x40e   :  { %5851 = vmatprep.subr.bf16.mxu1 %v10449_v23  ;;  %v5938_v23 = vrot.slane %v5929_v14, %v11737_v27 }
 0x411   :  { %5852 = vmatpush1.bf16.msra.mxu1 %v10447_v10 }
 0x412   :  { %5853 = vmatprep.subr.bf16.mxu1 %v10452_v20 }
 0x415   :  { %5854 = vmatpush1.bf16.msra.mxu1 %v10450_v33 }
 0x416   :  { %5855 = vmatprep.subr.bf16.mxu1 %v10455_v52 }
 0x419   :  { %5856 = vmatpush1.bf16.msra.mxu1 %v10453_v60 }
 0x41a   :  { %5857 = vmatprep.subr.bf16.mxu1 %v10458_v38 }
 0x41d   :  { %5858 = vmatpush1.bf16.msra.mxu1 %v10456_v18 }
 0x41e   :  { %5859 = vmatprep.subr.bf16.mxu1 %v10461_v7 }
 0x421   :  { %5860 = vmatpush1.bf16.msra.mxu1 %v10459_v13 }
 0x422   :  { %5861 = vmatprep.subr.bf16.mxu1 %v10464_v26 }
 0x425   :  { %5862 = vmatpush1.bf16.msra.mxu1 %v10462_v41 }
 0x426   :  { %5863 = vmatprep.subr.bf16.mxu1 %v10467_v29 }
 0x429   :  { %5864 = vmatpush1.bf16.msra.mxu1 %v10465_v24 }
 0x42a   :  { %5865 = vmatprep.subr.bf16.mxu1 %v10470_v19 }
 0x42d   :  { %5866 = vmatpush1.bf16.msra.mxu1 %v10468_v63 }
 0x42e   :  { %5867 = vmatprep.subr.bf16.mxu1 %v10473_v12 }
 0x431   :  { %5868 = vmatpush1.bf16.msra.mxu1 %v10471_v54 }
 0x432   :  { %5869 = vmatprep.subr.bf16.mxu1 %v10476_v17 }
 0x435   :  { %5870 = vmatpush1.bf16.msra.mxu1 %v10474_v58 }
 0x436   :  { %5882 = vmatprep.subr.bf16.mxu1 %v10479_v59 }
 0x438   :  { %5872 = vmatmul.mubr.bf16.vlgmr.msra.gmra.mrb[144].mxu1 %v5616_v55  ;;  %v10495_v55 = vld [vmem:[%s13798_s7 + $0x1e0] ss:$8 sps:$4 sm:$0xff]  }
 0x439   :  { %5883 = vmatpush1.bf16.msra.mxu1 %v10477_v1  ;;  %5914 = vmatprep.mubr.bf16.mxu1 %v10819_v8  ;;  %v10489_v8 = vld [vmem:[%s13798_s7 + $0x1d0] ss:$8 sps:$4 sm:$0xff]  }
 0x43a   :  { %5884 = vmatprep.subr.bf16.mxu1 %v10482_v31 }
 0x43d   :  { %5885 = vmatpush1.bf16.msra.mxu1 %v10480_v51 }
 0x43e   :  { %6579 = vmatprep.subr.bf16.mxu1 %v10485_v11 }
 0x444   :  { %8826 = vmatmul.mubr.msk.bf16.vlgmr.msra.gmra.mrb[144].mxu1 %vm5230_vm10, %v5618_v15  ;;  %v10509_v15 = vld [vmem:[%s13798_s7 + $0x204] ss:$8 sps:$4 sm:$0xff]  }
 0x445   :  { %6580 = vmatpush1.bf16.msra.mxu1 %v10483_v43 }
 0x446   :  { %6581 = vmatprep.subr.bf16.mxu1 %v10491_v32 }
 0x449   :  { %6582 = vmatpush1.bf16.msra.mxu1 %v10489_v8  ;;  %v10567_v8 = vld [vmem:[%s13798_s7 + $0x380] ss:$8 sps:$4 sm:$0xff]  }
 0x44a   :  { %6583 = vmatprep.subr.bf16.mxu1 %v10497_v48 }
 0x44d   :  { %6584 = vmatpush1.bf16.msra.mxu1 %v10495_v55 }
 0x44e   :  { %6585 = vmatprep.subr.bf16.mxu1 %v10503_v46 }
 0x451   :  { %6586 = vmatpush1.bf16.msra.mxu1 %v10501_v53 }
 0x452   :  { %6587 = vmatprep.subr.bf16.mxu1 %v10509_v15 }
 0x455   :  { %6588 = vmatpush1.bf16.msra.mxu1 %v10507_v5 }
 0x456   :  { %6589 = vmatprep.subr.bf16.mxu1 %v10515_v62 }
 0x459   :  { %6590 = vmatpush1.bf16.msra.mxu1 %v10513_v16  ;;  %v10570_v16 = vld [vmem:[%s13798_s7] ss:$8 sps:$4 sm:$0xff]  }
 0x45a   :  { %6591 = vmatprep.subr.bf16.mxu1 %v10521_v9 }
 0x45d   :  { %6592 = vmatpush1.bf16.msra.mxu1 %v10519_v4  ;;  %v10575_v4 = vld [vmem:[%s13798_s7 + $0x394] ss:$8 sps:$4 sm:$0xff]  }
 0x45e   :  { %6593 = vmatprep.subr.bf16.mxu1 %v10527_v44 }
 0x461   :  { %6594 = vmatpush1.bf16.msra.mxu1 %v10525_v57 }
 0x462   :  { %6595 = vmatprep.subr.bf16.mxu1 %v10533_v0  ;;  %v10578_v0 = vld [vmem:[%s13798_s7 + $0x14] ss:$8 sps:$4 sm:$0xff]  }
 0x465   :  { %6596 = vmatpush1.bf16.msra.mxu1 %v10531_v49 }
 0x466   :  { %6597 = vmatprep.subr.bf16.mxu1 %v10539_v36 }
 0x469   :  { %6598 = vmatpush1.bf16.msra.mxu1 %v10537_v50 }
 0x46a   :  { %6599 = vmatprep.subr.bf16.mxu1 %v10545_v42 }
 0x46d   :  { %6600 = vmatpush1.bf16.msra.mxu1 %v10543_v3  ;;  %v10573_v3 = vld [vmem:[%s13798_s7 + $0x390] ss:$8 sps:$4 sm:$0xff]  }
 0x46e   :  { %6601 = vmatprep.subr.bf16.mxu1 %v10551_v39 }
 0x471   :  { %6602 = vmatpush1.bf16.msra.mxu1 %v10549_v6 }
 0x472   :  { %6603 = vmatprep.subr.bf16.mxu1 %v10557_v35 }
 0x475   :  { %6604 = vmatpush1.bf16.msra.mxu1 %v10555_v34 }
 0x476   :  { %6605 = vmatprep.subr.bf16.mxu1 %v10563_v25  ;;  %v10576_v25 = vld [vmem:[%s13798_s7 + $0x10] ss:$8 sps:$4 sm:$0xff]  }
 0x479   :  { %6606 = vmatpush1.bf16.msra.mxu1 %v10561_v30  ;;  %v10584_v30 = vld [vmem:[%s13798_s7 + $0x24] ss:$8 sps:$4 sm:$0xff]  }
 0x47a   :  { %7033 = vmatprep.subr.bf16.mxu1 %v10569_v61 }
 0x517   :  { %v5916_v10 = vpop.f32.mrb[144].mxu1 }
 0x518   :  { %v5941_v20 = vadd.f32 %v5934_v28, %v5916_v10  ;;  %v5918_v33 = vpop.f32.mrb[145].mxu1 }
 0x519   :  { %v5942_v52 = vadd.f32 %v5938_v23, %v5918_v33  ;;  %v5920_v60 = vpop.f32.mrb[146].mxu1  ;;  %v10590_v33 = vld [vmem:[%s13798_s7 + $0x34] ss:$8 sps:$4 sm:$0xff]  }
 0x51a   :  { %v13239_v38 = vmax.f32 %v5941_v20, 0.0  ;;  %v5943_v18 = vadd.f32 %v5934_v28, %v5920_v60  ;;  %v5922_v7 = vpop.f32.mrb[147].mxu1  ;;  %v10579_v28 = vld [vmem:[%s13798_s7 + $0x3a0] ss:$8 sps:$4 sm:$0xff]   ;;  %v10593_v60 = vld [vmem:[%s13798_s7 + $0x3c4] ss:$8 sps:$4 sm:$0xff]  }
 0x51b   :  { %v5946_v13 = vmax.f32 %v5942_v52, 0.0  ;;  %v5944_v26 = vadd.f32 %v5938_v23, %v5922_v7  ;;  %v10587_v23 = vld [vmem:[%s13798_s7 + $0x3b4] ss:$8 sps:$4 sm:$0xff]   ;;  %v10582_v20 = vld [vmem:[%s13798_s7 + $0x20] ss:$8 sps:$4 sm:$0xff]  }
 0x51c   :  { %v13241_v41 = vmax.f32 %v5943_v18, 0.0  ;;  %v6399_v29 = vrot.slane %v13239_v38, 2  ;;  %v5987_v24 = vrot.slane %v13239_v38, 1  ;;  %v6849_v54 = vrot.slane %v13239_v38, 4  ;;  %v10585_v52 = vld [vmem:[%s13798_s7 + $0x3b0] ss:$8 sps:$4 sm:$0xff]  }
 0x51d   :  { %v5948_v19 = vmax.f32 %v5944_v26, 0.0  ;;  %v6400_v63 = vrot.slane %v5946_v13, 2  ;;  %v5988_v12 = vrot.slane %v5946_v13, 1  ;;  %v5952_v59 = vrot.slane %v5946_v13, 6  ;;  %v10588_v18 = vld [vmem:[%s13798_s7 + $0x30] ss:$8 sps:$4 sm:$0xff]  }
 0x51e   :  { %v6403_v17 = vsel %vm2319_vm5, %v6399_v29, %v13241_v41  ;;  %v5993_v58 = vrot.slane %v13241_v41, 7  ;;  %v6853_v1 = vrot.slane %v13241_v41, 2  ;;  %v6850_v11 = vrot.slane %v5946_v13, 4  ;;  %v10596_v7 = vld [vmem:[%s13798_s7 + $0x44] ss:$8 sps:$4 sm:$0xff]  }
 0x51f   :  { %v6404_v31 = vsel %vm2319_vm5, %v6400_v63, %v5948_v19  ;;  %v5994_v51 = vrot.slane %v5948_v19, 7  ;;  %v6854_v43 = vrot.slane %v5948_v19, 2  ;;  %v6405_v46 = vpack.c.bf16 %v6403_v17, %v6403_v17  ;;  %v10599_v26 = vld [vmem:[%s13798_s7 + $0x3d4] ss:$8 sps:$4 sm:$0xff]   ;;  %v10600_v63 = vld [vmem:[%s13798_s7 + $0x50] ss:$8 sps:$4 sm:$0xff]  }
 0x520   :  { %v6406_v32 = vpack.c.bf16 %v6404_v31, %v6404_v31  ;;  %v5997_v48 = vsel %vm2319_vm5, %v5987_v24, %v5993_v58  ;;  %v13256_v55 = vsel %vm2319_vm5, %v6849_v54, %v6853_v1  ;;  %v5956_v5 = vsel %vm2319_vm5, %v5946_v13, %v5952_v59  ;;  %v10602_v29 = vld [vmem:[%s13798_s7 + $0x54] ss:$8 sps:$4 sm:$0xff]   ;;  %v10597_v24 = vld [vmem:[%s13798_s7 + $0x3d0] ss:$8 sps:$4 sm:$0xff]   ;;  %v10603_v54 = vld [vmem:[%s13798_s7 + $0x3e0] ss:$8 sps:$4 sm:$0xff]  }
 0x521   :  { %v5998_v53 = vsel %vm2319_vm5, %v5988_v12, %v5994_v51  ;;  %v6858_v15 = vsel %vm2319_vm5, %v6850_v11, %v6854_v43  ;;  %v7304_v44 = vrot.slane %v5948_v19, 4  ;;  %v5999_v57 = vpack.c.bf16 %v5997_v48, %v5997_v48  ;;  %v10608_v12 = vld [vmem:[%s13798_s7 + $0x64] ss:$8 sps:$4 sm:$0xff]   ;;  %v10611_v17 = vld [vmem:[%s13798_s7 + $0x3f4] ss:$8 sps:$4 sm:$0xff]  }
 0x522   :  { %8969 = vmatprep.mubr.msk.bf16.mxu1 %vm6170_vm11, %v6406_v32  ;;  %v6000_v62 = vpack.c.bf16 %v5998_v53, %v5998_v53  ;;  %v6860_v9 = vpack.c.bf16 %v6858_v15, %v6858_v15  ;;  %v6623_v49 = vrot.slane %v5946_v13, 3  ;;  %v6627_v36 = vrot.slane %v5948_v19, 1  ;;  %v10606_v58 = vld [vmem:[%s13798_s7 + $0x60] ss:$8 sps:$4 sm:$0xff]   ;;  %v10609_v1 = vld [vmem:[%s13798_s7 + $0x3f0] ss:$8 sps:$4 sm:$0xff]  }
 0x523   :  { %6612 = vmatmul.mubr.bf16.vlgmr.msra.gmra.mrb[148].mxu1 %v6405_v46  ;;  %v7303_v50 = vrot.slane %v13241_v41, 4  ;;  %v5958_v42 = vpack.c.bf16 %v5956_v5, %v5956_v5  ;;  %v13277_v39 = vsel %vm2319_vm5, %v5952_v59, %v7304_v44  ;;  %v5951_v6 = vrot.slane %v13239_v38, 6  ;;  %v10614_v59 = vld [vmem:[%s13798_s7 + $0x74] ss:$8 sps:$4 sm:$0xff]   ;;  %v10617_v31 = vld [vmem:[%s13798_s7 + $0x404] ss:$8 sps:$4 sm:$0xff]  }
 0x524   :  { %7034 = vmatpush1.bf16.msra.mxu1 %v10567_v8  ;;  %8883 = vmatprep.mubr.msk.bf16.mxu0 %vm6170_vm11, %v6000_v62  ;;  %v6626_v45 = vrot.slane %v13241_v41, 1  ;;  %v13286_v34 = vsel %vm2319_vm5, %v6623_v49, %v6627_v36  ;;  %v6622_v35 = vrot.slane %v13239_v38, 3  ;;  %v7077_v37 = vrot.slane %v5946_v13, 5  ;;  %v10591_v13 = vld [vmem:[%s13798_s7 + $0x3c0] ss:$8 sps:$4 sm:$0xff]  }
 0x525   :  { %9083 = vmatprep.mubr.msk.bf16.mxu1 %vm6170_vm11, %v6860_v9  ;;  %6207 = vmatmul.mubr.bf16.vlgmr.msra.gmra.mrb[76].mxu0 %v5999_v57  ;;  %v7081_v56 = vrot.slane %v5948_v19, 3  ;;  %v13296_v22 = vsel %vm2319_vm5, %v5951_v6, %v7303_v50  ;;  %v7076_v2 = vrot.slane %v13239_v38, 5  ;;  %v7080_v14 = vrot.slane %v13241_v41, 3  ;;  %v10594_v41 = vld [vmem:[%s13798_s7 + $0x40] ss:$8 sps:$4 sm:$0xff]  }
 0x526   :  { %6359 = vmatpush1.bf16.msra.mxu0 %v10570_v16  ;;  %8912 = vmatprep.mubr.msk.bf16.mxu0 %vm6170_vm11, %v5958_v42  ;;  %v13302_v40 = vsel %vm2319_vm5, %v6622_v35, %v6626_v45  ;;  %v10605_v19 = vld [vmem:[%s13798_s7 + $0x3e4] ss:$8 sps:$4 sm:$0xff]   ;;  %v10612_v51 = vld [vmem:[%s13798_s7 + $0x70] ss:$8 sps:$4 sm:$0xff]   ;;  %v10615_v43 = vld [vmem:[%s13798_s7 + $0x400] ss:$8 sps:$4 sm:$0xff]  }
 0x527   :  { %7035 = vmatprep.subr.bf16.mxu1 %v10575_v4  ;;  %6360 = vmatprep.subr.bf16.mxu0 %v10578_v0  ;;  %v13305_v61 = vsel %vm2319_vm5, %v7077_v37, %v7081_v56  ;;  %v13316_v10 = vsel %vm2319_vm5, %v7076_v2, %v7080_v14  ;;  %v10620_v11 = vld [vmem:[%s13798_s7 + $0x84] ss:$8 sps:$4 sm:$0xff]   ;;  %v10623_v32 = vld [vmem:[%s13798_s7 + $0x414] ss:$8 sps:$4 sm:$0xff]   ;;  %v10618_v8 = vld [vmem:[%s13798_s7 + $0x80] ss:$8 sps:$4 sm:$0xff]   ;;  %v7310_v14 = vpack.c.bf16 %v13277_v39, %v13277_v39 }
 0x528   :  { %7036 = vmatpush1.bf16.msra.mxu1 %v10573_v3  ;;  %v10626_v48 = vld [vmem:[%s13798_s7 + $0x94] ss:$8 sps:$4 sm:$0xff]   ;;  %v10621_v46 = vld [vmem:[%s13798_s7 + $0x410] ss:$8 sps:$4 sm:$0xff]   ;;  %v10629_v53 = vld [vmem:[%s13798_s7 + $0x424] ss:$8 sps:$4 sm:$0xff]  }
 0x529   :  { %7037 = vmatprep.subr.bf16.mxu1 %v10581_v47  ;;  %v10624_v15 = vld [vmem:[%s13798_s7 + $0x90] ss:$8 sps:$4 sm:$0xff]   ;;  %v10632_v5 = vld [vmem:[%s13798_s7 + $0xa4] ss:$8 sps:$4 sm:$0xff]   ;;  %v10627_v62 = vld [vmem:[%s13798_s7 + $0x420] ss:$8 sps:$4 sm:$0xff]  }
 0x52a   :  { %6361 = vmatpush1.bf16.msra.mxu0 %v10576_v25  ;;  %v10635_v16 = vld [vmem:[%s13798_s7 + $0x434] ss:$8 sps:$4 sm:$0xff]   ;;  %v10630_v9 = vld [vmem:[%s13798_s7 + $0xa0] ss:$8 sps:$4 sm:$0xff]   ;;  %v10633_v44 = vld [vmem:[%s13798_s7 + $0x430] ss:$8 sps:$4 sm:$0xff]   ;;  %v5955_v25 = vsel %vm2319_vm5, %v13239_v38, %v5951_v6 }
 0x52b   :  { %6362 = vmatprep.subr.bf16.mxu0 %v10584_v30  ;;  %v10638_v4 = vld [vmem:[%s13798_s7 + $0xb4] ss:$8 sps:$4 sm:$0xff]   ;;  %v10641_v57 = vld [vmem:[%s13798_s7 + $0x444] ss:$8 sps:$4 sm:$0xff]   ;;  %v10636_v0 = vld [vmem:[%s13798_s7 + $0xb0] ss:$8 sps:$4 sm:$0xff]   ;;  %v6859_v30 = vpack.c.bf16 %v13256_v55, %v13256_v55  ;;  %v6633_v55 = vpack.c.bf16 %v13286_v34, %v13286_v34 }
 0x52c   :  { %7038 = vmatpush1.bf16.msra.mxu1 %v10579_v28  ;;  %v10644_v49 = vld [vmem:[%s13798_s7 + $0xc4] ss:$8 sps:$4 sm:$0xff]   ;;  %v10639_v36 = vld [vmem:[%s13798_s7 + $0x440] ss:$8 sps:$4 sm:$0xff]   ;;  %v10647_v50 = vld [vmem:[%s13798_s7 + $0x454] ss:$8 sps:$4 sm:$0xff]  }
 0x52d   :  { %7039 = vmatprep.subr.bf16.mxu1 %v10587_v23  ;;  %v10642_v42 = vld [vmem:[%s13798_s7 + $0xc0] ss:$8 sps:$4 sm:$0xff]   ;;  %v10650_v3 = vld [vmem:[%s13798_s7 + $0xd4] ss:$8 sps:$4 sm:$0xff]   ;;  %v10645_v45 = vld [vmem:[%s13798_s7 + $0x450] ss:$8 sps:$4 sm:$0xff]   ;;  %v5957_v23 = vpack.c.bf16 %v5955_v25, %v5955_v25 }
 0x52e   :  { %6363 = vmatpush1.bf16.msra.mxu0 %v10582_v20  ;;  %v10653_v47 = vld [vmem:[%s13798_s7 + $0x544] ss:$8 sps:$4 sm:$0xff]   ;;  %v10648_v35 = vld [vmem:[%s13798_s7 + $0xd0] ss:$8 sps:$4 sm:$0xff]   ;;  %v10651_v56 = vld [vmem:[%s13798_s7 + $0x540] ss:$8 sps:$4 sm:$0xff]  }
 0x52f   :  { %6364 = vmatprep.subr.bf16.mxu0 %v10590_v33  ;;  %v10656_v37 = vld [vmem:[%s13798_s7 + $0x2a4] ss:$8 sps:$4 sm:$0xff]   ;;  %v10659_v2 = vld [vmem:[%s13798_s7 + $0x554] ss:$8 sps:$4 sm:$0xff]   ;;  %v10654_v28 = vld [vmem:[%s13798_s7 + $0x2a0] ss:$8 sps:$4 sm:$0xff]  }
 0x530   :  { %7040 = vmatpush1.bf16.msra.mxu1 %v10585_v52  ;;  %v10662_v38 = vld [vmem:[%s13798_s7 + $0x2b4] ss:$8 sps:$4 sm:$0xff]   ;;  %v10657_v39 = vld [vmem:[%s13798_s7 + $0x550] ss:$8 sps:$4 sm:$0xff]   ;;  %v10665_v6 = vld [vmem:[%s13798_s7 + $0x564] ss:$8 sps:$4 sm:$0xff]  }
 0x531   :  { %7041 = vmatprep.subr.bf16.mxu1 %v10593_v60  ;;  %v10660_v20 = vld [vmem:[%s13798_s7 + $0x2b0] ss:$8 sps:$4 sm:$0xff]   ;;  %v10668_v34 = vld [vmem:[%s13798_s7 + $0x2c4] ss:$8 sps:$4 sm:$0xff]   ;;  %v10663_v33 = vld [vmem:[%s13798_s7 + $0x560] ss:$8 sps:$4 sm:$0xff]  }
 0x532   :  { %6365 = vmatpush1.bf16.msra.mxu0 %v10588_v18  ;;  %v10671_v52 = vld [vmem:[%s13798_s7 + $0x574] ss:$8 sps:$4 sm:$0xff]   ;;  %v10666_v60 = vld [vmem:[%s13798_s7 + $0x2c0] ss:$8 sps:$4 sm:$0xff]   ;;  %v10737_v25 = vld [vmem:[%s13798_s7 + $0x464] ss:$8 sps:$4 sm:$0xff]  }
 0x533   :  { %6366 = vmatprep.subr.bf16.mxu0 %v10596_v7  ;;  %v10674_v18 = vld [vmem:[%s13798_s7 + $0x2d4] ss:$8 sps:$4 sm:$0xff]   ;;  %v10669_v7 = vld [vmem:[%s13798_s7 + $0x570] ss:$8 sps:$4 sm:$0xff]  }
 0x534   :  { %7042 = vmatpush1.bf16.msra.mxu1 %v10591_v13  ;;  %v10677_v13 = vld [vmem:[%s13798_s7 + $0x584] ss:$8 sps:$4 sm:$0xff]  }
 0x535   :  { %7043 = vmatprep.subr.bf16.mxu1 %v10599_v26  ;;  %v10672_v26 = vld [vmem:[%s13798_s7 + $0x2d0] ss:$8 sps:$4 sm:$0xff]  }
 0x536   :  { %6367 = vmatpush1.bf16.msra.mxu0 %v10594_v41  ;;  %v10680_v41 = vld [vmem:[%s13798_s7 + $0x2e4] ss:$8 sps:$4 sm:$0xff]  }
 0x537   :  { %6368 = vmatprep.subr.bf16.mxu0 %v10602_v29  ;;  %v10675_v29 = vld [vmem:[%s13798_s7 + $0x580] ss:$8 sps:$4 sm:$0xff]  }
 0x538   :  { %7044 = vmatpush1.bf16.msra.mxu1 %v10597_v24  ;;  %v10683_v24 = vld [vmem:[%s13798_s7 + $0x594] ss:$8 sps:$4 sm:$0xff]  }
 0x539   :  { %7045 = vmatprep.subr.bf16.mxu1 %v10605_v19  ;;  %v10678_v19 = vld [vmem:[%s13798_s7 + $0x2e0] ss:$8 sps:$4 sm:$0xff]  }
 0x53a   :  { %6369 = vmatpush1.bf16.msra.mxu0 %v10600_v63  ;;  %v10686_v63 = vld [vmem:[%s13798_s7 + $0x2f4] ss:$8 sps:$4 sm:$0xff]  }
 0x53b   :  { %6370 = vmatprep.subr.bf16.mxu0 %v10608_v12  ;;  %v10681_v12 = vld [vmem:[%s13798_s7 + $0x590] ss:$8 sps:$4 sm:$0xff]  }
 0x53c   :  { %7046 = vmatpush1.bf16.msra.mxu1 %v10603_v54  ;;  %v10689_v54 = vld [vmem:[%s13798_s7 + $0x5a4] ss:$8 sps:$4 sm:$0xff]  }
 0x53d   :  { %7047 = vmatprep.subr.bf16.mxu1 %v10611_v17  ;;  %v10684_v17 = vld [vmem:[%s13798_s7 + $0x2f0] ss:$8 sps:$4 sm:$0xff]  }
 0x53e   :  { %6371 = vmatpush1.bf16.msra.mxu0 %v10606_v58  ;;  %v10692_v58 = vld [vmem:[%s13798_s7 + $0x304] ss:$8 sps:$4 sm:$0xff]  }
 0x53f   :  { %6372 = vmatprep.subr.bf16.mxu0 %v10614_v59  ;;  %v10687_v59 = vld [vmem:[%s13798_s7 + $0x5a0] ss:$8 sps:$4 sm:$0xff]  }
 0x540   :  { %7048 = vmatpush1.bf16.msra.mxu1 %v10609_v1  ;;  %v10695_v1 = vld [vmem:[%s13798_s7 + $0x5b4] ss:$8 sps:$4 sm:$0xff]  }
 0x541   :  { %7049 = vmatprep.subr.bf16.mxu1 %v10617_v31  ;;  %v10690_v31 = vld [vmem:[%s13798_s7 + $0x300] ss:$8 sps:$4 sm:$0xff]  }
 0x542   :  { %6373 = vmatpush1.bf16.msra.mxu0 %v10612_v51  ;;  %v10698_v51 = vld [vmem:[%s13798_s7 + $0x314] ss:$8 sps:$4 sm:$0xff]  }
 0x543   :  { %6374 = vmatprep.subr.bf16.mxu0 %v10620_v11  ;;  %v10693_v11 = vld [vmem:[%s13798_s7 + $0x5b0] ss:$8 sps:$4 sm:$0xff]  }
 0x544   :  { %7050 = vmatpush1.bf16.msra.mxu1 %v10615_v43  ;;  %v10701_v43 = vld [vmem:[%s13798_s7 + $0x5c4] ss:$8 sps:$4 sm:$0xff]  }
 0x545   :  { %7051 = vmatprep.subr.bf16.mxu1 %v10623_v32  ;;  %v10696_v32 = vld [vmem:[%s13798_s7 + $0x310] ss:$8 sps:$4 sm:$0xff]  }
 0x546   :  { %6375 = vmatpush1.bf16.msra.mxu0 %v10618_v8  ;;  %v10704_v8 = vld [vmem:[%s13798_s7 + $0x324] ss:$8 sps:$4 sm:$0xff]  }
 0x547   :  { %6376 = vmatprep.subr.bf16.mxu0 %v10626_v48  ;;  %v10699_v48 = vld [vmem:[%s13798_s7 + $0x5c0] ss:$8 sps:$4 sm:$0xff]  }
 0x548   :  { %7052 = vmatpush1.bf16.msra.mxu1 %v10621_v46  ;;  %v10707_v46 = vld [vmem:[%s13798_s7 + $0x5d4] ss:$8 sps:$4 sm:$0xff]  }
 0x549   :  { %7053 = vmatprep.subr.bf16.mxu1 %v10629_v53  ;;  %v10702_v53 = vld [vmem:[%s13798_s7 + $0x320] ss:$8 sps:$4 sm:$0xff]  }
 0x54a   :  { %6377 = vmatpush1.bf16.msra.mxu0 %v10624_v15  ;;  %v10710_v15 = vld [vmem:[%s13798_s7 + $0x334] ss:$8 sps:$4 sm:$0xff]  }
 0x54b   :  { %6378 = vmatprep.subr.bf16.mxu0 %v10632_v5  ;;  %v10705_v5 = vld [vmem:[%s13798_s7 + $0x5d0] ss:$8 sps:$4 sm:$0xff]  }
 0x54c   :  { %7054 = vmatpush1.bf16.msra.mxu1 %v10627_v62  ;;  %v10713_v62 = vld [vmem:[%s13798_s7 + $0x5e4] ss:$8 sps:$4 sm:$0xff]  }
 0x54d   :  { %7055 = vmatprep.subr.bf16.mxu1 %v10635_v16  ;;  %v10708_v16 = vld [vmem:[%s13798_s7 + $0x330] ss:$8 sps:$4 sm:$0xff]  }
 0x54e   :  { %6379 = vmatpush1.bf16.msra.mxu0 %v10630_v9  ;;  %v10716_v9 = vld [vmem:[%s13798_s7 + $0x344] ss:$8 sps:$4 sm:$0xff]  }
 0x54f   :  { %6380 = vmatprep.subr.bf16.mxu0 %v10638_v4  ;;  %v10711_v4 = vld [vmem:[%s13798_s7 + $0x5e0] ss:$8 sps:$4 sm:$0xff]  }
 0x550   :  { %7056 = vmatpush1.bf16.msra.mxu1 %v10633_v44  ;;  %v10719_v44 = vld [vmem:[%s13798_s7 + $0x5f4] ss:$8 sps:$4 sm:$0xff]  }
 0x551   :  { %7057 = vmatprep.subr.bf16.mxu1 %v10641_v57  ;;  %v10714_v57 = vld [vmem:[%s13798_s7 + $0x340] ss:$8 sps:$4 sm:$0xff]  }
 0x552   :  { %6381 = vmatpush1.bf16.msra.mxu0 %v10636_v0  ;;  %v10722_v0 = vld [vmem:[%s13798_s7 + $0x354] ss:$8 sps:$4 sm:$0xff]  }
 0x553   :  { %6382 = vmatprep.subr.bf16.mxu0 %v10644_v49  ;;  %v10717_v49 = vld [vmem:[%s13798_s7 + $0x5f0] ss:$8 sps:$4 sm:$0xff]  }
 0x554   :  { %7058 = vmatpush1.bf16.msra.mxu1 %v10639_v36  ;;  %v10725_v36 = vld [vmem:[%s13798_s7 + $0x604] ss:$8 sps:$4 sm:$0xff]  }
 0x555   :  { %7059 = vmatprep.subr.bf16.mxu1 %v10647_v50  ;;  %v10720_v50 = vld [vmem:[%s13798_s7 + $0x350] ss:$8 sps:$4 sm:$0xff]  }
 0x556   :  { %6383 = vmatpush1.bf16.msra.mxu0 %v10642_v42  ;;  %v10728_v42 = vld [vmem:[%s13798_s7 + $0x364] ss:$8 sps:$4 sm:$0xff]  }
 0x557   :  { %6384 = vmatprep.subr.bf16.mxu0 %v10650_v3  ;;  %v10723_v3 = vld [vmem:[%s13798_s7 + $0x600] ss:$8 sps:$4 sm:$0xff]  }
 0x558   :  { %7060 = vmatpush1.bf16.msra.mxu1 %v10645_v45  ;;  %v10731_v45 = vld [vmem:[%s13798_s7 + $0x614] ss:$8 sps:$4 sm:$0xff]  }
 0x559   :  { %7483 = vmatprep.subr.bf16.mxu1 %v10653_v47  ;;  %v10726_v47 = vld [vmem:[%s13798_s7 + $0x360] ss:$8 sps:$4 sm:$0xff]  }
 0x55a   :  { %6385 = vmatpush1.bf16.msra.mxu0 %v10648_v35  ;;  %v10734_v35 = vld [vmem:[%s13798_s7 + $0x374] ss:$8 sps:$4 sm:$0xff]  }
 0x55b   :  { %7066 = vmatmul.mubr.bf16.vlgmr.msra.gmra.mrb[152].mxu1 %v6859_v30  ;;  %6806 = vmatprep.subr.bf16.mxu0 %v10656_v37  ;;  %v10729_v37 = vld [vmem:[%s13798_s7 + $0x610] ss:$8 sps:$4 sm:$0xff]   ;;  %v7309_v30 = vpack.c.bf16 %v13296_v22, %v13296_v22 }
 0x55c   :  { %7484 = vmatpush1.bf16.msra.mxu1 %v10651_v56  ;;  %9197 = vmatprep.mubr.msk.bf16.mxu1 %vm6170_vm11, %v7310_v14  ;;  %v10732_v56 = vld [vmem:[%s13798_s7 + $0x370] ss:$8 sps:$4 sm:$0xff]   ;;  %v6632_v14 = vpack.c.bf16 %v13302_v40, %v13302_v40  ;;  %v10743_v40 = vld [vmem:[%s13798_s7 + $0x484] ss:$8 sps:$4 sm:$0xff]  }
 0x55d   :  { %6391 = vmatmul.mubr.bf16.vlgmr.msra.gmra.mrb[80].mxu0 %v5957_v23  ;;  %7485 = vmatprep.subr.bf16.mxu1 %v10659_v2  ;;  %v10735_v2 = vld [vmem:[%s13798_s7 + $0x460] ss:$8 sps:$4 sm:$0xff]   ;;  %v7087_v23 = vpack.c.bf16 %v13305_v61, %v13305_v61  ;;  %v10738_v22 = vld [vmem:[%s13798_s7 + $0x470] ss:$8 sps:$4 sm:$0xff]   ;;  %v10746_v61 = vld [vmem:[%s13798_s7 + $0x494] ss:$8 sps:$4 sm:$0xff]  }
 0x55e   :  { %6807 = vmatpush1.bf16.msra.mxu0 %v10654_v28  ;;  %9026 = vmatprep.mubr.msk.bf16.mxu0 %vm6170_vm11, %v6633_v55  ;;  %v10740_v28 = vld [vmem:[%s13798_s7 + $0x474] ss:$8 sps:$4 sm:$0xff]   ;;  %v10744_v55 = vld [vmem:[%s13798_s7 + $0x490] ss:$8 sps:$4 sm:$0xff]  }
 0x55f   :  { %6808 = vmatprep.subr.bf16.mxu0 %v10662_v38  ;;  %v10741_v38 = vld [vmem:[%s13798_s7 + $0x480] ss:$8 sps:$4 sm:$0xff]  }
 0x560   :  { %7486 = vmatpush1.bf16.msra.mxu1 %v10657_v39  ;;  %v10749_v39 = vld [vmem:[%s13798_s7 + $0x4a4] ss:$8 sps:$4 sm:$0xff]  }
 0x561   :  { %7487 = vmatprep.subr.bf16.mxu1 %v10665_v6  ;;  %v10747_v6 = vld [vmem:[%s13798_s7 + $0x4a0] ss:$8 sps:$4 sm:$0xff]  }
 0x562   :  { %6809 = vmatpush1.bf16.msra.mxu0 %v10660_v20  ;;  %v10752_v20 = vld [vmem:[%s13798_s7 + $0x4b4] ss:$8 sps:$4 sm:$0xff]  }
 0x563   :  { %6810 = vmatprep.subr.bf16.mxu0 %v10668_v34  ;;  %v10750_v34 = vld [vmem:[%s13798_s7 + $0x4b0] ss:$8 sps:$4 sm:$0xff]  }
 0x564   :  { %7488 = vmatpush1.bf16.msra.mxu1 %v10663_v33  ;;  %v10755_v33 = vld [vmem:[%s13798_s7 + $0x4c4] ss:$8 sps:$4 sm:$0xff]  }
 0x565   :  { %7489 = vmatprep.subr.bf16.mxu1 %v10671_v52  ;;  %v10753_v52 = vld [vmem:[%s13798_s7 + $0x4c0] ss:$8 sps:$4 sm:$0xff]  }
 0x566   :  { %6811 = vmatpush1.bf16.msra.mxu0 %v10666_v60  ;;  %v10758_v60 = vld [vmem:[%s13798_s7 + $0x4d4] ss:$8 sps:$4 sm:$0xff]  }
 0x567   :  { %6812 = vmatprep.subr.bf16.mxu0 %v10674_v18  ;;  %v10756_v18 = vld [vmem:[%s13798_s7 + $0x4d0] ss:$8 sps:$4 sm:$0xff]  }
 0x568   :  { %7490 = vmatpush1.bf16.msra.mxu1 %v10669_v7  ;;  %v10761_v7 = vld [vmem:[%s13798_s7 + $0x4e4] ss:$8 sps:$4 sm:$0xff]  }
 0x569   :  { %7491 = vmatprep.subr.bf16.mxu1 %v10677_v13  ;;  %v10759_v13 = vld [vmem:[%s13798_s7 + $0x4e0] ss:$8 sps:$4 sm:$0xff]  }
 0x56a   :  { %6813 = vmatpush1.bf16.msra.mxu0 %v10672_v26  ;;  %v10764_v26 = vld [vmem:[%s13798_s7 + $0x4f4] ss:$8 sps:$4 sm:$0xff]  }
 0x56b   :  { %6814 = vmatprep.subr.bf16.mxu0 %v10680_v41  ;;  %v10762_v41 = vld [vmem:[%s13798_s7 + $0x4f0] ss:$8 sps:$4 sm:$0xff]  }
 0x56c   :  { %7492 = vmatpush1.bf16.msra.mxu1 %v10675_v29  ;;  %v10767_v29 = vld [vmem:[%s13798_s7 + $0x504] ss:$8 sps:$4 sm:$0xff]  }
 0x56d   :  { %7493 = vmatprep.subr.bf16.mxu1 %v10683_v24  ;;  %v10765_v24 = vld [vmem:[%s13798_s7 + $0x500] ss:$8 sps:$4 sm:$0xff]  }
 0x56e   :  { %6815 = vmatpush1.bf16.msra.mxu0 %v10678_v19  ;;  %v10770_v19 = vld [vmem:[%s13798_s7 + $0x514] ss:$8 sps:$4 sm:$0xff]  }
 0x56f   :  { %6816 = vmatprep.subr.bf16.mxu0 %v10686_v63  ;;  %v10768_v63 = vld [vmem:[%s13798_s7 + $0x510] ss:$8 sps:$4 sm:$0xff]  }
 0x570   :  { %7494 = vmatpush1.bf16.msra.mxu1 %v10681_v12  ;;  %v10773_v12 = vld [vmem:[%s13798_s7 + $0x524] ss:$8 sps:$4 sm:$0xff]  }
 0x571   :  { %7495 = vmatprep.subr.bf16.mxu1 %v10689_v54  ;;  %v10771_v54 = vld [vmem:[%s13798_s7 + $0x520] ss:$8 sps:$4 sm:$0xff]  }
 0x572   :  { %6817 = vmatpush1.bf16.msra.mxu0 %v10684_v17  ;;  %v10776_v17 = vld [vmem:[%s13798_s7 + $0x534] ss:$8 sps:$4 sm:$0xff]  }
 0x573   :  { %6818 = vmatprep.subr.bf16.mxu0 %v10692_v58  ;;  %v10774_v58 = vld [vmem:[%s13798_s7 + $0x530] ss:$8 sps:$4 sm:$0xff]  }
 0x574   :  { %7496 = vmatpush1.bf16.msra.mxu1 %v10687_v59  ;;  %v7086_v59 = vpack.c.bf16 %v13316_v10, %v13316_v10  ;;  %v10781_v10 = vld [vmem:[%s13800_s9 + $0x50] sm:$0xff]  }
 0x575   :  { %7497 = vmatprep.subr.bf16.mxu1 %v10695_v1  ;;  %v10777_v1 = vld [vmem:[%s13800_s9 + $0x40] sm:$0xff]  }
 0x576   :  { %6819 = vmatpush1.bf16.msra.mxu0 %v10690_v31  ;;  %v10778_v31 = vld [vmem:[%s13800_s9] sm:$0xff]  }
 0x577   :  { %6820 = vmatprep.subr.bf16.mxu0 %v10698_v51  ;;  %v10779_v51 = vld [vmem:[%s13800_s9 + $0x48] sm:$0xff]  }
 0x578   :  { %7498 = vmatpush1.bf16.msra.mxu1 %v10693_v11  ;;  %v10780_v11 = vld [vmem:[%s13800_s9 + $0x8] sm:$0xff]  }
 0x579   :  { %7499 = vmatprep.subr.bf16.mxu1 %v10701_v43  ;;  %v10782_v43 = vld [vmem:[%s13800_s9 + $0x10] sm:$0xff]  }
 0x57a   :  { %6821 = vmatpush1.bf16.msra.mxu0 %v10696_v32  ;;  %v10783_v32 = vld [vmem:[%s13800_s9 + $0x58] sm:$0xff]  }
 0x57b   :  { %6822 = vmatprep.subr.bf16.mxu0 %v10704_v8 }
 0x57c   :  { %7500 = vmatpush1.bf16.msra.mxu1 %v10699_v48  ;;  %v10784_v48 = vld [vmem:[%s13800_s9 + $0x18] sm:$0xff]  }
 0x57d   :  { %7501 = vmatprep.subr.bf16.mxu1 %v10707_v46 }
 0x57e   :  { %6823 = vmatpush1.bf16.msra.mxu0 %v10702_v53  ;;  %v10785_v53 = vld [vmem:[%s13800_s9 + $0x60] sm:$0xff]  }
 0x57f   :  { %6824 = vmatprep.subr.bf16.mxu0 %v10710_v15 }
 0x580   :  { %7502 = vmatpush1.bf16.msra.mxu1 %v10705_v5 }
 0x581   :  { %7503 = vmatprep.subr.bf16.mxu1 %v10713_v62 }
 0x582   :  { %6825 = vmatpush1.bf16.msra.mxu0 %v10708_v16 }
 0x583   :  { %6826 = vmatprep.subr.bf16.mxu0 %v10716_v9 }
 0x584   :  { %7504 = vmatpush1.bf16.msra.mxu1 %v10711_v4  ;;  %v10786_v4 = vld [vmem:[%s13800_s9 + $0x20] sm:$0xff]  }
 0x585   :  { %7505 = vmatprep.subr.bf16.mxu1 %v10719_v44 }
 0x586   :  { %6827 = vmatpush1.bf16.msra.mxu0 %v10714_v57  ;;  %v10787_v57 = vld [vmem:[%s13800_s9 + $0x68] sm:$0xff]  }
 0x587   :  { %6828 = vmatprep.subr.bf16.mxu0 %v10722_v0  ;;  %v10788_v0 = vld [vmem:[%s13800_s9 + $0x28] sm:$0xff]  }
 0x588   :  { %7506 = vmatpush1.bf16.msra.mxu1 %v10717_v49  ;;  %v10789_v49 = vld [vmem:[%s13800_s9 + $0x70] sm:$0xff]  }
 0x589   :  { %7507 = vmatprep.subr.bf16.mxu1 %v10725_v36  ;;  %v10790_v36 = vld [vmem:[%s13800_s9 + $0x30] sm:$0xff]  }
 0x58a   :  { %6829 = vmatpush1.bf16.msra.mxu0 %v10720_v50  ;;  %v10791_v50 = vld [vmem:[%s13800_s9 + $0x78] sm:$0xff]  }
 0x58b   :  { %6830 = vmatprep.subr.bf16.mxu0 %v10728_v42 }
 0x58c   :  { %7508 = vmatpush1.bf16.msra.mxu1 %v10723_v3 }
 0x58d   :  { %7509 = vmatprep.subr.bf16.mxu1 %v10731_v45 }
 0x58e   :  { %6831 = vmatpush1.bf16.msra.mxu0 %v10726_v47 }
 0x58f   :  { %6832 = vmatprep.subr.bf16.mxu0 %v10734_v35  ;;  %v10792_v35 = vld [vmem:[%s13800_s9 + $0x38] sm:$0xff]  }
 0x590   :  { %7510 = vmatpush1.bf16.msra.mxu1 %v10729_v37 }
 0x592   :  { %6833 = vmatpush1.bf16.msra.mxu0 %v10732_v56 }
 0x593   :  { %7516 = vmatmul.mubr.bf16.vlgmr.msra.gmra.mrb[156].mxu1 %v7309_v30  ;;  %7260 = vmatprep.subr.bf16.mxu0 %v10737_v25 }
 0x595   :  { %6839 = vmatmul.mubr.bf16.vlgmr.msra.gmra.mrb[84].mxu0 %v6632_v14 }
 0x596   :  { %7261 = vmatpush1.bf16.msra.mxu0 %v10735_v2  ;;  %9140 = vmatprep.mubr.msk.bf16.mxu0 %vm6170_vm11, %v7087_v23 }
 0x597   :  { %7262 = vmatprep.subr.bf16.mxu0 %v10740_v28 }
 0x59a   :  { %7263 = vmatpush1.bf16.msra.mxu0 %v10738_v22 }
 0x59b   :  { %7264 = vmatprep.subr.bf16.mxu0 %v10743_v40 }
 0x59e   :  { %7265 = vmatpush1.bf16.msra.mxu0 %v10741_v38 }
 0x59f   :  { %7266 = vmatprep.subr.bf16.mxu0 %v10746_v61 }
 0x5a2   :  { %7267 = vmatpush1.bf16.msra.mxu0 %v10744_v55 }
 0x5a3   :  { %7268 = vmatprep.subr.bf16.mxu0 %v10749_v39 }
 0x5a6   :  { %7269 = vmatpush1.bf16.msra.mxu0 %v10747_v6 }
 0x5a7   :  { %7270 = vmatprep.subr.bf16.mxu0 %v10752_v20 }
 0x5aa   :  { %7271 = vmatpush1.bf16.msra.mxu0 %v10750_v34 }
 0x5ab   :  { %7272 = vmatprep.subr.bf16.mxu0 %v10755_v33 }
 0x5ae   :  { %7273 = vmatpush1.bf16.msra.mxu0 %v10753_v52 }
 0x5af   :  { %7274 = vmatprep.subr.bf16.mxu0 %v10758_v60 }
 0x5b2   :  { %7275 = vmatpush1.bf16.msra.mxu0 %v10756_v18  ;;  %v7526_v18 = vld [vmem:[%s13799_s8] sm:$0x3] }
 0x5b3   :  { %7276 = vmatprep.subr.bf16.mxu0 %v10761_v7 }
 0x5b6   :  { %7277 = vmatpush1.bf16.msra.mxu0 %v10759_v13 }
 0x5b7   :  { %7278 = vmatprep.subr.bf16.mxu0 %v10764_v26  ;;  %v7531_v26 = vrot.slane %v7526_v18, %v11728_v21  ;;  %v9198_v21 = vld [vmem:[%s13801_s10] ss:$0 sm:$0xff] }
 0x5ba   :  { %7279 = vmatpush1.bf16.msra.mxu0 %v10762_v41 }
 0x5bb   :  { %7280 = vmatprep.subr.bf16.mxu0 %v10767_v29 }
 0x5be   :  { %7281 = vmatpush1.bf16.msra.mxu0 %v10765_v24  ;;  %v7535_v24 = vrot.slane %v7526_v18, %v11737_v27 }
 0x5bf   :  { %7282 = vmatprep.subr.bf16.mxu0 %v10770_v19 }
 0x5c2   :  { %7283 = vmatpush1.bf16.msra.mxu0 %v10768_v63 }
 0x5c3   :  { %7284 = vmatprep.subr.bf16.mxu0 %v10773_v12 }
 0x5c6   :  { %7285 = vmatpush1.bf16.msra.mxu0 %v10771_v54 }
 0x5c7   :  { %7286 = vmatprep.subr.bf16.mxu0 %v10776_v17 }
 0x5ca   :  { %7287 = vmatpush1.bf16.msra.mxu0 %v10774_v58 }
 0x5cb   :  { %9423 = vmatprep.subr.bf16.mxu0 %v10777_v1 }
 0x5cd   :  { %7293 = vmatmul.mubr.bf16.vlgmr.msra.gmra.mrb[88].mxu0 %v7086_v59 }
 0x5ce   :  { %9424 = vmatpush3.bf16.msra.mxu0 %v10778_v31 }
 0x5cf   :  { %9425 = vmatprep.subr.bf16.mxu0 %v10779_v51 }
 0x5d2   :  { %9426 = vmatpush3.bf16.msra.mxu0 %v10780_v11 }
 0x5d3   :  { %9427 = vmatprep.subr.bf16.mxu0 %v10781_v10 }
 0x5d6   :  { %9428 = vmatpush3.bf16.msra.mxu0 %v10782_v43 }
 0x5d7   :  { %9429 = vmatprep.subr.bf16.mxu0 %v10783_v32 }
 0x5da   :  { %9430 = vmatpush3.bf16.msra.mxu0 %v10784_v48 }
 0x5db   :  { %9431 = vmatprep.subr.bf16.mxu0 %v10785_v53 }
 0x5de   :  { %9432 = vmatpush3.bf16.msra.mxu0 %v10786_v4 }
 0x5df   :  { %9433 = vmatprep.subr.bf16.mxu0 %v10787_v57 }
 0x5e2   :  { %9434 = vmatpush3.bf16.msra.mxu0 %v10788_v0 }
 0x5e3   :  { %9435 = vmatprep.subr.bf16.mxu0 %v10789_v49 }
 0x5e6   :  { %9436 = vmatpush3.bf16.msra.mxu0 %v10790_v36 }
 0x5e7   :  { %9437 = vmatprep.subr.bf16.mxu0 %v10791_v50 }
 0x5ea   :  { %9438 = vmatpush3.bf16.msra.mxu0 %v10792_v35 }
 0x5f6   :  { %v6613_v8 = vpop.f32.mrb[148].mxu1 }
 0x5f7   :  { %v6615_v46 = vpop.f32.mrb[149].mxu1 }
 0x5f8   :  { %v6208_v15 = vpop.f32.mrb[76].mxu0  ;;  %v6617_v5 = vpop.f32.mrb[150].mxu1 }
 0x5f9   :  { %v6210_v62 = vpop.f32.mrb[77].mxu0  ;;  %v6618_v16 = vpop.f32.mrb[151].mxu1 }
 0x5fa   :  { %v6212_v9 = vpop.f32.mrb[78].mxu0 }
 0x5fb   :  { %v6213_v44 = vpop.f32.mrb[79].mxu0 }
 0x62e   :  { %v7067_v42 = vpop.f32.mrb[152].mxu1 }
 0x62f   :  { %v7069_v3 = vpop.f32.mrb[153].mxu1 }
 0x630   :  { %v6392_v45 = vpop.f32.mrb[80].mxu0  ;;  %v7071_v47 = vpop.f32.mrb[154].mxu1 }
 0x631   :  { %v6393_v37 = vadd.f32 %v6392_v45, %v6208_v15  ;;  %v6394_v56 = vpop.f32.mrb[81].mxu0  ;;  %v7072_v25 = vpop.f32.mrb[155].mxu1 }
 0x632   :  { %v6395_v30 = vadd.f32 %v6394_v56, %v6210_v62  ;;  %v6396_v2 = vpop.f32.mrb[82].mxu0 }
 0x633   :  { %v6397_v14 = vpop.f32.mrb[83].mxu0  ;;  %v6620_v28 = vadd.f32 %v6613_v8, %v6393_v37 }
 0x634   :  { %v6621_v23 = vadd.f32 %v6615_v46, %v6395_v30 }
 0x666   :  { %v7517_v22 = vpop.f32.mrb[156].mxu1 }
 0x667   :  { %v7519_v40 = vpop.f32.mrb[157].mxu1 }
 0x668   :  { %v6840_v38 = vpop.f32.mrb[84].mxu0  ;;  %v7521_v61 = vpop.f32.mrb[158].mxu1 }
 0x669   :  { %v6847_v55 = vadd.f32 %v6840_v38, %v6620_v28  ;;  %v6842_v39 = vpop.f32.mrb[85].mxu0  ;;  %v7522_v6 = vpop.f32.mrb[159].mxu1 }
 0x66a   :  { %v6848_v20 = vadd.f32 %v6842_v39, %v6621_v23  ;;  %v6844_v34 = vpop.f32.mrb[86].mxu0 }
 0x66b   :  { %v6845_v33 = vpop.f32.mrb[87].mxu0  ;;  %v7074_v52 = vadd.f32 %v7067_v42, %v6847_v55 }
 0x66c   :  { %v7075_v60 = vadd.f32 %v7069_v3, %v6848_v20 }
 0x6a0   :  { %v7294_v7 = vpop.f32.mrb[88].mxu0 }
 0x6a1   :  { %v7301_v13 = vadd.f32 %v7294_v7, %v7074_v52  ;;  %v7296_v41 = vpop.f32.mrb[89].mxu0 }
 0x6a2   :  { %v7302_v29 = vadd.f32 %v7296_v41, %v7075_v60  ;;  %v7298_v19 = vpop.f32.mrb[90].mxu0 }
 0x6a3   :  { %v7524_v63 = vadd.f32 %v7517_v22, %v7301_v13  ;;  %v7299_v12 = vpop.f32.mrb[91].mxu0 }
 0x6a4   :  { %v7525_v54 = vadd.f32 %v7519_v40, %v7302_v29 }
 0x6a5   :  { %v7538_v17 = vadd.f32 %v7531_v26, %v7524_v63 }
 0x6a6   :  { %v7539_v58 = vadd.f32 %v7535_v24, %v7525_v54 }
 0x6a7   :  { %v7540_v59 = vmax.f32 %v7538_v17, 0.0 }
 0x6a8   :  { %v7541_v1 = vmax.f32 %v7539_v58, 0.0 }
 0x6a9   :  { %v7542_v51 = vpack.c.bf16 %v7540_v59, %v7540_v59 }
 0x6aa   :  { %v7543_v31 = vpack.c.bf16 %v7541_v1, %v7541_v1 }
 0x6ac   :  { %7711 = vmatprep.mubr.bf16.mxu0 %v7543_v31 }
 0x6ad   :  { %7712 = vmatmul.mubr.bf16.vlgmr.msra.gmra.mrb[92].mxu0 %v7542_v51 }
 0x780   :  { %v9439_v11 = vpop.f32.mrb[92].mxu0 }
 0x781   :  { %v9440_v10 = vpop.f32.mrb[93].mxu0 }
 0x782   :  { %v9441_v27 = vadd.f32 %v9440_v10, %v9439_v11  ;;  %v9442_v43 = vpop.f32.mrb[94].mxu0 }
 0x783   :  { %v9443_v32 = vpop.f32.mrb[95].mxu0 }
 0x784   :  { %v7714_v8 = vadd.f32 %v9441_v27, %v9198_v21 }
 0x786   :  { %7720 = vst.msk [vmem:[#allocation2] sm:$0x3] %vm7719_vm12, %v7714_v8 }
 0x787   :  { %10804 = shalt.err (!%p10801_p4)
}
 0x788   :  { %s10805_s10 = scalar_lea.hbm %s13802_s11, 32 }
 0x789   :  { %p10806_p5 = scmp.ne.s32.totalorder %s13802_s11, %s10805_s10  ;;  %p10809_p6 = scmp.lt.u32.totalorder %s10805_s10, %s13802_s11 }
 0x78b   :  { %p10811_p7 = pnand %p10809_p6, %p10806_p5 }
 0x78d   :  { %10814 = shalt.err (!%p10811_p7)
}
 0x78e   :  { %7730 = dma.vmem_to_hbm [thread:$0]  %s7728_s12, 32, %s13802_s11, [#allocation3]  }
 0x78f   :  { %10815 = dma.done.wait [#allocation3], 32  }
 0x790   :  { %10816 = vsyncadd [#allocation3], 4294967264 }
 0x791   :  { %7734 = vsyncpa [#allocation3], 1 }

</bundles_post_ra>
